<compile_context>
chip_gen: v6e
topology: v6e:2x2x1
jax: 0.10.0
libtpu: 0.0.40
codegen_flags: <defaults>
</compile_context>

<pallas_src>
import functools
import math

import jax
import jax.numpy as jnp
from jax.experimental import pallas as pl
from jax.experimental.pallas import tpu as pltpu


# ---------------------------------------------------------------------------
# Config (consistent with the PyTorch module's forward)
# ---------------------------------------------------------------------------
CFG = dict(
    img_height=16,
    img_width=16,
    patch_size=8,
    in_channels=4,
    n_embd=32,
    num_heads=4,
    mlp_dim=64,
    num_layers=2,
    num_classes=10,
    dropout=0.0,          # dropout == 0 -> identity (inference semantics)
    bias=True,
    pretraining=False,
    hybrid_embedding=False,
)


# ---------------------------------------------------------------------------
# BlockSpec helper: whole (small) array as a single VMEM block.
# ---------------------------------------------------------------------------
def _full_spec(shape):
    zeros = (0,) * len(shape)
    return pl.BlockSpec(shape, lambda i: zeros)


# ---------------------------------------------------------------------------
# In-kernel math helpers (operate on values only — everything stays in vregs)
# ---------------------------------------------------------------------------
_SQRT_HALF = 1.0 / math.sqrt(2.0)


def _matmul_t(a, b):
    """a: (M, K); b: (O, K) torch nn.Linear weight layout  ->  a @ b^T : (M, O)."""
    return jax.lax.dot_general(
        a, b, dimension_numbers=(((1,), (1,)), ((), ())),
        preferred_element_type=jnp.float32)


def _linear(x, w, b):
    return _matmul_t(x, w) + b


def _layernorm(x, g, b):
    mu = jnp.mean(x, axis=-1, keepdims=True)
    xc = x - mu
    var = jnp.mean(xc * xc, axis=-1, keepdims=True)   # biased var (torch LN)
    inv = jax.lax.rsqrt(var + 1e-5)                   # torch default eps
    return xc * inv * g + b


def _erf(x):
    # Abramowitz–Stegun 7.1.26 rational approximation (|err| <= 1.5e-7,
    # i.e. float32-accurate); built from exp/mul/add/div only.
    # The division stays exact (not approx reciprocal) to keep GELU within
    # f32 tolerance of torch's exact-erf nn.GELU.
    a1, a2, a3, a4, a5 = (0.254829592, -0.284496736, 1.421413741,
                          -1.453152027, 1.061405429)
    pcoef = 0.3275911
    ax = jnp.abs(x)
    t = 1.0 / (1.0 + pcoef * ax)
    poly = ((((a5 * t + a4) * t + a3) * t + a2) * t + a1) * t
    y = 1.0 - poly * jnp.exp(-ax * ax)
    return jnp.where(x < 0.0, -y, y)


def _gelu_exact(x):
    return 0.5 * x * (1.0 + _erf(x * _SQRT_HALF))


# ---------------------------------------------------------------------------
# The single fused ViT kernel (values only; single output store at the end)
# ---------------------------------------------------------------------------
def _vit_fused_kernel(B, N, E, nH, hd, L,
                      # inputs
                      patches_ref, pe_w_ref, base_ref, bias_ref, gsel_ref,
                      ln1_g_ref, ln1_b_ref, qkv_w_ref, qkv_b_ref,
                      o_w_ref, o_b_ref, ln2_g_ref, ln2_b_ref,
                      fc_w_ref, fc_b_ref, pr_w_ref, pr_b_ref,
                      lnf_g_ref, lnf_b_ref, head_w_ref, head_b_ref,
                      # output
                      out_ref):
    scale = 1.0 / math.sqrt(hd)

    # ---- patch embedding + cls + positional embedding: 1 matmul + 1 add ----
    # patches are zero-padded at class-token rows; base holds cls+pos[0] on
    # class rows and pos[k]+proj_bias on patch rows (precomputed on host).
    x = _matmul_t(patches_ref[...], pe_w_ref[...]) + base_ref[...]   # (B*N, E)
    # transformer.drop: dropout p=0 -> identity

    attn_bias = bias_ref[...]              # (B*N, B*N): 0 same image, -1e9 cross

    # ---- transformer blocks (statically unrolled; all values in vregs) ----
    # TODO(synk): when scaling E/N/L, turn this loop into a grid axis with
    # per-layer weight BlockSpecs so weights stream HBM->VMEM (v7x 64 MiB).
    for l in range(L):
        # --- attention sub-block ---
        ln1 = _layernorm(x, ln1_g_ref[l], ln1_b_ref[l])
        qkv = _linear(ln1, qkv_w_ref[l], qkv_b_ref[l])              # (B*N, 3E)
        o_w_l = o_w_ref[l]                                          # (E, E)
        attn_proj = None
        for h in range(nH):
            # static lane slices of a value (vreg selects, no VMEM traffic)
            q = qkv[:, h * hd:(h + 1) * hd]                         # (B*N, hd)
            k = qkv[:, E + h * hd:E + (h + 1) * hd]
            v = qkv[:, 2 * E + h * hd:2 * E + (h + 1) * hd]
            s = _matmul_t(q, k) * scale + attn_bias                 # (B*N, B*N)
            s = s - jnp.max(s, axis=-1, keepdims=True)
            p = jnp.exp(s)
            p = p * pl.reciprocal(jnp.sum(p, axis=-1, keepdims=True),
                                  approx=True)
            o_h = jnp.dot(p, v, preferred_element_type=jnp.float32)  # (B*N, hd)
            # fold the per-head slice of the out-projection: no head->lane
            # relayout back to (B*N, E) is ever materialized.
            contrib = _matmul_t(o_h, o_w_l[:, h * hd:(h + 1) * hd])  # (B*N, E)
            attn_proj = contrib if attn_proj is None else attn_proj + contrib
        # attn/resid dropout (p=0) -> identity
        x = x + attn_proj + o_b_ref[l]

        # --- MLP sub-block (exact-erf GELU fused in-kernel) ---
        ln2 = _layernorm(x, ln2_g_ref[l], ln2_b_ref[l])
        fc = _gelu_exact(_linear(ln2, fc_w_ref[l], fc_b_ref[l]))    # (B*N, M)
        x = x + _linear(fc, pr_w_ref[l], pr_b_ref[l])

    # ---- class-token gather (one-hot matmul) + final LN + head ------------
    cls_tok = jnp.dot(gsel_ref[...], x, preferred_element_type=jnp.float32)
    hf = _layernorm(cls_tok, lnf_g_ref[...], lnf_b_ref[...])        # (B, E)
    out_ref[...] = _linear(hf, head_w_ref[...], head_b_ref[...])    # one store


# ---------------------------------------------------------------------------
# Parameter initialization (deterministic, torch-shaped weights: (out, in))
# ---------------------------------------------------------------------------
def init_params(key, cfg):
    E = cfg["n_embd"]
    P = cfg["patch_size"]
    C = cfg["in_channels"]
    num_patches = cfg["img_height"] * cfg["img_width"] // P**2
    flatten_dim = P * P * C
    mlp = cfg["mlp_dim"]

    def nrm(k, shape, scale=0.02):
        return scale * jax.random.normal(k, shape, jnp.float32)

    keys = iter(jax.random.split(key, 256))

    params = {}
    params["pe"] = dict(
        proj_w=nrm(next(keys), (E, flatten_dim)),
        proj_b=jnp.zeros((E,), jnp.float32),
        position_embed=jax.random.normal(next(keys), (1, 1 + num_patches, E),
                                         jnp.float32),
        class_embed=jax.random.normal(next(keys), (1, 1, E), jnp.float32),
    )

    blocks = []
    for _ in range(cfg["num_layers"]):
        blocks.append(dict(
            ln1_g=jnp.ones((E,), jnp.float32), ln1_b=jnp.zeros((E,), jnp.float32),
            q_w=nrm(next(keys), (E, E)), q_b=jnp.zeros((E,), jnp.float32),
            k_w=nrm(next(keys), (E, E)), k_b=jnp.zeros((E,), jnp.float32),
            v_w=nrm(next(keys), (E, E)), v_b=jnp.zeros((E,), jnp.float32),
            o_w=nrm(next(keys), (E, E)), o_b=jnp.zeros((E,), jnp.float32),
            ln2_g=jnp.ones((E,), jnp.float32), ln2_b=jnp.zeros((E,), jnp.float32),
            fc_w=nrm(next(keys), (mlp, E)), fc_b=jnp.zeros((mlp,), jnp.float32),
            proj_w=nrm(next(keys), (E, mlp)), proj_b=jnp.zeros((E,), jnp.float32),
        ))
    params["blocks"] = blocks

    params["lnf_g"] = jnp.ones((E,), jnp.float32)
    params["lnf_b"] = jnp.zeros((E,), jnp.float32)
    params["head_w"] = nrm(next(keys), (cfg["num_classes"], E))
    params["head_b"] = jnp.zeros((cfg["num_classes"],), jnp.float32)
    return params


def pack_params(params, cfg):
    """One-time re-pack into the stacked layouts the fused kernel consumes
    (done once at init: no per-forward transposes / HBM weight copies)."""
    E = cfg["n_embd"]
    mlp = cfg["mlp_dim"]
    L = cfg["num_layers"]
    Ccls = cfg["num_classes"]
    pe = params["pe"]
    N = pe["position_embed"].shape[1]
    blocks = params["blocks"]

    def stack(name):
        return jnp.stack([blk[name] for blk in blocks], axis=0)

    return dict(
        pe_w=pe["proj_w"],                                   # (E, F)
        pe_b=pe["proj_b"].reshape(1, E),
        cls=pe["class_embed"].reshape(1, E),
        pos=pe["position_embed"].reshape(N, E),
        ln1_g=stack("ln1_g").reshape(L, 1, E),
        ln1_b=stack("ln1_b").reshape(L, 1, E),
        qkv_w=jnp.stack(
            [jnp.concatenate([blk["q_w"], blk["k_w"], blk["v_w"]], axis=0)
             for blk in blocks], axis=0),                    # (L, 3E, E)
        qkv_b=jnp.stack(
            [jnp.concatenate([blk["q_b"], blk["k_b"], blk["v_b"]], axis=0)
             for blk in blocks], axis=0).reshape(L, 1, 3 * E),
        o_w=stack("o_w"),                                    # (L, E, E)
        o_b=stack("o_b").reshape(L, 1, E),
        ln2_g=stack("ln2_g").reshape(L, 1, E),
        ln2_b=stack("ln2_b").reshape(L, 1, E),
        fc_w=stack("fc_w"),                                  # (L, mlp, E)
        fc_b=stack("fc_b").reshape(L, 1, mlp),
        pr_w=stack("proj_w"),                                # (L, E, mlp)
        pr_b=stack("proj_b").reshape(L, 1, E),
        lnf_g=params["lnf_g"].reshape(1, E),
        lnf_b=params["lnf_b"].reshape(1, E),
        head_w=params["head_w"],                             # (Ccls, E)
        head_b=params["head_b"].reshape(1, Ccls),
    )


# ---------------------------------------------------------------------------
# Forward pass (mirrors ViT.forward with targets=None -> returns logits)
# ---------------------------------------------------------------------------
def vit_forward(packed, x, cfg=CFG):
    B, C, H, W = x.shape
    p = cfg["patch_size"]
    nh, nw = H // p, W // p
    num_patches = nh * nw
    flatten_dim = p * p * C
    E = cfg["n_embd"]
    nH = cfg["num_heads"]
    hd = E // nH
    L = cfg["num_layers"]
    N = num_patches + 1
    ncls = cfg["num_classes"]

    # --- PatchEmbedding flatten: mirror the torch unfold/reshape/permute
    #     chain OP-FOR-OP (both frameworks flatten row-major), so the row
    #     ordering — including the reference's cross-image interleaving —
    #     is reproduced bit-exactly for any config. ---
    xu = x.reshape(B, C, nh, p, nw, p).transpose(0, 1, 2, 4, 3, 5)   # unfold x2
    xu = xu.reshape(1, B * C * nh * nw, p, p).transpose(0, 2, 1, 3)  # permute
    patches = xu.reshape(B, num_patches, flatten_dim)                # as torch

    # Zero-pad one row per image at the class-token slot -> (B*N, F); the
    # class rows then contribute exactly 0 to the patch-projection matmul.
    patches_pad = jnp.concatenate(
        [jnp.zeros((B, 1, flatten_dim), patches.dtype), patches],
        axis=1).reshape(B * N, flatten_dim)

    # Additive base per row: class rows get cls_embed+pos[0]; patch rows get
    # pos[k] + projection bias (bias excluded from class rows, as in torch).
    pos = packed["pos"]
    base_img = jnp.concatenate(
        [packed["cls"] + pos[0:1, :], pos[1:, :] + packed["pe_b"]], axis=0)
    base = jnp.tile(base_img, (B, 1))                                 # (B*N, E)

    # Block-diagonal additive attention bias: 0 within an image, -1e9 across.
    ids = jnp.arange(B * N, dtype=jnp.int32) // N
    attn_bias = jnp.where(ids[:, None] == ids[None, :],
                          0.0, -1e9).astype(jnp.float32)              # (B*N, B*N)

    # One-hot gather matrix selecting the class-token row of each image.
    gsel = jnp.zeros((B, B * N), jnp.float32)
    for b in range(B):
        gsel = gsel.at[b, b * N].set(1.0)

    kernel = functools.partial(_vit_fused_kernel, B, N, E, nH, hd, L)

    inputs = [
        patches_pad, packed["pe_w"], base, attn_bias, gsel,
        packed["ln1_g"], packed["ln1_b"], packed["qkv_w"], packed["qkv_b"],
        packed["o_w"], packed["o_b"], packed["ln2_g"], packed["ln2_b"],
        packed["fc_w"], packed["fc_b"], packed["pr_w"], packed["pr_b"],
        packed["lnf_g"], packed["lnf_b"], packed["head_w"], packed["head_b"],
    ]

    # Advisory cost hint so XLA schedules the (single) custom call tightly.
    cost = pl.CostEstimate(flops=520_000, transcendentals=2_500,
                           bytes_accessed=130_000)

    # TODO(synk): for v7x at realistic batch sizes, add a leading "parallel"
    # grid axis over batch so Mosaic shards across the two TensorCores; at
    # B=2/N=5 the cross-TC overhead exceeds the work.
    logits = pl.pallas_call(
        kernel,
        grid=(1,),
        in_specs=[_full_spec(a.shape) for a in inputs],
        out_specs=_full_spec((B, ncls)),
        out_shape=jax.ShapeDtypeStruct((B, ncls), jnp.float32),
        compiler_params=pltpu.CompilerParams(
            dimension_semantics=("arbitrary",),
            vmem_limit_bytes=32 * 1024 * 1024),
        cost_estimate=cost,
    )(*inputs)
    return logits


# ---------------------------------------------------------------------------
if __name__ == "__main__":
    key = jax.random.PRNGKey(0)
    k_param, k_x = jax.random.split(key)

    params = init_params(k_param, CFG)
    packed = pack_params(params, CFG)            # one-time packing (init cost)

    x = jax.random.normal(
        k_x,
        (2, CFG["in_channels"], CFG["img_height"], CFG["img_width"]),
        jnp.float32,
    )

    fwd = jax.jit(lambda pk, xx: vit_forward(pk, xx))
    logits = jax.block_until_ready(fwd(packed, x))
    assert logits.shape == (2, CFG["num_classes"])
    assert bool(jnp.all(jnp.isfinite(logits)))
    print("KERNEL_OK")
</pallas_src>

<mosaic_0001>
module attributes {stable_mosaic.version = 11 : i64} {
  func.func @_vit_fused_kernel(%arg0: i32, %arg1: memref<10x256xf32, #tpu.memory_space<vmem>>, %arg2: memref<32x256xf32, #tpu.memory_space<vmem>>, %arg3: memref<10x32xf32, #tpu.memory_space<vmem>>, %arg4: memref<10x10xf32, #tpu.memory_space<vmem>>, %arg5: memref<2x10xf32, #tpu.memory_space<vmem>>, %arg6: memref<2x1x32xf32, #tpu.memory_space<vmem>>, %arg7: memref<2x1x32xf32, #tpu.memory_space<vmem>>, %arg8: memref<2x96x32xf32, #tpu.memory_space<vmem>>, %arg9: memref<2x1x96xf32, #tpu.memory_space<vmem>>, %arg10: memref<2x32x32xf32, #tpu.memory_space<vmem>>, %arg11: memref<2x1x32xf32, #tpu.memory_space<vmem>>, %arg12: memref<2x1x32xf32, #tpu.memory_space<vmem>>, %arg13: memref<2x1x32xf32, #tpu.memory_space<vmem>>, %arg14: memref<2x64x32xf32, #tpu.memory_space<vmem>>, %arg15: memref<2x1x64xf32, #tpu.memory_space<vmem>>, %arg16: memref<2x32x64xf32, #tpu.memory_space<vmem>>, %arg17: memref<2x1x32xf32, #tpu.memory_space<vmem>>, %arg18: memref<1x32xf32, #tpu.memory_space<vmem>>, %arg19: memref<1x32xf32, #tpu.memory_space<vmem>>, %arg20: memref<10x32xf32, #tpu.memory_space<vmem>>, %arg21: memref<1x10xf32, #tpu.memory_space<vmem>>, %arg22: memref<2x10xf32, #tpu.memory_space<vmem>>) attributes {dimension_semantics = [#tpu.dimension_semantics<arbitrary>], iteration_bounds = array<i64: 1>, scalar_prefetch = 0 : i64, scratch_operands = 0 : i64, tpu.core_type = #tpu.core_type<tc>, window_params = [{pipeline_mode = #tpu.pipeline_mode<synchronous>, transform_indices = @transform_0, window_bounds = array<i64: 10, 256>}, {pipeline_mode = #tpu.pipeline_mode<synchronous>, transform_indices = @transform_1, window_bounds = array<i64: 32, 256>}, {pipeline_mode = #tpu.pipeline_mode<synchronous>, transform_indices = @transform_2, window_bounds = array<i64: 10, 32>}, {pipeline_mode = #tpu.pipeline_mode<synchronous>, transform_indices = @transform_3, window_bounds = array<i64: 10, 10>}, {pipeline_mode = #tpu.pipeline_mode<synchronous>, transform_indices = @transform_4, window_bounds = array<i64: 2, 10>}, {pipeline_mode = #tpu.pipeline_mode<synchronous>, transform_indices = @transform_5, window_bounds = array<i64: 2, 1, 32>}, {pipeline_mode = #tpu.pipeline_mode<synchronous>, transform_indices = @transform_6, window_bounds = array<i64: 2, 1, 32>}, {pipeline_mode = #tpu.pipeline_mode<synchronous>, transform_indices = @transform_7, window_bounds = array<i64: 2, 96, 32>}, {pipeline_mode = #tpu.pipeline_mode<synchronous>, transform_indices = @transform_8, window_bounds = array<i64: 2, 1, 96>}, {pipeline_mode = #tpu.pipeline_mode<synchronous>, transform_indices = @transform_9, window_bounds = array<i64: 2, 32, 32>}, {pipeline_mode = #tpu.pipeline_mode<synchronous>, transform_indices = @transform_10, window_bounds = array<i64: 2, 1, 32>}, {pipeline_mode = #tpu.pipeline_mode<synchronous>, transform_indices = @transform_11, window_bounds = array<i64: 2, 1, 32>}, {pipeline_mode = #tpu.pipeline_mode<synchronous>, transform_indices = @transform_12, window_bounds = array<i64: 2, 1, 32>}, {pipeline_mode = #tpu.pipeline_mode<synchronous>, transform_indices = @transform_13, window_bounds = array<i64: 2, 64, 32>}, {pipeline_mode = #tpu.pipeline_mode<synchronous>, transform_indices = @transform_14, window_bounds = array<i64: 2, 1, 64>}, {pipeline_mode = #tpu.pipeline_mode<synchronous>, transform_indices = @transform_15, window_bounds = array<i64: 2, 32, 64>}, {pipeline_mode = #tpu.pipeline_mode<synchronous>, transform_indices = @transform_16, window_bounds = array<i64: 2, 1, 32>}, {pipeline_mode = #tpu.pipeline_mode<synchronous>, transform_indices = @transform_17, window_bounds = array<i64: 1, 32>}, {pipeline_mode = #tpu.pipeline_mode<synchronous>, transform_indices = @transform_18, window_bounds = array<i64: 1, 32>}, {pipeline_mode = #tpu.pipeline_mode<synchronous>, transform_indices = @transform_19, window_bounds = array<i64: 10, 32>}, {pipeline_mode = #tpu.pipeline_mode<synchronous>, transform_indices = @transform_20, window_bounds = array<i64: 1, 10>}, {pipeline_mode = #tpu.pipeline_mode<synchronous>, transform_indices = @transform_21, window_bounds = array<i64: 2, 10>}]} {
    %c0 = arith.constant 0 : index
    %c0_0 = arith.constant 0 : index
    %0 = vector.load %arg1[%c0, %c0_0] : memref<10x256xf32, #tpu.memory_space<vmem>>, vector<10x256xf32>
    %c0_1 = arith.constant 0 : index
    %c0_2 = arith.constant 0 : index
    %1 = vector.load %arg2[%c0_1, %c0_2] : memref<32x256xf32, #tpu.memory_space<vmem>>, vector<32x256xf32>
    %cst = arith.constant dense<0.000000e+00> : vector<10x32xf32>
    %2 = tpu.matmul %0, %1, %cst {dimension_numbers = #tpu.dot_dimension_numbers<[1], [1], [0], [0], [0, 0, 1, 0], [], []>} : vector<10x256xf32>, vector<32x256xf32>, vector<10x32xf32> -> vector<10x32xf32>
    %c0_3 = arith.constant 0 : index
    %c0_4 = arith.constant 0 : index
    %3 = vector.load %arg3[%c0_3, %c0_4] : memref<10x32xf32, #tpu.memory_space<vmem>>, vector<10x32xf32>
    %4 = arith.addf %2, %3 : vector<10x32xf32>
    %c0_5 = arith.constant 0 : index
    %c0_6 = arith.constant 0 : index
    %5 = vector.load %arg4[%c0_5, %c0_6] : memref<10x10xf32, #tpu.memory_space<vmem>>, vector<10x10xf32>
    %c0_7 = arith.constant 0 : index
    %c0_8 = arith.constant 0 : index
    %c0_9 = arith.constant 0 : index
    %6 = vector.load %arg6[%c0_7, %c0_8, %c0_9] : memref<2x1x32xf32, #tpu.memory_space<vmem>>, vector<1x1x32xf32>
    %7 = vector.shape_cast %6 : vector<1x1x32xf32> to vector<1x32xf32>
    %c0_10 = arith.constant 0 : index
    %c0_11 = arith.constant 0 : index
    %c0_12 = arith.constant 0 : index
    %8 = vector.load %arg7[%c0_10, %c0_11, %c0_12] : memref<2x1x32xf32, #tpu.memory_space<vmem>>, vector<1x1x32xf32>
    %9 = vector.shape_cast %8 : vector<1x1x32xf32> to vector<1x32xf32>
    %cst_13 = arith.constant dense<0.000000e+00> : vector<10xf32>
    %10 = vector.multi_reduction <add>, %4, %cst_13 [1] : vector<10x32xf32> to vector<10xf32>
    %11 = vector.shape_cast %10 : vector<10xf32> to vector<10x1xf32>
    %cst_14 = arith.constant 3.200000e+01 : f32
    %12 = vector.broadcast %cst_14 : f32 to vector<10x1xf32>
    %13 = arith.divf %11, %12 : vector<10x1xf32>
    %14 = vector.broadcast %13 : vector<10x1xf32> to vector<10x32xf32>
    %15 = arith.subf %4, %14 : vector<10x32xf32>
    %16 = arith.mulf %15, %15 : vector<10x32xf32>
    %cst_15 = arith.constant dense<0.000000e+00> : vector<10xf32>
    %17 = vector.multi_reduction <add>, %16, %cst_15 [1] : vector<10x32xf32> to vector<10xf32>
    %18 = vector.shape_cast %17 : vector<10xf32> to vector<10x1xf32>
    %cst_16 = arith.constant 3.200000e+01 : f32
    %19 = vector.broadcast %cst_16 : f32 to vector<10x1xf32>
    %20 = arith.divf %18, %19 : vector<10x1xf32>
    %cst_17 = arith.constant 9.99999974E-6 : f32
    %21 = vector.broadcast %cst_17 : f32 to vector<10x1xf32>
    %22 = arith.addf %20, %21 : vector<10x1xf32>
    %23 = math.rsqrt %22 : vector<10x1xf32>
    %24 = vector.broadcast %23 : vector<10x1xf32> to vector<10x32xf32>
    %25 = arith.mulf %15, %24 : vector<10x32xf32>
    %26 = vector.broadcast %7 : vector<1x32xf32> to vector<10x32xf32>
    %27 = arith.mulf %25, %26 : vector<10x32xf32>
    %28 = vector.broadcast %9 : vector<1x32xf32> to vector<10x32xf32>
    %29 = arith.addf %27, %28 : vector<10x32xf32>
    %c0_18 = arith.constant 0 : index
    %c0_19 = arith.constant 0 : index
    %c0_20 = arith.constant 0 : index
    %30 = vector.load %arg8[%c0_18, %c0_19, %c0_20] : memref<2x96x32xf32, #tpu.memory_space<vmem>>, vector<1x96x32xf32>
    %31 = vector.shape_cast %30 : vector<1x96x32xf32> to vector<96x32xf32>
    %c0_21 = arith.constant 0 : index
    %c0_22 = arith.constant 0 : index
    %c0_23 = arith.constant 0 : index
    %32 = vector.load %arg9[%c0_21, %c0_22, %c0_23] : memref<2x1x96xf32, #tpu.memory_space<vmem>>, vector<1x1x96xf32>
    %33 = vector.shape_cast %32 : vector<1x1x96xf32> to vector<1x96xf32>
    %cst_24 = arith.constant dense<0.000000e+00> : vector<10x96xf32>
    %34 = tpu.matmul %29, %31, %cst_24 {dimension_numbers = #tpu.dot_dimension_numbers<[1], [1], [0], [0], [0, 0, 1, 0], [], []>} : vector<10x32xf32>, vector<96x32xf32>, vector<10x96xf32> -> vector<10x96xf32>
    %35 = vector.broadcast %33 : vector<1x96xf32> to vector<10x96xf32>
    %36 = arith.addf %34, %35 : vector<10x96xf32>
    %c0_25 = arith.constant 0 : index
    %c0_26 = arith.constant 0 : index
    %c0_27 = arith.constant 0 : index
    %37 = vector.load %arg10[%c0_25, %c0_26, %c0_27] : memref<2x32x32xf32, #tpu.memory_space<vmem>>, vector<1x32x32xf32>
    %38 = vector.shape_cast %37 : vector<1x32x32xf32> to vector<32x32xf32>
    %39 = vector.extract_strided_slice %36 {offsets = [0, 0], sizes = [10, 8], strides = [1, 1]} : vector<10x96xf32> to vector<10x8xf32>
    %40 = vector.extract_strided_slice %36 {offsets = [0, 32], sizes = [10, 8], strides = [1, 1]} : vector<10x96xf32> to vector<10x8xf32>
    %41 = vector.extract_strided_slice %36 {offsets = [0, 64], sizes = [10, 8], strides = [1, 1]} : vector<10x96xf32> to vector<10x8xf32>
    %cst_28 = arith.constant dense<0.000000e+00> : vector<10x10xf32>
    %42 = tpu.matmul %39, %40, %cst_28 {dimension_numbers = #tpu.dot_dimension_numbers<[1], [1], [0], [0], [0, 0, 1, 0], [], []>} : vector<10x8xf32>, vector<10x8xf32>, vector<10x10xf32> -> vector<10x10xf32>
    %cst_29 = arith.constant 0.353553385 : f32
    %43 = vector.broadcast %cst_29 : f32 to vector<10x10xf32>
    %44 = arith.mulf %42, %43 : vector<10x10xf32>
    %45 = arith.addf %44, %5 : vector<10x10xf32>
    %cst_30 = arith.constant dense<0xFF800000> : vector<10xf32>
    %46 = vector.multi_reduction <maximumf>, %45, %cst_30 [1] : vector<10x10xf32> to vector<10xf32>
    %47 = vector.shape_cast %46 : vector<10xf32> to vector<10x1xf32>
    %48 = vector.broadcast %47 : vector<10x1xf32> to vector<10x10xf32>
    %49 = arith.subf %45, %48 : vector<10x10xf32>
    %50 = math.exp %49 : vector<10x10xf32>
    %cst_31 = arith.constant dense<0.000000e+00> : vector<10xf32>
    %51 = vector.multi_reduction <add>, %50, %cst_31 [1] : vector<10x10xf32> to vector<10xf32>
    %52 = vector.shape_cast %51 : vector<10xf32> to vector<10x1xf32>
    %53 = tpu.reciprocal %52 {approx = true} : vector<10x1xf32> -> vector<10x1xf32>
    %54 = vector.broadcast %53 : vector<10x1xf32> to vector<10x10xf32>
    %55 = arith.mulf %50, %54 : vector<10x10xf32>
    %cst_32 = arith.constant dense<0.000000e+00> : vector<10x8xf32>
    %56 = tpu.matmul %55, %41, %cst_32 {dimension_numbers = #tpu.dot_dimension_numbers<[1], [0], [0], [1], [0, 0, 1, 1], [], []>} : vector<10x10xf32>, vector<10x8xf32>, vector<10x8xf32> -> vector<10x8xf32>
    %57 = vector.extract_strided_slice %38 {offsets = [0, 0], sizes = [32, 8], strides = [1, 1]} : vector<32x32xf32> to vector<32x8xf32>
    %cst_33 = arith.constant dense<0.000000e+00> : vector<10x32xf32>
    %58 = tpu.matmul %56, %57, %cst_33 {dimension_numbers = #tpu.dot_dimension_numbers<[1], [1], [0], [0], [0, 0, 1, 0], [], []>} : vector<10x8xf32>, vector<32x8xf32>, vector<10x32xf32> -> vector<10x32xf32>
    %59 = vector.extract_strided_slice %36 {offsets = [0, 8], sizes = [10, 8], strides = [1, 1]} : vector<10x96xf32> to vector<10x8xf32>
    %60 = vector.extract_strided_slice %36 {offsets = [0, 40], sizes = [10, 8], strides = [1, 1]} : vector<10x96xf32> to vector<10x8xf32>
    %61 = vector.extract_strided_slice %36 {offsets = [0, 72], sizes = [10, 8], strides = [1, 1]} : vector<10x96xf32> to vector<10x8xf32>
    %cst_34 = arith.constant dense<0.000000e+00> : vector<10x10xf32>
    %62 = tpu.matmul %59, %60, %cst_34 {dimension_numbers = #tpu.dot_dimension_numbers<[1], [1], [0], [0], [0, 0, 1, 0], [], []>} : vector<10x8xf32>, vector<10x8xf32>, vector<10x10xf32> -> vector<10x10xf32>
    %cst_35 = arith.constant 0.353553385 : f32
    %63 = vector.broadcast %cst_35 : f32 to vector<10x10xf32>
    %64 = arith.mulf %62, %63 : vector<10x10xf32>
    %65 = arith.addf %64, %5 : vector<10x10xf32>
    %cst_36 = arith.constant dense<0xFF800000> : vector<10xf32>
    %66 = vector.multi_reduction <maximumf>, %65, %cst_36 [1] : vector<10x10xf32> to vector<10xf32>
    %67 = vector.shape_cast %66 : vector<10xf32> to vector<10x1xf32>
    %68 = vector.broadcast %67 : vector<10x1xf32> to vector<10x10xf32>
    %69 = arith.subf %65, %68 : vector<10x10xf32>
    %70 = math.exp %69 : vector<10x10xf32>
    %cst_37 = arith.constant dense<0.000000e+00> : vector<10xf32>
    %71 = vector.multi_reduction <add>, %70, %cst_37 [1] : vector<10x10xf32> to vector<10xf32>
    %72 = vector.shape_cast %71 : vector<10xf32> to vector<10x1xf32>
    %73 = tpu.reciprocal %72 {approx = true} : vector<10x1xf32> -> vector<10x1xf32>
    %74 = vector.broadcast %73 : vector<10x1xf32> to vector<10x10xf32>
    %75 = arith.mulf %70, %74 : vector<10x10xf32>
    %cst_38 = arith.constant dense<0.000000e+00> : vector<10x8xf32>
    %76 = tpu.matmul %75, %61, %cst_38 {dimension_numbers = #tpu.dot_dimension_numbers<[1], [0], [0], [1], [0, 0, 1, 1], [], []>} : vector<10x10xf32>, vector<10x8xf32>, vector<10x8xf32> -> vector<10x8xf32>
    %77 = vector.extract_strided_slice %38 {offsets = [0, 8], sizes = [32, 8], strides = [1, 1]} : vector<32x32xf32> to vector<32x8xf32>
    %cst_39 = arith.constant dense<0.000000e+00> : vector<10x32xf32>
    %78 = tpu.matmul %76, %77, %cst_39 {dimension_numbers = #tpu.dot_dimension_numbers<[1], [1], [0], [0], [0, 0, 1, 0], [], []>} : vector<10x8xf32>, vector<32x8xf32>, vector<10x32xf32> -> vector<10x32xf32>
    %79 = arith.addf %58, %78 : vector<10x32xf32>
    %80 = vector.extract_strided_slice %36 {offsets = [0, 16], sizes = [10, 8], strides = [1, 1]} : vector<10x96xf32> to vector<10x8xf32>
    %81 = vector.extract_strided_slice %36 {offsets = [0, 48], sizes = [10, 8], strides = [1, 1]} : vector<10x96xf32> to vector<10x8xf32>
    %82 = vector.extract_strided_slice %36 {offsets = [0, 80], sizes = [10, 8], strides = [1, 1]} : vector<10x96xf32> to vector<10x8xf32>
    %cst_40 = arith.constant dense<0.000000e+00> : vector<10x10xf32>
    %83 = tpu.matmul %80, %81, %cst_40 {dimension_numbers = #tpu.dot_dimension_numbers<[1], [1], [0], [0], [0, 0, 1, 0], [], []>} : vector<10x8xf32>, vector<10x8xf32>, vector<10x10xf32> -> vector<10x10xf32>
    %cst_41 = arith.constant 0.353553385 : f32
    %84 = vector.broadcast %cst_41 : f32 to vector<10x10xf32>
    %85 = arith.mulf %83, %84 : vector<10x10xf32>
    %86 = arith.addf %85, %5 : vector<10x10xf32>
    %cst_42 = arith.constant dense<0xFF800000> : vector<10xf32>
    %87 = vector.multi_reduction <maximumf>, %86, %cst_42 [1] : vector<10x10xf32> to vector<10xf32>
    %88 = vector.shape_cast %87 : vector<10xf32> to vector<10x1xf32>
    %89 = vector.broadcast %88 : vector<10x1xf32> to vector<10x10xf32>
    %90 = arith.subf %86, %89 : vector<10x10xf32>
    %91 = math.exp %90 : vector<10x10xf32>
    %cst_43 = arith.constant dense<0.000000e+00> : vector<10xf32>
    %92 = vector.multi_reduction <add>, %91, %cst_43 [1] : vector<10x10xf32> to vector<10xf32>
    %93 = vector.shape_cast %92 : vector<10xf32> to vector<10x1xf32>
    %94 = tpu.reciprocal %93 {approx = true} : vector<10x1xf32> -> vector<10x1xf32>
    %95 = vector.broadcast %94 : vector<10x1xf32> to vector<10x10xf32>
    %96 = arith.mulf %91, %95 : vector<10x10xf32>
    %cst_44 = arith.constant dense<0.000000e+00> : vector<10x8xf32>
    %97 = tpu.matmul %96, %82, %cst_44 {dimension_numbers = #tpu.dot_dimension_numbers<[1], [0], [0], [1], [0, 0, 1, 1], [], []>} : vector<10x10xf32>, vector<10x8xf32>, vector<10x8xf32> -> vector<10x8xf32>
    %98 = vector.extract_strided_slice %38 {offsets = [0, 16], sizes = [32, 8], strides = [1, 1]} : vector<32x32xf32> to vector<32x8xf32>
    %cst_45 = arith.constant dense<0.000000e+00> : vector<10x32xf32>
    %99 = tpu.matmul %97, %98, %cst_45 {dimension_numbers = #tpu.dot_dimension_numbers<[1], [1], [0], [0], [0, 0, 1, 0], [], []>} : vector<10x8xf32>, vector<32x8xf32>, vector<10x32xf32> -> vector<10x32xf32>
    %100 = arith.addf %79, %99 : vector<10x32xf32>
    %101 = vector.extract_strided_slice %36 {offsets = [0, 24], sizes = [10, 8], strides = [1, 1]} : vector<10x96xf32> to vector<10x8xf32>
    %102 = vector.extract_strided_slice %36 {offsets = [0, 56], sizes = [10, 8], strides = [1, 1]} : vector<10x96xf32> to vector<10x8xf32>
    %103 = vector.extract_strided_slice %36 {offsets = [0, 88], sizes = [10, 8], strides = [1, 1]} : vector<10x96xf32> to vector<10x8xf32>
    %cst_46 = arith.constant dense<0.000000e+00> : vector<10x10xf32>
    %104 = tpu.matmul %101, %102, %cst_46 {dimension_numbers = #tpu.dot_dimension_numbers<[1], [1], [0], [0], [0, 0, 1, 0], [], []>} : vector<10x8xf32>, vector<10x8xf32>, vector<10x10xf32> -> vector<10x10xf32>
    %cst_47 = arith.constant 0.353553385 : f32
    %105 = vector.broadcast %cst_47 : f32 to vector<10x10xf32>
    %106 = arith.mulf %104, %105 : vector<10x10xf32>
    %107 = arith.addf %106, %5 : vector<10x10xf32>
    %cst_48 = arith.constant dense<0xFF800000> : vector<10xf32>
    %108 = vector.multi_reduction <maximumf>, %107, %cst_48 [1] : vector<10x10xf32> to vector<10xf32>
    %109 = vector.shape_cast %108 : vector<10xf32> to vector<10x1xf32>
    %110 = vector.broadcast %109 : vector<10x1xf32> to vector<10x10xf32>
    %111 = arith.subf %107, %110 : vector<10x10xf32>
    %112 = math.exp %111 : vector<10x10xf32>
    %cst_49 = arith.constant dense<0.000000e+00> : vector<10xf32>
    %113 = vector.multi_reduction <add>, %112, %cst_49 [1] : vector<10x10xf32> to vector<10xf32>
    %114 = vector.shape_cast %113 : vector<10xf32> to vector<10x1xf32>
    %115 = tpu.reciprocal %114 {approx = true} : vector<10x1xf32> -> vector<10x1xf32>
    %116 = vector.broadcast %115 : vector<10x1xf32> to vector<10x10xf32>
    %117 = arith.mulf %112, %116 : vector<10x10xf32>
    %cst_50 = arith.constant dense<0.000000e+00> : vector<10x8xf32>
    %118 = tpu.matmul %117, %103, %cst_50 {dimension_numbers = #tpu.dot_dimension_numbers<[1], [0], [0], [1], [0, 0, 1, 1], [], []>} : vector<10x10xf32>, vector<10x8xf32>, vector<10x8xf32> -> vector<10x8xf32>
    %119 = vector.extract_strided_slice %38 {offsets = [0, 24], sizes = [32, 8], strides = [1, 1]} : vector<32x32xf32> to vector<32x8xf32>
    %cst_51 = arith.constant dense<0.000000e+00> : vector<10x32xf32>
    %120 = tpu.matmul %118, %119, %cst_51 {dimension_numbers = #tpu.dot_dimension_numbers<[1], [1], [0], [0], [0, 0, 1, 0], [], []>} : vector<10x8xf32>, vector<32x8xf32>, vector<10x32xf32> -> vector<10x32xf32>
    %121 = arith.addf %100, %120 : vector<10x32xf32>
    %122 = arith.addf %4, %121 : vector<10x32xf32>
    %c0_52 = arith.constant 0 : index
    %c0_53 = arith.constant 0 : index
    %c0_54 = arith.constant 0 : index
    %123 = vector.load %arg11[%c0_52, %c0_53, %c0_54] : memref<2x1x32xf32, #tpu.memory_space<vmem>>, vector<1x1x32xf32>
    %124 = vector.shape_cast %123 : vector<1x1x32xf32> to vector<1x32xf32>
    %125 = vector.broadcast %124 : vector<1x32xf32> to vector<10x32xf32>
    %126 = arith.addf %122, %125 : vector<10x32xf32>
    %c0_55 = arith.constant 0 : index
    %c0_56 = arith.constant 0 : index
    %c0_57 = arith.constant 0 : index
    %127 = vector.load %arg12[%c0_55, %c0_56, %c0_57] : memref<2x1x32xf32, #tpu.memory_space<vmem>>, vector<1x1x32xf32>
    %128 = vector.shape_cast %127 : vector<1x1x32xf32> to vector<1x32xf32>
    %c0_58 = arith.constant 0 : index
    %c0_59 = arith.constant 0 : index
    %c0_60 = arith.constant 0 : index
    %129 = vector.load %arg13[%c0_58, %c0_59, %c0_60] : memref<2x1x32xf32, #tpu.memory_space<vmem>>, vector<1x1x32xf32>
    %130 = vector.shape_cast %129 : vector<1x1x32xf32> to vector<1x32xf32>
    %cst_61 = arith.constant dense<0.000000e+00> : vector<10xf32>
    %131 = vector.multi_reduction <add>, %126, %cst_61 [1] : vector<10x32xf32> to vector<10xf32>
    %132 = vector.shape_cast %131 : vector<10xf32> to vector<10x1xf32>
    %cst_62 = arith.constant 3.200000e+01 : f32
    %133 = vector.broadcast %cst_62 : f32 to vector<10x1xf32>
    %134 = arith.divf %132, %133 : vector<10x1xf32>
    %135 = vector.broadcast %134 : vector<10x1xf32> to vector<10x32xf32>
    %136 = arith.subf %126, %135 : vector<10x32xf32>
    %137 = arith.mulf %136, %136 : vector<10x32xf32>
    %cst_63 = arith.constant dense<0.000000e+00> : vector<10xf32>
    %138 = vector.multi_reduction <add>, %137, %cst_63 [1] : vector<10x32xf32> to vector<10xf32>
    %139 = vector.shape_cast %138 : vector<10xf32> to vector<10x1xf32>
    %cst_64 = arith.constant 3.200000e+01 : f32
    %140 = vector.broadcast %cst_64 : f32 to vector<10x1xf32>
    %141 = arith.divf %139, %140 : vector<10x1xf32>
    %cst_65 = arith.constant 9.99999974E-6 : f32
    %142 = vector.broadcast %cst_65 : f32 to vector<10x1xf32>
    %143 = arith.addf %141, %142 : vector<10x1xf32>
    %144 = math.rsqrt %143 : vector<10x1xf32>
    %145 = vector.broadcast %144 : vector<10x1xf32> to vector<10x32xf32>
    %146 = arith.mulf %136, %145 : vector<10x32xf32>
    %147 = vector.broadcast %128 : vector<1x32xf32> to vector<10x32xf32>
    %148 = arith.mulf %146, %147 : vector<10x32xf32>
    %149 = vector.broadcast %130 : vector<1x32xf32> to vector<10x32xf32>
    %150 = arith.addf %148, %149 : vector<10x32xf32>
    %c0_66 = arith.constant 0 : index
    %c0_67 = arith.constant 0 : index
    %c0_68 = arith.constant 0 : index
    %151 = vector.load %arg14[%c0_66, %c0_67, %c0_68] : memref<2x64x32xf32, #tpu.memory_space<vmem>>, vector<1x64x32xf32>
    %152 = vector.shape_cast %151 : vector<1x64x32xf32> to vector<64x32xf32>
    %c0_69 = arith.constant 0 : index
    %c0_70 = arith.constant 0 : index
    %c0_71 = arith.constant 0 : index
    %153 = vector.load %arg15[%c0_69, %c0_70, %c0_71] : memref<2x1x64xf32, #tpu.memory_space<vmem>>, vector<1x1x64xf32>
    %154 = vector.shape_cast %153 : vector<1x1x64xf32> to vector<1x64xf32>
    %cst_72 = arith.constant dense<0.000000e+00> : vector<10x64xf32>
    %155 = tpu.matmul %150, %152, %cst_72 {dimension_numbers = #tpu.dot_dimension_numbers<[1], [1], [0], [0], [0, 0, 1, 0], [], []>} : vector<10x32xf32>, vector<64x32xf32>, vector<10x64xf32> -> vector<10x64xf32>
    %156 = vector.broadcast %154 : vector<1x64xf32> to vector<10x64xf32>
    %157 = arith.addf %155, %156 : vector<10x64xf32>
    %cst_73 = arith.constant 5.000000e-01 : f32
    %158 = vector.broadcast %cst_73 : f32 to vector<10x64xf32>
    %159 = arith.mulf %158, %157 : vector<10x64xf32>
    %cst_74 = arith.constant 0.707106769 : f32
    %160 = vector.broadcast %cst_74 : f32 to vector<10x64xf32>
    %161 = arith.mulf %157, %160 : vector<10x64xf32>
    %162 = math.absf %161 : vector<10x64xf32>
    %cst_75 = arith.constant 0.327591091 : f32
    %163 = vector.broadcast %cst_75 : f32 to vector<10x64xf32>
    %164 = arith.mulf %163, %162 : vector<10x64xf32>
    %cst_76 = arith.constant 1.000000e+00 : f32
    %165 = vector.broadcast %cst_76 : f32 to vector<10x64xf32>
    %166 = arith.addf %165, %164 : vector<10x64xf32>
    %cst_77 = arith.constant 1.000000e+00 : f32
    %167 = vector.broadcast %cst_77 : f32 to vector<10x64xf32>
    %168 = arith.divf %167, %166 : vector<10x64xf32>
    %cst_78 = arith.constant 1.06140542 : f32
    %169 = vector.broadcast %cst_78 : f32 to vector<10x64xf32>
    %170 = arith.mulf %169, %168 : vector<10x64xf32>
    %cst_79 = arith.constant -1.45315206 : f32
    %171 = vector.broadcast %cst_79 : f32 to vector<10x64xf32>
    %172 = arith.addf %170, %171 : vector<10x64xf32>
    %173 = arith.mulf %172, %168 : vector<10x64xf32>
    %cst_80 = arith.constant 1.42141378 : f32
    %174 = vector.broadcast %cst_80 : f32 to vector<10x64xf32>
    %175 = arith.addf %173, %174 : vector<10x64xf32>
    %176 = arith.mulf %175, %168 : vector<10x64xf32>
    %cst_81 = arith.constant -0.284496725 : f32
    %177 = vector.broadcast %cst_81 : f32 to vector<10x64xf32>
    %178 = arith.addf %176, %177 : vector<10x64xf32>
    %179 = arith.mulf %178, %168 : vector<10x64xf32>
    %cst_82 = arith.constant 0.254829586 : f32
    %180 = vector.broadcast %cst_82 : f32 to vector<10x64xf32>
    %181 = arith.addf %179, %180 : vector<10x64xf32>
    %182 = arith.mulf %181, %168 : vector<10x64xf32>
    %cst_83 = arith.constant 0.000000e+00 : f32
    %183 = vector.broadcast %cst_83 : f32 to vector<10x64xf32>
    %184 = arith.subf %183, %162 : vector<10x64xf32>
    %185 = arith.mulf %184, %162 : vector<10x64xf32>
    %186 = math.exp %185 : vector<10x64xf32>
    %187 = arith.mulf %182, %186 : vector<10x64xf32>
    %cst_84 = arith.constant 1.000000e+00 : f32
    %188 = vector.broadcast %cst_84 : f32 to vector<10x64xf32>
    %189 = arith.subf %188, %187 : vector<10x64xf32>
    %cst_85 = arith.constant 0.000000e+00 : f32
    %190 = vector.broadcast %cst_85 : f32 to vector<10x64xf32>
    %191 = arith.cmpf olt, %161, %190 : vector<10x64xf32>
    %cst_86 = arith.constant 0.000000e+00 : f32
    %192 = vector.broadcast %cst_86 : f32 to vector<10x64xf32>
    %193 = arith.subf %192, %189 : vector<10x64xf32>
    %194 = arith.select %191, %193, %189 : vector<10x64xi1>, vector<10x64xf32>
    %cst_87 = arith.constant 1.000000e+00 : f32
    %195 = vector.broadcast %cst_87 : f32 to vector<10x64xf32>
    %196 = arith.addf %195, %194 : vector<10x64xf32>
    %197 = arith.mulf %159, %196 : vector<10x64xf32>
    %c0_88 = arith.constant 0 : index
    %c0_89 = arith.constant 0 : index
    %c0_90 = arith.constant 0 : index
    %198 = vector.load %arg16[%c0_88, %c0_89, %c0_90] : memref<2x32x64xf32, #tpu.memory_space<vmem>>, vector<1x32x64xf32>
    %199 = vector.shape_cast %198 : vector<1x32x64xf32> to vector<32x64xf32>
    %c0_91 = arith.constant 0 : index
    %c0_92 = arith.constant 0 : index
    %c0_93 = arith.constant 0 : index
    %200 = vector.load %arg17[%c0_91, %c0_92, %c0_93] : memref<2x1x32xf32, #tpu.memory_space<vmem>>, vector<1x1x32xf32>
    %201 = vector.shape_cast %200 : vector<1x1x32xf32> to vector<1x32xf32>
    %cst_94 = arith.constant dense<0.000000e+00> : vector<10x32xf32>
    %202 = tpu.matmul %197, %199, %cst_94 {dimension_numbers = #tpu.dot_dimension_numbers<[1], [1], [0], [0], [0, 0, 1, 0], [], []>} : vector<10x64xf32>, vector<32x64xf32>, vector<10x32xf32> -> vector<10x32xf32>
    %203 = vector.broadcast %201 : vector<1x32xf32> to vector<10x32xf32>
    %204 = arith.addf %202, %203 : vector<10x32xf32>
    %205 = arith.addf %126, %204 : vector<10x32xf32>
    %c1 = arith.constant 1 : index
    %c0_95 = arith.constant 0 : index
    %c0_96 = arith.constant 0 : index
    %206 = vector.load %arg6[%c1, %c0_95, %c0_96] : memref<2x1x32xf32, #tpu.memory_space<vmem>>, vector<1x1x32xf32>
    %207 = vector.shape_cast %206 : vector<1x1x32xf32> to vector<1x32xf32>
    %c1_97 = arith.constant 1 : index
    %c0_98 = arith.constant 0 : index
    %c0_99 = arith.constant 0 : index
    %208 = vector.load %arg7[%c1_97, %c0_98, %c0_99] : memref<2x1x32xf32, #tpu.memory_space<vmem>>, vector<1x1x32xf32>
    %209 = vector.shape_cast %208 : vector<1x1x32xf32> to vector<1x32xf32>
    %cst_100 = arith.constant dense<0.000000e+00> : vector<10xf32>
    %210 = vector.multi_reduction <add>, %205, %cst_100 [1] : vector<10x32xf32> to vector<10xf32>
    %211 = vector.shape_cast %210 : vector<10xf32> to vector<10x1xf32>
    %cst_101 = arith.constant 3.200000e+01 : f32
    %212 = vector.broadcast %cst_101 : f32 to vector<10x1xf32>
    %213 = arith.divf %211, %212 : vector<10x1xf32>
    %214 = vector.broadcast %213 : vector<10x1xf32> to vector<10x32xf32>
    %215 = arith.subf %205, %214 : vector<10x32xf32>
    %216 = arith.mulf %215, %215 : vector<10x32xf32>
    %cst_102 = arith.constant dense<0.000000e+00> : vector<10xf32>
    %217 = vector.multi_reduction <add>, %216, %cst_102 [1] : vector<10x32xf32> to vector<10xf32>
    %218 = vector.shape_cast %217 : vector<10xf32> to vector<10x1xf32>
    %cst_103 = arith.constant 3.200000e+01 : f32
    %219 = vector.broadcast %cst_103 : f32 to vector<10x1xf32>
    %220 = arith.divf %218, %219 : vector<10x1xf32>
    %cst_104 = arith.constant 9.99999974E-6 : f32
    %221 = vector.broadcast %cst_104 : f32 to vector<10x1xf32>
    %222 = arith.addf %220, %221 : vector<10x1xf32>
    %223 = math.rsqrt %222 : vector<10x1xf32>
    %224 = vector.broadcast %223 : vector<10x1xf32> to vector<10x32xf32>
    %225 = arith.mulf %215, %224 : vector<10x32xf32>
    %226 = vector.broadcast %207 : vector<1x32xf32> to vector<10x32xf32>
    %227 = arith.mulf %225, %226 : vector<10x32xf32>
    %228 = vector.broadcast %209 : vector<1x32xf32> to vector<10x32xf32>
    %229 = arith.addf %227, %228 : vector<10x32xf32>
    %c1_105 = arith.constant 1 : index
    %c0_106 = arith.constant 0 : index
    %c0_107 = arith.constant 0 : index
    %230 = vector.load %arg8[%c1_105, %c0_106, %c0_107] : memref<2x96x32xf32, #tpu.memory_space<vmem>>, vector<1x96x32xf32>
    %231 = vector.shape_cast %230 : vector<1x96x32xf32> to vector<96x32xf32>
    %c1_108 = arith.constant 1 : index
    %c0_109 = arith.constant 0 : index
    %c0_110 = arith.constant 0 : index
    %232 = vector.load %arg9[%c1_108, %c0_109, %c0_110] : memref<2x1x96xf32, #tpu.memory_space<vmem>>, vector<1x1x96xf32>
    %233 = vector.shape_cast %232 : vector<1x1x96xf32> to vector<1x96xf32>
    %cst_111 = arith.constant dense<0.000000e+00> : vector<10x96xf32>
    %234 = tpu.matmul %229, %231, %cst_111 {dimension_numbers = #tpu.dot_dimension_numbers<[1], [1], [0], [0], [0, 0, 1, 0], [], []>} : vector<10x32xf32>, vector<96x32xf32>, vector<10x96xf32> -> vector<10x96xf32>
    %235 = vector.broadcast %233 : vector<1x96xf32> to vector<10x96xf32>
    %236 = arith.addf %234, %235 : vector<10x96xf32>
    %c1_112 = arith.constant 1 : index
    %c0_113 = arith.constant 0 : index
    %c0_114 = arith.constant 0 : index
    %237 = vector.load %arg10[%c1_112, %c0_113, %c0_114] : memref<2x32x32xf32, #tpu.memory_space<vmem>>, vector<1x32x32xf32>
    %238 = vector.shape_cast %237 : vector<1x32x32xf32> to vector<32x32xf32>
    %239 = vector.extract_strided_slice %236 {offsets = [0, 0], sizes = [10, 8], strides = [1, 1]} : vector<10x96xf32> to vector<10x8xf32>
    %240 = vector.extract_strided_slice %236 {offsets = [0, 32], sizes = [10, 8], strides = [1, 1]} : vector<10x96xf32> to vector<10x8xf32>
    %241 = vector.extract_strided_slice %236 {offsets = [0, 64], sizes = [10, 8], strides = [1, 1]} : vector<10x96xf32> to vector<10x8xf32>
    %cst_115 = arith.constant dense<0.000000e+00> : vector<10x10xf32>
    %242 = tpu.matmul %239, %240, %cst_115 {dimension_numbers = #tpu.dot_dimension_numbers<[1], [1], [0], [0], [0, 0, 1, 0], [], []>} : vector<10x8xf32>, vector<10x8xf32>, vector<10x10xf32> -> vector<10x10xf32>
    %cst_116 = arith.constant 0.353553385 : f32
    %243 = vector.broadcast %cst_116 : f32 to vector<10x10xf32>
    %244 = arith.mulf %242, %243 : vector<10x10xf32>
    %245 = arith.addf %244, %5 : vector<10x10xf32>
    %cst_117 = arith.constant dense<0xFF800000> : vector<10xf32>
    %246 = vector.multi_reduction <maximumf>, %245, %cst_117 [1] : vector<10x10xf32> to vector<10xf32>
    %247 = vector.shape_cast %246 : vector<10xf32> to vector<10x1xf32>
    %248 = vector.broadcast %247 : vector<10x1xf32> to vector<10x10xf32>
    %249 = arith.subf %245, %248 : vector<10x10xf32>
    %250 = math.exp %249 : vector<10x10xf32>
    %cst_118 = arith.constant dense<0.000000e+00> : vector<10xf32>
    %251 = vector.multi_reduction <add>, %250, %cst_118 [1] : vector<10x10xf32> to vector<10xf32>
    %252 = vector.shape_cast %251 : vector<10xf32> to vector<10x1xf32>
    %253 = tpu.reciprocal %252 {approx = true} : vector<10x1xf32> -> vector<10x1xf32>
    %254 = vector.broadcast %253 : vector<10x1xf32> to vector<10x10xf32>
    %255 = arith.mulf %250, %254 : vector<10x10xf32>
    %cst_119 = arith.constant dense<0.000000e+00> : vector<10x8xf32>
    %256 = tpu.matmul %255, %241, %cst_119 {dimension_numbers = #tpu.dot_dimension_numbers<[1], [0], [0], [1], [0, 0, 1, 1], [], []>} : vector<10x10xf32>, vector<10x8xf32>, vector<10x8xf32> -> vector<10x8xf32>
    %257 = vector.extract_strided_slice %238 {offsets = [0, 0], sizes = [32, 8], strides = [1, 1]} : vector<32x32xf32> to vector<32x8xf32>
    %cst_120 = arith.constant dense<0.000000e+00> : vector<10x32xf32>
    %258 = tpu.matmul %256, %257, %cst_120 {dimension_numbers = #tpu.dot_dimension_numbers<[1], [1], [0], [0], [0, 0, 1, 0], [], []>} : vector<10x8xf32>, vector<32x8xf32>, vector<10x32xf32> -> vector<10x32xf32>
    %259 = vector.extract_strided_slice %236 {offsets = [0, 8], sizes = [10, 8], strides = [1, 1]} : vector<10x96xf32> to vector<10x8xf32>
    %260 = vector.extract_strided_slice %236 {offsets = [0, 40], sizes = [10, 8], strides = [1, 1]} : vector<10x96xf32> to vector<10x8xf32>
    %261 = vector.extract_strided_slice %236 {offsets = [0, 72], sizes = [10, 8], strides = [1, 1]} : vector<10x96xf32> to vector<10x8xf32>
    %cst_121 = arith.constant dense<0.000000e+00> : vector<10x10xf32>
    %262 = tpu.matmul %259, %260, %cst_121 {dimension_numbers = #tpu.dot_dimension_numbers<[1], [1], [0], [0], [0, 0, 1, 0], [], []>} : vector<10x8xf32>, vector<10x8xf32>, vector<10x10xf32> -> vector<10x10xf32>
    %cst_122 = arith.constant 0.353553385 : f32
    %263 = vector.broadcast %cst_122 : f32 to vector<10x10xf32>
    %264 = arith.mulf %262, %263 : vector<10x10xf32>
    %265 = arith.addf %264, %5 : vector<10x10xf32>
    %cst_123 = arith.constant dense<0xFF800000> : vector<10xf32>
    %266 = vector.multi_reduction <maximumf>, %265, %cst_123 [1] : vector<10x10xf32> to vector<10xf32>
    %267 = vector.shape_cast %266 : vector<10xf32> to vector<10x1xf32>
    %268 = vector.broadcast %267 : vector<10x1xf32> to vector<10x10xf32>
    %269 = arith.subf %265, %268 : vector<10x10xf32>
    %270 = math.exp %269 : vector<10x10xf32>
    %cst_124 = arith.constant dense<0.000000e+00> : vector<10xf32>
    %271 = vector.multi_reduction <add>, %270, %cst_124 [1] : vector<10x10xf32> to vector<10xf32>
    %272 = vector.shape_cast %271 : vector<10xf32> to vector<10x1xf32>
    %273 = tpu.reciprocal %272 {approx = true} : vector<10x1xf32> -> vector<10x1xf32>
    %274 = vector.broadcast %273 : vector<10x1xf32> to vector<10x10xf32>
    %275 = arith.mulf %270, %274 : vector<10x10xf32>
    %cst_125 = arith.constant dense<0.000000e+00> : vector<10x8xf32>
    %276 = tpu.matmul %275, %261, %cst_125 {dimension_numbers = #tpu.dot_dimension_numbers<[1], [0], [0], [1], [0, 0, 1, 1], [], []>} : vector<10x10xf32>, vector<10x8xf32>, vector<10x8xf32> -> vector<10x8xf32>
    %277 = vector.extract_strided_slice %238 {offsets = [0, 8], sizes = [32, 8], strides = [1, 1]} : vector<32x32xf32> to vector<32x8xf32>
    %cst_126 = arith.constant dense<0.000000e+00> : vector<10x32xf32>
    %278 = tpu.matmul %276, %277, %cst_126 {dimension_numbers = #tpu.dot_dimension_numbers<[1], [1], [0], [0], [0, 0, 1, 0], [], []>} : vector<10x8xf32>, vector<32x8xf32>, vector<10x32xf32> -> vector<10x32xf32>
    %279 = arith.addf %258, %278 : vector<10x32xf32>
    %280 = vector.extract_strided_slice %236 {offsets = [0, 16], sizes = [10, 8], strides = [1, 1]} : vector<10x96xf32> to vector<10x8xf32>
    %281 = vector.extract_strided_slice %236 {offsets = [0, 48], sizes = [10, 8], strides = [1, 1]} : vector<10x96xf32> to vector<10x8xf32>
    %282 = vector.extract_strided_slice %236 {offsets = [0, 80], sizes = [10, 8], strides = [1, 1]} : vector<10x96xf32> to vector<10x8xf32>
    %cst_127 = arith.constant dense<0.000000e+00> : vector<10x10xf32>
    %283 = tpu.matmul %280, %281, %cst_127 {dimension_numbers = #tpu.dot_dimension_numbers<[1], [1], [0], [0], [0, 0, 1, 0], [], []>} : vector<10x8xf32>, vector<10x8xf32>, vector<10x10xf32> -> vector<10x10xf32>
    %cst_128 = arith.constant 0.353553385 : f32
    %284 = vector.broadcast %cst_128 : f32 to vector<10x10xf32>
    %285 = arith.mulf %283, %284 : vector<10x10xf32>
    %286 = arith.addf %285, %5 : vector<10x10xf32>
    %cst_129 = arith.constant dense<0xFF800000> : vector<10xf32>
    %287 = vector.multi_reduction <maximumf>, %286, %cst_129 [1] : vector<10x10xf32> to vector<10xf32>
    %288 = vector.shape_cast %287 : vector<10xf32> to vector<10x1xf32>
    %289 = vector.broadcast %288 : vector<10x1xf32> to vector<10x10xf32>
    %290 = arith.subf %286, %289 : vector<10x10xf32>
    %291 = math.exp %290 : vector<10x10xf32>
    %cst_130 = arith.constant dense<0.000000e+00> : vector<10xf32>
    %292 = vector.multi_reduction <add>, %291, %cst_130 [1] : vector<10x10xf32> to vector<10xf32>
    %293 = vector.shape_cast %292 : vector<10xf32> to vector<10x1xf32>
    %294 = tpu.reciprocal %293 {approx = true} : vector<10x1xf32> -> vector<10x1xf32>
    %295 = vector.broadcast %294 : vector<10x1xf32> to vector<10x10xf32>
    %296 = arith.mulf %291, %295 : vector<10x10xf32>
    %cst_131 = arith.constant dense<0.000000e+00> : vector<10x8xf32>
    %297 = tpu.matmul %296, %282, %cst_131 {dimension_numbers = #tpu.dot_dimension_numbers<[1], [0], [0], [1], [0, 0, 1, 1], [], []>} : vector<10x10xf32>, vector<10x8xf32>, vector<10x8xf32> -> vector<10x8xf32>
    %298 = vector.extract_strided_slice %238 {offsets = [0, 16], sizes = [32, 8], strides = [1, 1]} : vector<32x32xf32> to vector<32x8xf32>
    %cst_132 = arith.constant dense<0.000000e+00> : vector<10x32xf32>
    %299 = tpu.matmul %297, %298, %cst_132 {dimension_numbers = #tpu.dot_dimension_numbers<[1], [1], [0], [0], [0, 0, 1, 0], [], []>} : vector<10x8xf32>, vector<32x8xf32>, vector<10x32xf32> -> vector<10x32xf32>
    %300 = arith.addf %279, %299 : vector<10x32xf32>
    %301 = vector.extract_strided_slice %236 {offsets = [0, 24], sizes = [10, 8], strides = [1, 1]} : vector<10x96xf32> to vector<10x8xf32>
    %302 = vector.extract_strided_slice %236 {offsets = [0, 56], sizes = [10, 8], strides = [1, 1]} : vector<10x96xf32> to vector<10x8xf32>
    %303 = vector.extract_strided_slice %236 {offsets = [0, 88], sizes = [10, 8], strides = [1, 1]} : vector<10x96xf32> to vector<10x8xf32>
    %cst_133 = arith.constant dense<0.000000e+00> : vector<10x10xf32>
    %304 = tpu.matmul %301, %302, %cst_133 {dimension_numbers = #tpu.dot_dimension_numbers<[1], [1], [0], [0], [0, 0, 1, 0], [], []>} : vector<10x8xf32>, vector<10x8xf32>, vector<10x10xf32> -> vector<10x10xf32>
    %cst_134 = arith.constant 0.353553385 : f32
    %305 = vector.broadcast %cst_134 : f32 to vector<10x10xf32>
    %306 = arith.mulf %304, %305 : vector<10x10xf32>
    %307 = arith.addf %306, %5 : vector<10x10xf32>
    %cst_135 = arith.constant dense<0xFF800000> : vector<10xf32>
    %308 = vector.multi_reduction <maximumf>, %307, %cst_135 [1] : vector<10x10xf32> to vector<10xf32>
    %309 = vector.shape_cast %308 : vector<10xf32> to vector<10x1xf32>
    %310 = vector.broadcast %309 : vector<10x1xf32> to vector<10x10xf32>
    %311 = arith.subf %307, %310 : vector<10x10xf32>
    %312 = math.exp %311 : vector<10x10xf32>
    %cst_136 = arith.constant dense<0.000000e+00> : vector<10xf32>
    %313 = vector.multi_reduction <add>, %312, %cst_136 [1] : vector<10x10xf32> to vector<10xf32>
    %314 = vector.shape_cast %313 : vector<10xf32> to vector<10x1xf32>
    %315 = tpu.reciprocal %314 {approx = true} : vector<10x1xf32> -> vector<10x1xf32>
    %316 = vector.broadcast %315 : vector<10x1xf32> to vector<10x10xf32>
    %317 = arith.mulf %312, %316 : vector<10x10xf32>
    %cst_137 = arith.constant dense<0.000000e+00> : vector<10x8xf32>
    %318 = tpu.matmul %317, %303, %cst_137 {dimension_numbers = #tpu.dot_dimension_numbers<[1], [0], [0], [1], [0, 0, 1, 1], [], []>} : vector<10x10xf32>, vector<10x8xf32>, vector<10x8xf32> -> vector<10x8xf32>
    %319 = vector.extract_strided_slice %238 {offsets = [0, 24], sizes = [32, 8], strides = [1, 1]} : vector<32x32xf32> to vector<32x8xf32>
    %cst_138 = arith.constant dense<0.000000e+00> : vector<10x32xf32>
    %320 = tpu.matmul %318, %319, %cst_138 {dimension_numbers = #tpu.dot_dimension_numbers<[1], [1], [0], [0], [0, 0, 1, 0], [], []>} : vector<10x8xf32>, vector<32x8xf32>, vector<10x32xf32> -> vector<10x32xf32>
    %321 = arith.addf %300, %320 : vector<10x32xf32>
    %322 = arith.addf %205, %321 : vector<10x32xf32>
    %c1_139 = arith.constant 1 : index
    %c0_140 = arith.constant 0 : index
    %c0_141 = arith.constant 0 : index
    %323 = vector.load %arg11[%c1_139, %c0_140, %c0_141] : memref<2x1x32xf32, #tpu.memory_space<vmem>>, vector<1x1x32xf32>
    %324 = vector.shape_cast %323 : vector<1x1x32xf32> to vector<1x32xf32>
    %325 = vector.broadcast %324 : vector<1x32xf32> to vector<10x32xf32>
    %326 = arith.addf %322, %325 : vector<10x32xf32>
    %c1_142 = arith.constant 1 : index
    %c0_143 = arith.constant 0 : index
    %c0_144 = arith.constant 0 : index
    %327 = vector.load %arg12[%c1_142, %c0_143, %c0_144] : memref<2x1x32xf32, #tpu.memory_space<vmem>>, vector<1x1x32xf32>
    %328 = vector.shape_cast %327 : vector<1x1x32xf32> to vector<1x32xf32>
    %c1_145 = arith.constant 1 : index
    %c0_146 = arith.constant 0 : index
    %c0_147 = arith.constant 0 : index
    %329 = vector.load %arg13[%c1_145, %c0_146, %c0_147] : memref<2x1x32xf32, #tpu.memory_space<vmem>>, vector<1x1x32xf32>
    %330 = vector.shape_cast %329 : vector<1x1x32xf32> to vector<1x32xf32>
    %cst_148 = arith.constant dense<0.000000e+00> : vector<10xf32>
    %331 = vector.multi_reduction <add>, %326, %cst_148 [1] : vector<10x32xf32> to vector<10xf32>
    %332 = vector.shape_cast %331 : vector<10xf32> to vector<10x1xf32>
    %cst_149 = arith.constant 3.200000e+01 : f32
    %333 = vector.broadcast %cst_149 : f32 to vector<10x1xf32>
    %334 = arith.divf %332, %333 : vector<10x1xf32>
    %335 = vector.broadcast %334 : vector<10x1xf32> to vector<10x32xf32>
    %336 = arith.subf %326, %335 : vector<10x32xf32>
    %337 = arith.mulf %336, %336 : vector<10x32xf32>
    %cst_150 = arith.constant dense<0.000000e+00> : vector<10xf32>
    %338 = vector.multi_reduction <add>, %337, %cst_150 [1] : vector<10x32xf32> to vector<10xf32>
    %339 = vector.shape_cast %338 : vector<10xf32> to vector<10x1xf32>
    %cst_151 = arith.constant 3.200000e+01 : f32
    %340 = vector.broadcast %cst_151 : f32 to vector<10x1xf32>
    %341 = arith.divf %339, %340 : vector<10x1xf32>
    %cst_152 = arith.constant 9.99999974E-6 : f32
    %342 = vector.broadcast %cst_152 : f32 to vector<10x1xf32>
    %343 = arith.addf %341, %342 : vector<10x1xf32>
    %344 = math.rsqrt %343 : vector<10x1xf32>
    %345 = vector.broadcast %344 : vector<10x1xf32> to vector<10x32xf32>
    %346 = arith.mulf %336, %345 : vector<10x32xf32>
    %347 = vector.broadcast %328 : vector<1x32xf32> to vector<10x32xf32>
    %348 = arith.mulf %346, %347 : vector<10x32xf32>
    %349 = vector.broadcast %330 : vector<1x32xf32> to vector<10x32xf32>
    %350 = arith.addf %348, %349 : vector<10x32xf32>
    %c1_153 = arith.constant 1 : index
    %c0_154 = arith.constant 0 : index
    %c0_155 = arith.constant 0 : index
    %351 = vector.load %arg14[%c1_153, %c0_154, %c0_155] : memref<2x64x32xf32, #tpu.memory_space<vmem>>, vector<1x64x32xf32>
    %352 = vector.shape_cast %351 : vector<1x64x32xf32> to vector<64x32xf32>
    %c1_156 = arith.constant 1 : index
    %c0_157 = arith.constant 0 : index
    %c0_158 = arith.constant 0 : index
    %353 = vector.load %arg15[%c1_156, %c0_157, %c0_158] : memref<2x1x64xf32, #tpu.memory_space<vmem>>, vector<1x1x64xf32>
    %354 = vector.shape_cast %353 : vector<1x1x64xf32> to vector<1x64xf32>
    %cst_159 = arith.constant dense<0.000000e+00> : vector<10x64xf32>
    %355 = tpu.matmul %350, %352, %cst_159 {dimension_numbers = #tpu.dot_dimension_numbers<[1], [1], [0], [0], [0, 0, 1, 0], [], []>} : vector<10x32xf32>, vector<64x32xf32>, vector<10x64xf32> -> vector<10x64xf32>
    %356 = vector.broadcast %354 : vector<1x64xf32> to vector<10x64xf32>
    %357 = arith.addf %355, %356 : vector<10x64xf32>
    %cst_160 = arith.constant 5.000000e-01 : f32
    %358 = vector.broadcast %cst_160 : f32 to vector<10x64xf32>
    %359 = arith.mulf %358, %357 : vector<10x64xf32>
    %cst_161 = arith.constant 0.707106769 : f32
    %360 = vector.broadcast %cst_161 : f32 to vector<10x64xf32>
    %361 = arith.mulf %357, %360 : vector<10x64xf32>
    %362 = math.absf %361 : vector<10x64xf32>
    %cst_162 = arith.constant 0.327591091 : f32
    %363 = vector.broadcast %cst_162 : f32 to vector<10x64xf32>
    %364 = arith.mulf %363, %362 : vector<10x64xf32>
    %cst_163 = arith.constant 1.000000e+00 : f32
    %365 = vector.broadcast %cst_163 : f32 to vector<10x64xf32>
    %366 = arith.addf %365, %364 : vector<10x64xf32>
    %cst_164 = arith.constant 1.000000e+00 : f32
    %367 = vector.broadcast %cst_164 : f32 to vector<10x64xf32>
    %368 = arith.divf %367, %366 : vector<10x64xf32>
    %cst_165 = arith.constant 1.06140542 : f32
    %369 = vector.broadcast %cst_165 : f32 to vector<10x64xf32>
    %370 = arith.mulf %369, %368 : vector<10x64xf32>
    %cst_166 = arith.constant -1.45315206 : f32
    %371 = vector.broadcast %cst_166 : f32 to vector<10x64xf32>
    %372 = arith.addf %370, %371 : vector<10x64xf32>
    %373 = arith.mulf %372, %368 : vector<10x64xf32>
    %cst_167 = arith.constant 1.42141378 : f32
    %374 = vector.broadcast %cst_167 : f32 to vector<10x64xf32>
    %375 = arith.addf %373, %374 : vector<10x64xf32>
    %376 = arith.mulf %375, %368 : vector<10x64xf32>
    %cst_168 = arith.constant -0.284496725 : f32
    %377 = vector.broadcast %cst_168 : f32 to vector<10x64xf32>
    %378 = arith.addf %376, %377 : vector<10x64xf32>
    %379 = arith.mulf %378, %368 : vector<10x64xf32>
    %cst_169 = arith.constant 0.254829586 : f32
    %380 = vector.broadcast %cst_169 : f32 to vector<10x64xf32>
    %381 = arith.addf %379, %380 : vector<10x64xf32>
    %382 = arith.mulf %381, %368 : vector<10x64xf32>
    %cst_170 = arith.constant 0.000000e+00 : f32
    %383 = vector.broadcast %cst_170 : f32 to vector<10x64xf32>
    %384 = arith.subf %383, %362 : vector<10x64xf32>
    %385 = arith.mulf %384, %362 : vector<10x64xf32>
    %386 = math.exp %385 : vector<10x64xf32>
    %387 = arith.mulf %382, %386 : vector<10x64xf32>
    %cst_171 = arith.constant 1.000000e+00 : f32
    %388 = vector.broadcast %cst_171 : f32 to vector<10x64xf32>
    %389 = arith.subf %388, %387 : vector<10x64xf32>
    %cst_172 = arith.constant 0.000000e+00 : f32
    %390 = vector.broadcast %cst_172 : f32 to vector<10x64xf32>
    %391 = arith.cmpf olt, %361, %390 : vector<10x64xf32>
    %cst_173 = arith.constant 0.000000e+00 : f32
    %392 = vector.broadcast %cst_173 : f32 to vector<10x64xf32>
    %393 = arith.subf %392, %389 : vector<10x64xf32>
    %394 = arith.select %391, %393, %389 : vector<10x64xi1>, vector<10x64xf32>
    %cst_174 = arith.constant 1.000000e+00 : f32
    %395 = vector.broadcast %cst_174 : f32 to vector<10x64xf32>
    %396 = arith.addf %395, %394 : vector<10x64xf32>
    %397 = arith.mulf %359, %396 : vector<10x64xf32>
    %c1_175 = arith.constant 1 : index
    %c0_176 = arith.constant 0 : index
    %c0_177 = arith.constant 0 : index
    %398 = vector.load %arg16[%c1_175, %c0_176, %c0_177] : memref<2x32x64xf32, #tpu.memory_space<vmem>>, vector<1x32x64xf32>
    %399 = vector.shape_cast %398 : vector<1x32x64xf32> to vector<32x64xf32>
    %c1_178 = arith.constant 1 : index
    %c0_179 = arith.constant 0 : index
    %c0_180 = arith.constant 0 : index
    %400 = vector.load %arg17[%c1_178, %c0_179, %c0_180] : memref<2x1x32xf32, #tpu.memory_space<vmem>>, vector<1x1x32xf32>
    %401 = vector.shape_cast %400 : vector<1x1x32xf32> to vector<1x32xf32>
    %cst_181 = arith.constant dense<0.000000e+00> : vector<10x32xf32>
    %402 = tpu.matmul %397, %399, %cst_181 {dimension_numbers = #tpu.dot_dimension_numbers<[1], [1], [0], [0], [0, 0, 1, 0], [], []>} : vector<10x64xf32>, vector<32x64xf32>, vector<10x32xf32> -> vector<10x32xf32>
    %403 = vector.broadcast %401 : vector<1x32xf32> to vector<10x32xf32>
    %404 = arith.addf %402, %403 : vector<10x32xf32>
    %405 = arith.addf %326, %404 : vector<10x32xf32>
    %c0_182 = arith.constant 0 : index
    %c0_183 = arith.constant 0 : index
    %406 = vector.load %arg5[%c0_182, %c0_183] : memref<2x10xf32, #tpu.memory_space<vmem>>, vector<2x10xf32>
    %cst_184 = arith.constant dense<0.000000e+00> : vector<2x32xf32>
    %407 = tpu.matmul %406, %405, %cst_184 {dimension_numbers = #tpu.dot_dimension_numbers<[1], [0], [0], [1], [0, 0, 1, 1], [], []>} : vector<2x10xf32>, vector<10x32xf32>, vector<2x32xf32> -> vector<2x32xf32>
    %c0_185 = arith.constant 0 : index
    %c0_186 = arith.constant 0 : index
    %408 = vector.load %arg18[%c0_185, %c0_186] : memref<1x32xf32, #tpu.memory_space<vmem>>, vector<1x32xf32>
    %c0_187 = arith.constant 0 : index
    %c0_188 = arith.constant 0 : index
    %409 = vector.load %arg19[%c0_187, %c0_188] : memref<1x32xf32, #tpu.memory_space<vmem>>, vector<1x32xf32>
    %cst_189 = arith.constant dense<0.000000e+00> : vector<2xf32>
    %410 = vector.multi_reduction <add>, %407, %cst_189 [1] : vector<2x32xf32> to vector<2xf32>
    %411 = vector.shape_cast %410 : vector<2xf32> to vector<2x1xf32>
    %cst_190 = arith.constant 3.200000e+01 : f32
    %412 = vector.broadcast %cst_190 : f32 to vector<2x1xf32>
    %413 = arith.divf %411, %412 : vector<2x1xf32>
    %414 = vector.broadcast %413 : vector<2x1xf32> to vector<2x32xf32>
    %415 = arith.subf %407, %414 : vector<2x32xf32>
    %416 = arith.mulf %415, %415 : vector<2x32xf32>
    %cst_191 = arith.constant dense<0.000000e+00> : vector<2xf32>
    %417 = vector.multi_reduction <add>, %416, %cst_191 [1] : vector<2x32xf32> to vector<2xf32>
    %418 = vector.shape_cast %417 : vector<2xf32> to vector<2x1xf32>
    %cst_192 = arith.constant 3.200000e+01 : f32
    %419 = vector.broadcast %cst_192 : f32 to vector<2x1xf32>
    %420 = arith.divf %418, %419 : vector<2x1xf32>
    %cst_193 = arith.constant 9.99999974E-6 : f32
    %421 = vector.broadcast %cst_193 : f32 to vector<2x1xf32>
    %422 = arith.addf %420, %421 : vector<2x1xf32>
    %423 = math.rsqrt %422 : vector<2x1xf32>
    %424 = vector.broadcast %423 : vector<2x1xf32> to vector<2x32xf32>
    %425 = arith.mulf %415, %424 : vector<2x32xf32>
    %426 = vector.broadcast %408 : vector<1x32xf32> to vector<2x32xf32>
    %427 = arith.mulf %425, %426 : vector<2x32xf32>
    %428 = vector.broadcast %409 : vector<1x32xf32> to vector<2x32xf32>
    %429 = arith.addf %427, %428 : vector<2x32xf32>
    %c0_194 = arith.constant 0 : index
    %c0_195 = arith.constant 0 : index
    %430 = vector.load %arg20[%c0_194, %c0_195] : memref<10x32xf32, #tpu.memory_space<vmem>>, vector<10x32xf32>
    %c0_196 = arith.constant 0 : index
    %c0_197 = arith.constant 0 : index
    %431 = vector.load %arg21[%c0_196, %c0_197] : memref<1x10xf32, #tpu.memory_space<vmem>>, vector<1x10xf32>
    %cst_198 = arith.constant dense<0.000000e+00> : vector<2x10xf32>
    %432 = tpu.matmul %429, %430, %cst_198 {dimension_numbers = #tpu.dot_dimension_numbers<[1], [1], [0], [0], [0, 0, 1, 0], [], []>} : vector<2x32xf32>, vector<10x32xf32>, vector<2x10xf32> -> vector<2x10xf32>
    %433 = vector.broadcast %431 : vector<1x10xf32> to vector<2x10xf32>
    %434 = arith.addf %432, %433 : vector<2x10xf32>
    %c0_199 = arith.constant 0 : index
    %c0_200 = arith.constant 0 : index
    %435 = vector.load %arg22[%c0_199, %c0_200] : memref<2x10xf32, #tpu.memory_space<vmem>>, vector<2x10xf32>
    tpu.vector_store %arg22[%c0_199, %c0_200], %434 {strides = array<i32>} : memref<2x10xf32, #tpu.memory_space<vmem>>, vector<2x10xf32>,
    return
  }
  func.func @transform_0(%arg0: i32) -> (i32, i32) {
    %c0_i32 = arith.constant 0 : i32
    %c0_i32_0 = arith.constant 0 : i32
    %c0_i32_1 = arith.constant 0 : i32
    return %c0_i32, %c0_i32_0 : i32, i32
  }
  func.func @transform_1(%arg0: i32) -> (i32, i32) {
    %c0_i32 = arith.constant 0 : i32
    %c0_i32_0 = arith.constant 0 : i32
    %c0_i32_1 = arith.constant 0 : i32
    return %c0_i32, %c0_i32_0 : i32, i32
  }
  func.func @transform_2(%arg0: i32) -> (i32, i32) {
    %c0_i32 = arith.constant 0 : i32
    %c0_i32_0 = arith.constant 0 : i32
    %c0_i32_1 = arith.constant 0 : i32
    return %c0_i32, %c0_i32_0 : i32, i32
  }
  func.func @transform_3(%arg0: i32) -> (i32, i32) {
    %c0_i32 = arith.constant 0 : i32
    %c0_i32_0 = arith.constant 0 : i32
    %c0_i32_1 = arith.constant 0 : i32
    return %c0_i32, %c0_i32_0 : i32, i32
  }
  func.func @transform_4(%arg0: i32) -> (i32, i32) {
    %c0_i32 = arith.constant 0 : i32
    %c0_i32_0 = arith.constant 0 : i32
    %c0_i32_1 = arith.constant 0 : i32
    return %c0_i32, %c0_i32_0 : i32, i32
  }
  func.func @transform_5(%arg0: i32) -> (i32, i32, i32) {
    %c0_i32 = arith.constant 0 : i32
    %c0_i32_0 = arith.constant 0 : i32
    %c0_i32_1 = arith.constant 0 : i32
    %c0_i32_2 = arith.constant 0 : i32
    return %c0_i32, %c0_i32_0, %c0_i32_1 : i32, i32, i32
  }
  func.func @transform_6(%arg0: i32) -> (i32, i32, i32) {
    %c0_i32 = arith.constant 0 : i32
    %c0_i32_0 = arith.constant 0 : i32
    %c0_i32_1 = arith.constant 0 : i32
    %c0_i32_2 = arith.constant 0 : i32
    return %c0_i32, %c0_i32_0, %c0_i32_1 : i32, i32, i32
  }
  func.func @transform_7(%arg0: i32) -> (i32, i32, i32) {
    %c0_i32 = arith.constant 0 : i32
    %c0_i32_0 = arith.constant 0 : i32
    %c0_i32_1 = arith.constant 0 : i32
    %c0_i32_2 = arith.constant 0 : i32
    return %c0_i32, %c0_i32_0, %c0_i32_1 : i32, i32, i32
  }
  func.func @transform_8(%arg0: i32) -> (i32, i32, i32) {
    %c0_i32 = arith.constant 0 : i32
    %c0_i32_0 = arith.constant 0 : i32
    %c0_i32_1 = arith.constant 0 : i32
    %c0_i32_2 = arith.constant 0 : i32
    return %c0_i32, %c0_i32_0, %c0_i32_1 : i32, i32, i32
  }
  func.func @transform_9(%arg0: i32) -> (i32, i32, i32) {
    %c0_i32 = arith.constant 0 : i32
    %c0_i32_0 = arith.constant 0 : i32
    %c0_i32_1 = arith.constant 0 : i32
    %c0_i32_2 = arith.constant 0 : i32
    return %c0_i32, %c0_i32_0, %c0_i32_1 : i32, i32, i32
  }
  func.func @transform_10(%arg0: i32) -> (i32, i32, i32) {
    %c0_i32 = arith.constant 0 : i32
    %c0_i32_0 = arith.constant 0 : i32
    %c0_i32_1 = arith.constant 0 : i32
    %c0_i32_2 = arith.constant 0 : i32
    return %c0_i32, %c0_i32_0, %c0_i32_1 : i32, i32, i32
  }
  func.func @transform_11(%arg0: i32) -> (i32, i32, i32) {
    %c0_i32 = arith.constant 0 : i32
    %c0_i32_0 = arith.constant 0 : i32
    %c0_i32_1 = arith.constant 0 : i32
    %c0_i32_2 = arith.constant 0 : i32
    return %c0_i32, %c0_i32_0, %c0_i32_1 : i32, i32, i32
  }
  func.func @transform_12(%arg0: i32) -> (i32, i32, i32) {
    %c0_i32 = arith.constant 0 : i32
    %c0_i32_0 = arith.constant 0 : i32
    %c0_i32_1 = arith.constant 0 : i32
    %c0_i32_2 = arith.constant 0 : i32
    return %c0_i32, %c0_i32_0, %c0_i32_1 : i32, i32, i32
  }
  func.func @transform_13(%arg0: i32) -> (i32, i32, i32) {
    %c0_i32 = arith.constant 0 : i32
    %c0_i32_0 = arith.constant 0 : i32
    %c0_i32_1 = arith.constant 0 : i32
    %c0_i32_2 = arith.constant 0 : i32
    return %c0_i32, %c0_i32_0, %c0_i32_1 : i32, i32, i32
  }
  func.func @transform_14(%arg0: i32) -> (i32, i32, i32) {
    %c0_i32 = arith.constant 0 : i32
    %c0_i32_0 = arith.constant 0 : i32
    %c0_i32_1 = arith.constant 0 : i32
    %c0_i32_2 = arith.constant 0 : i32
    return %c0_i32, %c0_i32_0, %c0_i32_1 : i32, i32, i32
  }
  func.func @transform_15(%arg0: i32) -> (i32, i32, i32) {
    %c0_i32 = arith.constant 0 : i32
    %c0_i32_0 = arith.constant 0 : i32
    %c0_i32_1 = arith.constant 0 : i32
    %c0_i32_2 = arith.constant 0 : i32
    return %c0_i32, %c0_i32_0, %c0_i32_1 : i32, i32, i32
  }
  func.func @transform_16(%arg0: i32) -> (i32, i32, i32) {
    %c0_i32 = arith.constant 0 : i32
    %c0_i32_0 = arith.constant 0 : i32
    %c0_i32_1 = arith.constant 0 : i32
    %c0_i32_2 = arith.constant 0 : i32
    return %c0_i32, %c0_i32_0, %c0_i32_1 : i32, i32, i32
  }
  func.func @transform_17(%arg0: i32) -> (i32, i32) {
    %c0_i32 = arith.constant 0 : i32
    %c0_i32_0 = arith.constant 0 : i32
    %c0_i32_1 = arith.constant 0 : i32
    return %c0_i32, %c0_i32_0 : i32, i32
  }
  func.func @transform_18(%arg0: i32) -> (i32, i32) {
    %c0_i32 = arith.constant 0 : i32
    %c0_i32_0 = arith.constant 0 : i32
    %c0_i32_1 = arith.constant 0 : i32
    return %c0_i32, %c0_i32_0 : i32, i32
  }
  func.func @transform_19(%arg0: i32) -> (i32, i32) {
    %c0_i32 = arith.constant 0 : i32
    %c0_i32_0 = arith.constant 0 : i32
    %c0_i32_1 = arith.constant 0 : i32
    return %c0_i32, %c0_i32_0 : i32, i32
  }
  func.func @transform_20(%arg0: i32) -> (i32, i32) {
    %c0_i32 = arith.constant 0 : i32
    %c0_i32_0 = arith.constant 0 : i32
    %c0_i32_1 = arith.constant 0 : i32
    return %c0_i32, %c0_i32_0 : i32, i32
  }
  func.func @transform_21(%arg0: i32) -> (i32, i32) {
    %c0_i32 = arith.constant 0 : i32
    %c0_i32_0 = arith.constant 0 : i32
    %c0_i32_1 = arith.constant 0 : i32
    return %c0_i32, %c0_i32_0 : i32, i32
  }
}

</mosaic_0001>

<bundles_post_ra>
// kernel: tile.9
= control target key start
LH: loop header
LB: loop body
LE: loop exit
PB: predicated region body
PF: predicated region fallthrough
CT: control target
= control target key end

     0   :  { %vm3_vm0 = vcmask 261120   ;;  %s34_s0 = inlined_call_operand.vmem [shape: f32[2,5,32], index: 0, kind: input, shape index: {}]   ;;  %s35_s1 = inlined_call_operand.vmem [shape: f32[10,32], index: 1, kind: output, shape index: {}]  }
   0x1   :  { %v2_v0 = vld [vmem:[%s34_s0] sm:$0x1f]   ;;  %v10_v1 = vld [vmem:[%s34_s0 + $0x8] sm:$0x1f]  }
   0x2   :  { %4 = vst.msk [vmem:[%s35_s1] sm:$0x1f] %vm3_vm0, %v2_v0   ;;  %11 = vst.msk [vmem:[%s35_s1 + $0x5] sm:$0x1f] %vm3_vm0, %v10_v1  }

// kernel: _lambda_.1
= control target key start
LH: loop header
LB: loop body
LE: loop exit
PB: predicated region body
PF: predicated region fallthrough
CT: control target
= control target key end

     0   :  { %s5709_s0 = inlined_call_operand.vmem [shape: f32[10,256], index: 0, kind: input, shape index: {}]   ;;  %s5710_s1 = inlined_call_operand.vmem [shape: f32[32,256], index: 1, kind: input, shape index: {}]   ;;  %s5711_s2 = inlined_call_operand.vmem [shape: f32[10,32], index: 2, kind: input, shape index: {}]   ;;  %s5712_s3 = inlined_call_operand.vmem [shape: f32[10,10], index: 3, kind: input, shape index: {}]   ;;  %s5713_s4 = inlined_call_operand.vmem [shape: f32[2,10], index: 4, kind: input, shape index: {}]   ;;  %s5714_s5 = inlined_call_operand.vmem [shape: f32[2,1,32], index: 5, kind: input, shape index: {}]   ;;  %s5715_s6 = inlined_call_operand.vmem [shape: f32[2,1,32], index: 6, kind: input, shape index: {}]   ;;  %s5716_s7 = inlined_call_operand.vmem [shape: f32[2,96,32], index: 7, kind: input, shape index: {}]   ;;  %s5717_s8 = inlined_call_operand.vmem [shape: f32[2,1,96], index: 8, kind: input, shape index: {}]   ;;  %s5718_s9 = inlined_call_operand.vmem [shape: f32[2,32,32], index: 9, kind: input, shape index: {}]   ;;  %s5719_s10 = inlined_call_operand.vmem [shape: f32[2,1,32], index: 10, kind: input, shape index: {}]   ;;  %s5720_s11 = inlined_call_operand.vmem [shape: f32[2,1,32], index: 11, kind: input, shape index: {}]   ;;  %s5721_s12 = inlined_call_operand.vmem [shape: f32[2,1,32], index: 12, kind: input, shape index: {}]   ;;  %s5722_s13 = inlined_call_operand.vmem [shape: f32[2,64,32], index: 13, kind: input, shape index: {}]   ;;  %s5723_s14 = inlined_call_operand.vmem [shape: f32[2,1,64], index: 14, kind: input, shape index: {}]   ;;  %s5724_s15 = inlined_call_operand.vmem [shape: f32[2,32,64], index: 15, kind: input, shape index: {}]   ;;  %s5725_s16 = inlined_call_operand.vmem [shape: f32[2,1,32], index: 16, kind: input, shape index: {}]   ;;  %s5726_s17 = inlined_call_operand.vmem [shape: f32[1,32], index: 17, kind: input, shape index: {}]   ;;  %s5727_s18 = inlined_call_operand.vmem [shape: f32[1,32], index: 18, kind: input, shape index: {}]   ;;  %s5728_s19 = inlined_call_operand.vmem [shape: f32[10,32], index: 19, kind: input, shape index: {}]   ;;  %s5729_s20 = inlined_call_operand.vmem [shape: f32[1,10], index: 20, kind: input, shape index: {}]   ;;  %s5730_s21 = inlined_call_operand.hbm [shape: f32[2,10], index: 21, kind: output, shape index: {}]  }
   0x1   :  { %5744 = sst [smem:[#allocation5_spill]] %s5709_s0 }
   0x2   :  { %5745 = sst [smem:[#allocation6_spill]] %s5710_s1 }
   0x3   :  { %5746 = sst [smem:[#allocation7_spill]] %s5711_s2 }
   0x4   :  { %5747 = sst [smem:[#allocation8_spill]] %s5712_s3 }
   0x5   :  { %5748 = sst [smem:[#allocation9_spill]] %s5713_s4 }
   0x6   :  { %5749 = sst [smem:[#allocation10_spill]] %s5714_s5 }
   0x7   :  { %s5750_s26 = sld [smem:[#allocation6_spill]] }
   0x8   :  { %s5751_s30 = sld [smem:[#allocation5_spill]] }
   0xd   :  { %v80_v0 = vld [vmem:[%s5750_s26 + $0x38] sm:$0xff]  ;;  %v79_v1 = vld [vmem:[%s5750_s26 + $0x30] sm:$0xff]  ;;  %v78_v2 = vld [vmem:[%s5750_s26 + $0x28] sm:$0xff] }
   0xe   :  { %107 = vmatprep.subr.mxu0 %v80_v0  ;;  %v70_v3 = vld [vmem:[%s5751_s30 + $0x8] sm:$0xff]  ;;  %v77_v4 = vld [vmem:[%s5750_s26 + $0x20] sm:$0xff]  ;;  %v76_v5 = vld [vmem:[%s5750_s26 + $0x18] sm:$0xff] }
   0xf   :  { %108 = vmatpush1.xpose.msra.mxu0 %v79_v1  ;;  %147 = vmatprep.mubr.f32.mxu0 %v70_v3 }
  0x10   :  { %109 = vmatprep.subr.mxu0 %v78_v2 }
  0x11   :  { %26 = vsyncpa [#allocation3], 0  ;;  %v75_v6 = vld [vmem:[%s5750_s26 + $0x10] sm:$0xff]  ;;  %v74_v7 = vld [vmem:[%s5750_s26 + $0x8] sm:$0xff]  ;;  %s5752_s2 = sld [smem:[#allocation7_spill]]  ;;  %vm162_vm0 = vcmask 261120  }
  0x12   :  { %v73_v8 = vld [vmem:[%s5750_s26] sm:$0xff]  ;;  %v72_v10 = vld [vmem:[%s5751_s30 + $0x18] sm:$0x3]  ;;  %v71_v11 = vld [vmem:[%s5751_s30 + $0x10] sm:$0x3]  ;;  %vm166_vm1 = vcmask 254976  }
  0x13   :  { %110 = vmatpush1.xpose.msra.mxu0 %v77_v4  ;;  %v69_v9 = vld [vmem:[%s5751_s30] sm:$0xff]  ;;  %v218_v22 = vld [vmem:[%s5716_s7 + $0x58] sm:$0xff]  ;;  %v217_v23 = vld [vmem:[%s5716_s7 + $0x50] sm:$0xff]  ;;  %s5753_s24 = sld [smem:[#allocation10_spill]]  ;;  %vm353_vm2 = vcmask 64512   ;;  %s4705_s27 = smov 96  }
  0x14   :  { %111 = vmatprep.subr.mxu0 %v76_v5  ;;  %4241 = vmatprep.subr.msk.mxu1 %vm162_vm0, %v218_v22  ;;  %v216_v24 = vld [vmem:[%s5716_s7 + $0x48] sm:$0xff]  ;;  %v215_v25 = vld [vmem:[%s5716_s7 + $0x40] sm:$0xff]  ;;  %v214_v26 = vld [vmem:[%s5716_s7 + $0x38] sm:$0xff]  ;;  %s5754_s29 = sld [smem:[#allocation8_spill]]  ;;  %vm445_vm3 = vcmask 74752   ;;  %vm441_vm4 = vcmask 80896  }
  0x15   :  { %4242 = vmatpush3.xpose.msk.msra.mxu1 %vm162_vm0, %v218_v22  ;;  %v213_v37 = vld [vmem:[%s5716_s7 + $0x30] sm:$0xff]  ;;  %v212_v38 = vld [vmem:[%s5716_s7 + $0x28] sm:$0xff]  ;;  %v211_v39 = vld [vmem:[%s5716_s7 + $0x20] sm:$0xff]  ;;  %s4706_s5 = smov 64   ;;  %s4707_s22 = smov 88   ;;  %vm476_vm5 = vcmask 1041408  }
  0x16   :  { %4243 = vmatprep.subr.msk.mxu1 %vm162_vm0, %v217_v23  ;;  %v210_v40 = vld [vmem:[%s5716_s7 + $0x18] sm:$0xff]  ;;  %v209_v41 = vld [vmem:[%s5716_s7 + $0x10] sm:$0xff]  ;;  %v208_v42 = vld [vmem:[%s5716_s7 + $0x8] sm:$0xff]  ;;  %s4708_s23 = smov 120   ;;  %s5738_s4 = smov 56   ;;  %vm1797_vm6 = vcmask 523264  }
  0x17   :  { %112 = vmatpush1.xpose.msra.mxu0 %v75_v6  ;;  %v81_v12 = vld [vmem:[%s5752_s2] sm:$0xff]  ;;  %v82_v16 = vld [vmem:[%s5752_s2 + $0x8] sm:$0x3]  ;;  %s4710_s1 = smov 80   ;;  %s4711_s2 = smov 112   ;;  %vm4717_vm11 = vmmov 0  }
  0x18   :  { %113 = vmatprep.subr.mxu0 %v74_v7  ;;  %v207_v43 = vld [vmem:[%s5716_s7] sm:$0xff]  ;;  %s4712_s26 = smov 48   ;;  %s5742_s25 = smov 72  }
  0x19   :  { %4244 = vmatpush3.xpose.msk.msra.mxu1 %vm162_vm0, %v217_v23  ;;  %v3839_v51 = vld [vmem:[%s5753_s24] ss:$0 sm:$0xff]  ;;  %s5740_s30 = smov 104   ;;  %s5736_s3 = smov 40  }
  0x1a   :  { %4245 = vmatprep.subr.msk.mxu1 %vm162_vm0, %v216_v24  ;;  %v3840_v53 = vld [vmem:[%s5715_s6] ss:$0 sm:$0xff]  ;;  %v4973_v4 = vld [vmem:[%s5754_s29 + $0x8] sm:$0x3] }
  0x1b   :  { %114 = vmatpush1.xpose.msra.mxu0 %v73_v8  ;;  %v3841_v60 = vld [vmem:[%s5717_s8] ss:$0 sm:$0xff] }
  0x1c   :  { %v4978_v7 = vld [vmem:[%s5754_s29] sm:$0xff] }
  0x1d   :  { %4246 = vmatpush3.xpose.msk.msra.mxu1 %vm162_vm0, %v216_v24 }
  0x1e   :  { %148 = vmatmul.mubr.f32.vlgmr.msra.gmra.mxu0 %v69_v9  ;;  %4247 = vmatprep.subr.msk.mxu1 %vm162_vm0, %v215_v25 }
  0x1f   :  { %152 = vmatprep.mubr.f32.mxu0 %v72_v10 }
  0x21   :  { %4248 = vmatpush3.xpose.msk.msra.mxu1 %vm162_vm0, %v215_v25  ;;  %v5001_v25 = vld [vmem:[%s5718_s9 + $0x18] sm:$0xff] }
  0x22   :  { %153 = vmatmul.mubr.f32.gmra.mxu0 %v71_v11  ;;  %4249 = vmatprep.subr.msk.mxu1 %vm162_vm0, %v214_v26 }
  0x25   :  { %4250 = vmatpush3.xpose.msk.msra.mxu1 %vm162_vm0, %v214_v26  ;;  %v5006_v26 = vld [vmem:[%s5718_s9 + $0x10] sm:$0xff] }
  0x26   :  { %4251 = vmatprep.subr.msk.mxu1 %vm162_vm0, %v213_v37 }
  0x29   :  { %4252 = vmatpush3.xpose.msk.msra.mxu1 %vm162_vm0, %v213_v37 }
  0x2a   :  { %4253 = vmatprep.subr.msk.mxu1 %vm162_vm0, %v212_v38 }
  0x2d   :  { %4254 = vmatpush3.xpose.msk.msra.mxu1 %vm162_vm0, %v212_v38 }
  0x2e   :  { %4255 = vmatprep.subr.msk.mxu1 %vm162_vm0, %v211_v39 }
  0x31   :  { %4256 = vmatpush3.xpose.msk.msra.mxu1 %vm162_vm0, %v211_v39 }
  0x32   :  { %4257 = vmatprep.subr.msk.mxu1 %vm162_vm0, %v210_v40 }
  0x35   :  { %4258 = vmatpush3.xpose.msk.msra.mxu1 %vm162_vm0, %v210_v40  ;;  %v5038_v40 = vld [vmem:[%s5718_s9] sm:$0xff] }
  0x36   :  { %4259 = vmatprep.subr.msk.mxu1 %vm162_vm0, %v209_v41 }
  0x39   :  { %4260 = vmatpush3.xpose.msk.msra.mxu1 %vm162_vm0, %v209_v41 }
  0x3a   :  { %4261 = vmatprep.subr.msk.mxu1 %vm162_vm0, %v208_v42 }
  0x3d   :  { %4262 = vmatpush3.xpose.msk.msra.mxu1 %vm162_vm0, %v208_v42 }
  0x3e   :  { %4263 = vmatprep.subr.msk.mxu1 %vm162_vm0, %v207_v43 }
  0x41   :  { %4264 = vmatpush3.xpose.msk.msra.mxu1 %vm162_vm0, %v207_v43 }
  0x42   :  { %4307 = vmatprep.subr.msk.mxu1 %vm353_vm2, %v5001_v25 }
  0xde   :  { %v149_v13 = vpop.f32.mrf.mxu0 }
  0xdf   :  { %v4868_v14 = vadd.f32 %v149_v13, %v81_v12 }
  0xe0   :  { %v151_v15 = vpop.f32.mrf.mxu0 }
  0xe1   :  { %v163_v17 = vsel %vm162_vm0, %v4868_v14, 0.0 }
  0xe2   :  { %v154_v18 = vpop.f32.mrf.mxu0  ;;  %164 = vadd.xlane.f32.xlu0 %v163_v17 }
  0xe3   :  { %v4875_v19 = vadd.f32 %v154_v18, %v82_v16 }
  0xe4   :  { %v156_v20 = vpop.f32.mrf.mxu0 }
  0xe5   :  { %v167_v21 = vsel %vm166_vm1, %v4875_v19, 0.0 }
  0xe6   :  { %168 = vadd.xlane.f32.xlu0 %v167_v21 }
 0x16b   :  { %v165_v27 = vpop.xlane.xlu0 %164 }
 0x16c   :  { %v171_v28 = vmul.f32 0.03125, %v165_v27  ;;  %v5017_v27 = vld [vmem:[%s5718_s9 + $0x8] sm:$0xff] }
 0x16e   :  { %v173_v29 = vsub.f32 %v4868_v14, %v171_v28 }
 0x16f   :  { %v169_v30 = vpop.xlane.xlu0 %168 }
 0x170   :  { %v172_v31 = vmul.f32 0.03125, %v169_v30  ;;  %v175_v32 = vmul.f32 %v173_v29, %v173_v29 }
 0x172   :  { %v174_v33 = vsub.f32 %v4875_v19, %v172_v31  ;;  %v177_v34 = vsel %vm162_vm0, %v175_v32, 0.0 }
 0x173   :  { %178 = vadd.xlane.f32.xlu1 %v177_v34 }
 0x174   :  { %v176_v35 = vmul.f32 %v174_v33, %v174_v33 }
 0x176   :  { %v180_v36 = vsel %vm166_vm1, %v176_v35, 0.0 }
 0x177   :  { %181 = vadd.xlane.f32.xlu1 %v180_v36 }
 0x1fc   :  { %v179_v44 = vpop.xlane.xlu1 %178 }
 0x1fd   :  { %v183_v45 = vmul.f32 0.03125, %v179_v44 }
 0x1ff   :  { %v185_v46 = vadd.f32 1e-05, %v183_v45 }
 0x200   :  { %v182_v47 = vpop.xlane.xlu1 %181 }
 0x201   :  { %4583 = vrsqrt.f32 %v185_v46  ;;  %v184_v48 = vmul.f32 0.03125, %v182_v47 }
 0x203   :  { %v186_v49 = vadd.f32 1e-05, %v184_v48 }
 0x205   :  { %4585 = vrsqrt.f32 %v186_v49 }
 0x20e   :  { %v4584_v50 = vpop.eup %4583 }
 0x20f   :  { %v189_v52 = vmul.f32 %v4584_v50, %v173_v29 }
 0x211   :  { %v197_v54 = vmul.f32 %v3839_v51, %v189_v52 }
 0x212   :  { %v4586_v55 = vpop.eup %4585 }
 0x213   :  { %v190_v56 = vmul.f32 %v4586_v55, %v174_v33  ;;  %v205_v57 = vadd.f32 %v3840_v53, %v197_v54 }
 0x215   :  { %v198_v58 = vmul.f32 %v3839_v51, %v190_v56  ;;  %4265 = vmatprep.mubr.msk.f32.mxu1 %vm162_vm0, %v205_v57 }
 0x217   :  { %v206_v59 = vadd.f32 %v3840_v53, %v198_v58 }
 0x219   :  { %4266 = vmatmul.mubr.msk.f32.vlgmr.msra.gmra.mxu1 %vm162_vm0, %v206_v59 }
 0x21a   :  { %4308 = vmatpush3.xpose.msk.msra.mxu1 %vm353_vm2, %v5001_v25 }
 0x21b   :  { %4309 = vmatprep.subr.msk.mxu1 %vm353_vm2, %v5006_v26 }
 0x21e   :  { %4310 = vmatpush3.xpose.msk.msra.mxu1 %vm353_vm2, %v5006_v26 }
 0x21f   :  { %4311 = vmatprep.subr.msk.mxu1 %vm353_vm2, %v5017_v27 }
 0x222   :  { %4312 = vmatpush3.xpose.msk.msra.mxu1 %vm353_vm2, %v5017_v27 }
 0x223   :  { %4313 = vmatprep.subr.msk.mxu1 %vm353_vm2, %v5038_v40 }
 0x226   :  { %4314 = vmatpush3.xpose.msk.msra.mxu1 %vm353_vm2, %v5038_v40 }
 0x2d9   :  { %v4267_v61 = vpop.f32.mrf.mxu1 }
 0x2da   :  { %v4954_v62 = vadd.f32 %v4267_v61, %v3841_v60 }
 0x2db   :  { %v334_v63 = vpop.f32.mrf.mxu1 }
 0x2dc   :  { %v4956_v0 = vadd.f32 %v3841_v60, %v334_v63  ;;  %351 = vrot.lane.b32.xlu0 %v4954_v62, %s4705_s27 }
 0x2de   :  { %349 = vrot.lane.b32.xlu1 %v4956_v0, %s4705_s27  ;;  %4272 = vmatprep.mubr.msk.f32.mxu0 %vm353_vm2, %v4956_v0 }
 0x34e   :  { %v352_v1 = vpop.permute.xlu0 %351 }
 0x34f   :  { %4268 = vmatprep.subr.msk.mxu0 %vm353_vm2, %v352_v1 }
 0x350   :  { %4269 = vmatpush3.xpose.msk.msra.mxu0 %vm353_vm2, %v352_v1  ;;  %v350_v2 = vpop.permute.xlu1 %349 }
 0x351   :  { %4270 = vmatprep.subr.msk.mxu0 %vm353_vm2, %v350_v2 }
 0x354   :  { %4271 = vmatpush3.xpose.msk.msra.mxu0 %vm353_vm2, %v350_v2 }
 0x357   :  { %4273 = vmatmul.mubr.msk.f32.vlgmr.msra.gmra.mxu0 %vm353_vm2, %v4954_v62 }
 0x417   :  { %v4274_v3 = vpop.f32.mrf.mxu0 }
 0x418   :  { %v438_v5 = vmul.f32 0.35355338, %v4274_v3 }
 0x419   :  { %v428_v6 = vpop.f32.mrf.mxu0 }
 0x41a   :  { %v437_v8 = vmul.f32 0.35355338, %v428_v6  ;;  %v440_v9 = vadd.f32 %v438_v5, %v4973_v4 }
 0x41c   :  { %v446_v10 = vsel %vm445_vm3, %v440_v9, -inf  ;;  %v439_v11 = vadd.f32 %v437_v8, %v4978_v7 }
 0x41d   :  { %447 = vmax.xlane.f32.xlu0 %v446_v10 }
 0x41e   :  { %v442_v12 = vsel %vm441_vm4, %v439_v11, -inf }
 0x41f   :  { %443 = vmax.xlane.f32.xlu1 %v442_v12 }
 0x4a6   :  { %v448_v13 = vpop.xlane.xlu0 %447 }
 0x4a7   :  { %v450_v15 = vsub.f32 %v440_v9, %v448_v13 }
 0x4a8   :  { %v444_v16 = vpop.xlane.xlu1 %443 }
 0x4a9   :  { %v453_v17 = vmul.f32 1.442695, %v450_v15  ;;  %v449_v18 = vsub.f32 %v439_v11, %v444_v16 }
 0x4ab   :  { %4587 = vpow2.f32 %v453_v17  ;;  %v451_v20 = vmul.f32 1.442695, %v449_v18 }
 0x4ad   :  { %4589 = vpow2.f32 %v451_v20 }
 0x4b8   :  { %v4588_v21 = vpop.eup %4587 }
 0x4b9   :  { %v458_v22 = vsel %vm445_vm3, %v4588_v21, 0.0 }
 0x4ba   :  { %v4590_v23 = vpop.eup %4589  ;;  %459 = vadd.xlane.f32.xlu1 %v458_v22 }
 0x4bb   :  { %v455_v24 = vsel %vm441_vm4, %v4590_v23, 0.0 }
 0x4bc   :  { %456 = vadd.xlane.f32.xlu0 %v455_v24 }
 0x4cb   :  { %465 = vrot.lane.b32.xlu1 %v4956_v0, %s4706_s5 }
 0x4cf   :  { %560 = vrot.lane.b32.xlu1 %v4954_v62, %s4707_s22 }
 0x4d2   :  { %467 = vrot.lane.b32.xlu0 %v4954_v62, %s4706_s5 }
 0x4d3   :  { %558 = vrot.lane.b32.xlu1 %v4956_v0, %s4707_s22 }
 0x4d6   :  { %554 = vrot.lane.b32.xlu0 %v4956_v0, %s4708_s23 }
 0x4d7   :  { %556 = vrot.lane.b32.xlu1 %v4954_v62, %s4708_s23 }
 0x543   :  { %v460_v28 = vpop.xlane.xlu1 %459 }
 0x544   :  { %4591 = vrcp.f32 %v460_v28 }
 0x545   :  { %v457_v29 = vpop.xlane.xlu0 %456 }
 0x546   :  { %4593 = vrcp.f32 %v457_v29 }
 0x547   :  { %v466_v30 = vpop.permute.xlu1 %465 }
 0x549   :  { %v468_v31 = vpop.permute.xlu0 %467 }
 0x54a   :  { %4275 = vmatprep.subr.msk.mxu0 %vm476_vm5, %v468_v31 }
 0x54b   :  { %4276 = vmatpush3.msk.msra.mxu0 %vm476_vm5, %v468_v31  ;;  %v561_v32 = vpop.permute.xlu1 %560 }
 0x54c   :  { %4277 = vmatprep.subr.mxu0 %v466_v30 }
 0x54d   :  { %4278 = vmatpush3.msra.mxu0 %v466_v30  ;;  %v555_v37 = vpop.permute.xlu0 %554 }
 0x54e   :  { %4282 = vmatprep.subr.msk.mxu0 %vm353_vm2, %v561_v32 }
 0x54f   :  { %v559_v38 = vpop.permute.xlu1 %558 }
 0x551   :  { %v4592_v33 = vpop.eup %4591 }
 0x552   :  { %v464_v36 = vmul.f32 %v4592_v33, %v4588_v21 }
 0x553   :  { %v4594_v34 = vpop.eup %4593  ;;  %v557_v39 = vpop.permute.xlu1 %556 }
 0x554   :  { %v463_v35 = vmul.f32 %v4594_v34, %v4590_v23 }
 0x556   :  { %4279 = vmatprep.mubr.msk.f32.mxu0 %vm441_vm4, %v463_v35 }
 0x557   :  { %4280 = vmatmul.mubr.msk.f32.vlgmr.msra.gmra.mxu0 %vm441_vm4, %v464_v36 }
 0x558   :  { %4283 = vmatpush3.xpose.msk.msra.mxu0 %vm353_vm2, %v561_v32  ;;  %4286 = vmatprep.mubr.msk.f32.mxu0 %vm353_vm2, %v555_v37 }
 0x559   :  { %4284 = vmatprep.subr.msk.mxu0 %vm353_vm2, %v559_v38 }
 0x55c   :  { %4285 = vmatpush3.xpose.msk.msra.mxu0 %vm353_vm2, %v559_v38 }
 0x55f   :  { %4287 = vmatmul.mubr.msk.f32.vlgmr.msra.gmra.mxu0 %vm353_vm2, %v557_v39 }
 0x617   :  { %v4281_v41 = vpop.f32.mrf.mxu0 }
 0x619   :  { %v545_v42 = vpop.f32.mrf.mxu0 }
 0x61a   :  { %4315 = vmatprep.mubr.msk.f32.mxu1 %vm353_vm2, %v545_v42 }
 0x61b   :  { %4316 = vmatmul.mubr.msk.f32.vlgmr.msra.gmra.mxu1 %vm353_vm2, %v4281_v41 }
 0x61f   :  { %v4288_v43 = vpop.f32.mrf.mxu0 }
 0x620   :  { %v646_v44 = vmul.f32 0.35355338, %v4288_v43 }
 0x621   :  { %v636_v45 = vpop.f32.mrf.mxu0 }
 0x622   :  { %v645_v46 = vmul.f32 0.35355338, %v636_v45  ;;  %v648_v47 = vadd.f32 %v646_v44, %v4973_v4 }
 0x624   :  { %v652_v48 = vsel %vm445_vm3, %v648_v47, -inf  ;;  %v647_v49 = vadd.f32 %v645_v46, %v4978_v7 }
 0x625   :  { %653 = vmax.xlane.f32.xlu1 %v652_v48 }
 0x626   :  { %v649_v50 = vsel %vm441_vm4, %v647_v49, -inf }
 0x627   :  { %650 = vmax.xlane.f32.xlu0 %v649_v50 }
 0x636   :  { %671 = vrot.lane.b32.xlu1 %v4956_v0, %s5738_s4 }
 0x63a   :  { %769 = vrot.lane.b32.xlu1 %v5001_v25, %s4708_s23 }
 0x63e   :  { %767 = vrot.lane.b32.xlu1 %v5006_v26, %s4708_s23 }
 0x642   :  { %763 = vrot.lane.b32.xlu1 %v5038_v40, %s4708_s23 }
 0x646   :  { %953 = vrot.lane.b32.xlu1 %v4956_v0, %s4710_s1 }
 0x64a   :  { %951 = vrot.lane.b32.xlu1 %v4954_v62, %s4711_s2 }
 0x6ae   :  { %v654_v51 = vpop.xlane.xlu1 %653 }
 0x6af   :  { %v656_v52 = vsub.f32 %v648_v47, %v654_v51 }
 0x6b0   :  { %v651_v53 = vpop.xlane.xlu0 %650 }
 0x6b1   :  { %v659_v54 = vmul.f32 1.442695, %v656_v52  ;;  %v655_v55 = vsub.f32 %v647_v49, %v651_v53 }
 0x6b2   :  { %v672_v1 = vpop.permute.xlu1 %671 }
 0x6b3   :  { %4595 = vpow2.f32 %v659_v54  ;;  %v657_v56 = vmul.f32 1.442695, %v655_v55 }
 0x6b5   :  { %4597 = vpow2.f32 %v657_v56 }
 0x6b6   :  { %v770_v3 = vpop.permute.xlu1 %769 }
 0x6ba   :  { %v768_v10 = vpop.permute.xlu1 %767 }
 0x6be   :  { %v764_v12 = vpop.permute.xlu1 %763 }
 0x6c0   :  { %v4596_v57 = vpop.eup %4595 }
 0x6c1   :  { %v664_v58 = vsel %vm445_vm3, %v4596_v57, 0.0 }
 0x6c2   :  { %v4598_v59 = vpop.eup %4597  ;;  %665 = vadd.xlane.f32.xlu0 %v664_v58  ;;  %v954_v18 = vpop.permute.xlu1 %953 }
 0x6c3   :  { %v661_v60 = vsel %vm441_vm4, %v4598_v59, 0.0 }
 0x6c6   :  { %662 = vadd.xlane.f32.xlu0 %v661_v60  ;;  %v952_v20 = vpop.permute.xlu1 %951 }
 0x6dc   :  { %673 = vrot.lane.b32.xlu0 %v4954_v62, %s5738_s4 }
 0x6e0   :  { %765 = vrot.lane.b32.xlu0 %v5017_v27, %s4708_s23 }
 0x6e4   :  { %955 = vrot.lane.b32.xlu0 %v4954_v62, %s4710_s1 }
 0x6e8   :  { %949 = vrot.lane.b32.xlu0 %v4956_v0, %s4711_s2 }
 0x74b   :  { %v666_v61 = vpop.xlane.xlu0 %665 }
 0x74c   :  { %4599 = vrcp.f32 %v666_v61 }
 0x74f   :  { %v663_v63 = vpop.xlane.xlu0 %662 }
 0x750   :  { %4601 = vrcp.f32 %v663_v63 }
 0x753   :  { %v674_v2 = vpop.permute.xlu0 %673 }
 0x754   :  { %4289 = vmatprep.subr.msk.mxu0 %vm476_vm5, %v674_v2 }
 0x755   :  { %4290 = vmatpush3.msk.msra.mxu0 %vm476_vm5, %v674_v2 }
 0x756   :  { %4291 = vmatprep.subr.mxu0 %v672_v1 }
 0x757   :  { %4292 = vmatpush3.msra.mxu0 %v672_v1  ;;  %v766_v11 = vpop.permute.xlu0 %765 }
 0x758   :  { %4296 = vmatprep.subr.msk.mxu0 %vm353_vm2, %v770_v3 }
 0x759   :  { %v4600_v5 = vpop.eup %4599 }
 0x75a   :  { %v670_v9 = vmul.f32 %v4600_v5, %v4596_v57 }
 0x75b   :  { %v956_v13 = vpop.permute.xlu0 %955 }
 0x75d   :  { %v4602_v6 = vpop.eup %4601 }
 0x75e   :  { %v669_v8 = vmul.f32 %v4602_v6, %v4598_v59 }
 0x75f   :  { %v950_v17 = vpop.permute.xlu0 %949 }
 0x760   :  { %4293 = vmatprep.mubr.msk.f32.mxu0 %vm441_vm4, %v669_v8 }
 0x761   :  { %4294 = vmatmul.mubr.msk.f32.vlgmr.msra.gmra.mxu0 %vm441_vm4, %v670_v9 }
 0x762   :  { %4297 = vmatpush3.xpose.msk.msra.mxu0 %vm353_vm2, %v770_v3 }
 0x763   :  { %4298 = vmatprep.subr.msk.mxu0 %vm353_vm2, %v768_v10 }
 0x766   :  { %4299 = vmatpush3.xpose.msk.msra.mxu0 %vm353_vm2, %v768_v10 }
 0x767   :  { %4300 = vmatprep.subr.msk.mxu0 %vm353_vm2, %v766_v11 }
 0x76a   :  { %4301 = vmatpush3.xpose.msk.msra.mxu0 %vm353_vm2, %v766_v11 }
 0x76b   :  { %4302 = vmatprep.subr.msk.mxu0 %vm353_vm2, %v764_v12 }
 0x76e   :  { %4303 = vmatpush3.xpose.msk.msra.mxu0 %vm353_vm2, %v764_v12 }
 0x76f   :  { %4318 = vmatprep.subr.msk.mxu0 %vm353_vm2, %v956_v13 }
 0x821   :  { %v4295_v15 = vpop.f32.mrf.mxu0 }
 0x823   :  { %v750_v16 = vpop.f32.mrf.mxu0 }
 0x824   :  { %4304 = vmatprep.mubr.msk.f32.mxu0 %vm353_vm2, %v750_v16 }
 0x825   :  { %4305 = vmatmul.mubr.msk.f32.vlgmr.msra.gmra.mxu0 %vm353_vm2, %v4295_v15 }
 0x826   :  { %4319 = vmatpush3.xpose.msk.msra.mxu0 %vm353_vm2, %v956_v13  ;;  %4322 = vmatprep.mubr.msk.f32.mxu0 %vm353_vm2, %v950_v17 }
 0x827   :  { %4320 = vmatprep.subr.msk.mxu0 %vm353_vm2, %v954_v18 }
 0x82a   :  { %4321 = vmatpush3.xpose.msk.msra.mxu0 %vm353_vm2, %v954_v18 }
 0x82d   :  { %4323 = vmatmul.mubr.msk.f32.vlgmr.msra.gmra.mxu0 %vm353_vm2, %v952_v20 }
 0x8e5   :  { %v5092_v21 = vpop.f32.mrf.mxu0 }
 0x8e7   :  { %v5094_v22 = vpop.f32.mrf.mxu0 }
 0x8ed   :  { %v4324_v23 = vpop.f32.mrf.mxu0 }
 0x8ee   :  { %v1041_v24 = vmul.f32 0.35355338, %v4324_v23 }
 0x8ef   :  { %v1031_v28 = vpop.f32.mrf.mxu0 }
 0x8f0   :  { %v1040_v29 = vmul.f32 0.35355338, %v1031_v28  ;;  %v1043_v30 = vadd.f32 %v1041_v24, %v4973_v4 }
 0x8f2   :  { %v1047_v31 = vsel %vm445_vm3, %v1043_v30, -inf  ;;  %v1042_v32 = vadd.f32 %v1040_v29, %v4978_v7 }
 0x8f3   :  { %1048 = vmax.xlane.f32.xlu1 %v1047_v31 }
 0x8f4   :  { %v1044_v33 = vsel %vm441_vm4, %v1042_v32, -inf }
 0x8f5   :  { %1045 = vmax.xlane.f32.xlu0 %v1044_v33 }
 0x904   :  { %1066 = vrot.lane.b32.xlu1 %v4956_v0, %s4712_s26 }
 0x908   :  { %1259 = vrot.lane.b32.xlu1 %v4954_v62, %s5742_s25 }
 0x90c   :  { %1257 = vrot.lane.b32.xlu1 %v4956_v0, %s5742_s25 }
 0x910   :  { %1255 = vrot.lane.b32.xlu1 %v4954_v62, %s5740_s30 }
 0x97c   :  { %v1049_v34 = vpop.xlane.xlu1 %1048 }
 0x97d   :  { %v1051_v35 = vsub.f32 %v1043_v30, %v1049_v34  ;;  %v4317_v34 = vpop.f32.mrf.mxu1 }
 0x97e   :  { %v1046_v36 = vpop.xlane.xlu0 %1045 }
 0x97f   :  { %v1054_v37 = vmul.f32 1.442695, %v1051_v35  ;;  %v1050_v38 = vsub.f32 %v1042_v32, %v1046_v36  ;;  %v940_v35 = vpop.f32.mrf.mxu1 }
 0x980   :  { %v1067_v47 = vpop.permute.xlu1 %1066 }
 0x981   :  { %4603 = vpow2.f32 %v1054_v37  ;;  %v1052_v39 = vmul.f32 1.442695, %v1050_v38  ;;  %v946_v37 = vadd.f32 %v4317_v34, %v5092_v21 }
 0x983   :  { %4605 = vpow2.f32 %v1052_v39  ;;  %v941_v39 = vadd.f32 %v940_v35, %v5094_v22 }
 0x984   :  { %v1260_v49 = vpop.permute.xlu1 %1259 }
 0x988   :  { %v1258_v55 = vpop.permute.xlu1 %1257 }
 0x98c   :  { %v1256_v56 = vpop.permute.xlu1 %1255 }
 0x98e   :  { %v4604_v41 = vpop.eup %4603 }
 0x98f   :  { %v1059_v42 = vsel %vm445_vm3, %v4604_v41, 0.0 }
 0x990   :  { %v4606_v43 = vpop.eup %4605  ;;  %1060 = vadd.xlane.f32.xlu0 %v1059_v42 }
 0x991   :  { %v1056_v44 = vsel %vm441_vm4, %v4606_v43, 0.0 }
 0x994   :  { %1057 = vadd.xlane.f32.xlu0 %v1056_v44 }
 0x9aa   :  { %1068 = vrot.lane.b32.xlu0 %v4954_v62, %s4712_s26 }
 0x9ae   :  { %1253 = vrot.lane.b32.xlu0 %v4956_v0, %s5740_s30 }
 0xa19   :  { %v1061_v45 = vpop.xlane.xlu0 %1060 }
 0xa1a   :  { %4607 = vrcp.f32 %v1061_v45  ;;  %v3908_v45 = vld [vmem:[%s5719_s10] ss:$0 sm:$0xff] }
 0xa1d   :  { %v1058_v46 = vpop.xlane.xlu0 %1057 }
 0xa1e   :  { %4609 = vrcp.f32 %v1058_v46 }
 0xa21   :  { %v1069_v48 = vpop.permute.xlu0 %1068 }
 0xa22   :  { %4325 = vmatprep.subr.msk.mxu0 %vm476_vm5, %v1069_v48 }
 0xa23   :  { %4326 = vmatpush3.msk.msra.mxu0 %vm476_vm5, %v1069_v48 }
 0xa24   :  { %4327 = vmatprep.subr.mxu0 %v1067_v47 }
 0xa25   :  { %4328 = vmatpush3.msra.mxu0 %v1067_v47  ;;  %v1254_v54 = vpop.permute.xlu0 %1253 }
 0xa26   :  { %4343 = vmatprep.subr.msk.mxu0 %vm353_vm2, %v1260_v49 }
 0xa27   :  { %v4608_v50 = vpop.eup %4607 }
 0xa28   :  { %v1065_v53 = vmul.f32 %v4608_v50, %v4604_v41 }
 0xa2b   :  { %v4610_v51 = vpop.eup %4609 }
 0xa2c   :  { %v1064_v52 = vmul.f32 %v4610_v51, %v4606_v43 }
 0xa2e   :  { %4329 = vmatprep.mubr.msk.f32.mxu0 %vm441_vm4, %v1064_v52  ;;  %v1619_v52 = vld [vmem:[%s5722_s13 + $0x38] sm:$0xff] }
 0xa2f   :  { %4330 = vmatmul.mubr.msk.f32.vlgmr.msra.gmra.mxu0 %vm441_vm4, %v1065_v53 }
 0xa30   :  { %4344 = vmatpush3.xpose.msk.msra.mxu0 %vm353_vm2, %v1260_v49  ;;  %4347 = vmatprep.mubr.msk.f32.mxu0 %vm353_vm2, %v1254_v54 }
 0xa31   :  { %4345 = vmatprep.subr.msk.mxu0 %vm353_vm2, %v1258_v55 }
 0xa34   :  { %4346 = vmatpush3.xpose.msk.msra.mxu0 %vm353_vm2, %v1258_v55 }
 0xa37   :  { %4348 = vmatmul.mubr.msk.f32.vlgmr.msra.gmra.mxu0 %vm353_vm2, %v1256_v56 }
 0xaef   :  { %v5124_v57 = vpop.f32.mrf.mxu0 }
 0xaf1   :  { %v1145_v58 = vpop.f32.mrf.mxu0 }
 0xaf2   :  { %4340 = vmatprep.mubr.msk.f32.mxu1 %vm353_vm2, %v1145_v58 }
 0xaf7   :  { %v4349_v59 = vpop.f32.mrf.mxu0 }
 0xaf8   :  { %v1345_v60 = vmul.f32 0.35355338, %v4349_v59 }
 0xaf9   :  { %v1335_v61 = vpop.f32.mrf.mxu0 }
 0xafa   :  { %v1344_v63 = vmul.f32 0.35355338, %v1335_v61  ;;  %v1347_v1 = vadd.f32 %v1345_v60, %v4973_v4  ;;  %v1618_v61 = vld [vmem:[%s5722_s13 + $0x30] sm:$0xff] }
 0xafc   :  { %v1351_v2 = vsel %vm445_vm3, %v1347_v1, -inf  ;;  %v1346_v3 = vadd.f32 %v1344_v63, %v4978_v7  ;;  %v1617_v63 = vld [vmem:[%s5722_s13 + $0x28] sm:$0xff] }
 0xafd   :  { %1352 = vmax.xlane.f32.xlu1 %v1351_v2  ;;  %v1615_v2 = vld [vmem:[%s5722_s13 + $0x18] sm:$0xff] }
 0xafe   :  { %v1348_v5 = vsel %vm441_vm4, %v1346_v3, -inf }
 0xaff   :  { %1349 = vmax.xlane.f32.xlu0 %v1348_v5  ;;  %v1613_v5 = vld [vmem:[%s5722_s13 + $0x8] sm:$0xff] }
 0xb0e   :  { %1370 = vrot.lane.b32.xlu1 %v4956_v0, %s5736_s3 }
 0xb12   :  { %1160 = vrot.lane.b32.xlu1 %v5001_v25, %s4711_s2 }
 0xb16   :  { %1464 = vrot.lane.b32.xlu1 %v5001_v25, %s5740_s30 }
 0xb1a   :  { %1462 = vrot.lane.b32.xlu1 %v5006_v26, %s5740_s30 }
 0xb1e   :  { %1460 = vrot.lane.b32.xlu1 %v5017_v27, %s5740_s30 }
 0xb22   :  { %1458 = vrot.lane.b32.xlu1 %v5038_v40, %s5740_s30 }
 0xb86   :  { %v1353_v4 = vpop.xlane.xlu1 %1352 }
 0xb87   :  { %v1355_v7 = vsub.f32 %v1347_v1, %v1353_v4  ;;  %v1616_v1 = vld [vmem:[%s5722_s13 + $0x20] sm:$0xff] }
 0xb88   :  { %v1350_v6 = vpop.xlane.xlu0 %1349  ;;  %v1612_v4 = vld [vmem:[%s5722_s13] sm:$0xff] }
 0xb89   :  { %v1358_v8 = vmul.f32 1.442695, %v1355_v7  ;;  %v1354_v0 = vsub.f32 %v1346_v3, %v1350_v6  ;;  %v1614_v3 = vld [vmem:[%s5722_s13 + $0x10] sm:$0xff] }
 0xb8a   :  { %v1371_v13 = vpop.permute.xlu1 %1370 }
 0xb8b   :  { %4611 = vpow2.f32 %v1358_v8  ;;  %v1356_v9 = vmul.f32 1.442695, %v1354_v0 }
 0xb8d   :  { %4613 = vpow2.f32 %v1356_v9 }
 0xb8e   :  { %v1161_v15 = vpop.permute.xlu1 %1160 }
 0xb8f   :  { %4332 = vmatprep.subr.msk.mxu1 %vm353_vm2, %v1161_v15 }
 0xb90   :  { %4333 = vmatpush3.xpose.msk.msra.mxu1 %vm353_vm2, %v1161_v15 }
 0xb92   :  { %v1465_v20 = vpop.permute.xlu1 %1464 }
 0xb98   :  { %v4612_v10 = vpop.eup %4611 }
 0xb99   :  { %v1363_v25 = vsel %vm445_vm3, %v4612_v10, 0.0 }
 0xb9a   :  { %v4614_v11 = vpop.eup %4613  ;;  %1364 = vadd.xlane.f32.xlu0 %v1363_v25 }
 0xb9b   :  { %v1360_v12 = vsel %vm441_vm4, %v4614_v11, 0.0 }
 0xb9e   :  { %1361 = vadd.xlane.f32.xlu0 %v1360_v12 }
 0xbb4   :  { %1372 = vrot.lane.b32.xlu0 %v4954_v62, %s5736_s3 }
 0xbb8   :  { %1158 = vrot.lane.b32.xlu0 %v5006_v26, %s4711_s2 }
 0xbbc   :  { %1156 = vrot.lane.b32.xlu0 %v5017_v27, %s4711_s2 }
 0xbc0   :  { %1154 = vrot.lane.b32.xlu0 %v5038_v40, %s4711_s2  ;;  %v1463_v40 = vpop.permute.xlu1 %1462 }
 0xbc4   :  { %v1461_v30 = vpop.permute.xlu1 %1460 }
 0xbc8   :  { %v1459_v31 = vpop.permute.xlu1 %1458 }
 0xc23   :  { %v1365_v16 = vpop.xlane.xlu0 %1364 }
 0xc24   :  { %4615 = vrcp.f32 %v1365_v16 }
 0xc27   :  { %v1362_v17 = vpop.xlane.xlu0 %1361 }
 0xc28   :  { %4617 = vrcp.f32 %v1362_v17 }
 0xc2b   :  { %v1373_v18 = vpop.permute.xlu0 %1372 }
 0xc2c   :  { %4350 = vmatprep.subr.msk.mxu0 %vm476_vm5, %v1373_v18 }
 0xc2d   :  { %4351 = vmatpush3.msk.msra.mxu0 %vm476_vm5, %v1373_v18 }
 0xc2e   :  { %4352 = vmatprep.subr.mxu0 %v1371_v13 }
 0xc2f   :  { %4353 = vmatpush3.msra.mxu0 %v1371_v13  ;;  %v1159_v62 = vpop.permute.xlu0 %1158  ;;  %v3910_v13 = vld [vmem:[%s5721_s12] ss:$0 sm:$0xff] }
 0xc30   :  { %4334 = vmatprep.subr.msk.mxu1 %vm353_vm2, %v1159_v62  ;;  %4357 = vmatprep.subr.msk.mxu0 %vm353_vm2, %v1465_v20 }
 0xc31   :  { %4335 = vmatpush3.xpose.msk.msra.mxu1 %vm353_vm2, %v1159_v62  ;;  %v4616_v27 = vpop.eup %4615 }
 0xc32   :  { %v1369_v29 = vmul.f32 %v4616_v27, %v4612_v10  ;;  %v1788_v27 = vld [vmem:[%s5724_s15 + $0x10] sm:$0xff] }
 0xc33   :  { %v1157_v26 = vpop.permute.xlu0 %1156 }
 0xc34   :  { %4336 = vmatprep.subr.msk.mxu1 %vm353_vm2, %v1157_v26 }
 0xc35   :  { %v4618_v23 = vpop.eup %4617  ;;  %4337 = vmatpush3.xpose.msk.msra.mxu1 %vm353_vm2, %v1157_v26  ;;  %v1789_v26 = vld [vmem:[%s5724_s15 + $0x18] sm:$0xff] }
 0xc36   :  { %v1368_v24 = vmul.f32 %v4618_v23, %v4614_v11  ;;  %v3909_v11 = vld [vmem:[%s5720_s11] ss:$0 sm:$0xff] }
 0xc37   :  { %v1155_v28 = vpop.permute.xlu0 %1154  ;;  %v1786_v23 = vld [vmem:[%s5724_s15] sm:$0xff] }
 0xc38   :  { %4338 = vmatprep.subr.msk.mxu1 %vm353_vm2, %v1155_v28  ;;  %4354 = vmatprep.mubr.msk.f32.mxu0 %vm441_vm4, %v1368_v24  ;;  %v3911_v24 = vld [vmem:[%s5723_s14] ss:$0 sm:$0xff] }
 0xc39   :  { %4339 = vmatpush3.xpose.msk.msra.mxu1 %vm353_vm2, %v1155_v28  ;;  %4355 = vmatmul.mubr.msk.f32.vlgmr.msra.gmra.mxu0 %vm441_vm4, %v1369_v29 }
 0xc3a   :  { %4358 = vmatpush3.xpose.msk.msra.mxu0 %vm353_vm2, %v1465_v20  ;;  %4368 = vmatprep.subr.msk.mxu1 %vm162_vm0, %v1619_v52 }
 0xc3b   :  { %4359 = vmatprep.subr.msk.mxu0 %vm353_vm2, %v1463_v40 }
 0xc3c   :  { %4341 = vmatmul.mubr.msk.f32.vlgmr.msra.gmra.mxu1 %vm353_vm2, %v5124_v57 }
 0xc3d   :  { %4369 = vmatpush3.xpose.msk.msra.mxu1 %vm162_vm0, %v1619_v52 }
 0xc3e   :  { %4360 = vmatpush3.xpose.msk.msra.mxu0 %vm353_vm2, %v1463_v40  ;;  %4370 = vmatprep.subr.msk.mxu1 %vm162_vm0, %v1618_v61  ;;  %v1787_v40 = vld [vmem:[%s5724_s15 + $0x8] sm:$0xff] }
 0xc3f   :  { %4361 = vmatprep.subr.msk.mxu0 %vm353_vm2, %v1461_v30 }
 0xc41   :  { %4371 = vmatpush3.xpose.msk.msra.mxu1 %vm162_vm0, %v1618_v61 }
 0xc42   :  { %4362 = vmatpush3.xpose.msk.msra.mxu0 %vm353_vm2, %v1461_v30  ;;  %4372 = vmatprep.subr.msk.mxu1 %vm162_vm0, %v1617_v63 }
 0xc43   :  { %4363 = vmatprep.subr.msk.mxu0 %vm353_vm2, %v1459_v31 }
 0xc45   :  { %4373 = vmatpush3.xpose.msk.msra.mxu1 %vm162_vm0, %v1617_v63 }
 0xc46   :  { %4364 = vmatpush3.xpose.msk.msra.mxu0 %vm353_vm2, %v1459_v31  ;;  %4374 = vmatprep.subr.msk.mxu1 %vm162_vm0, %v1616_v1 }
 0xc47   :  { %4387 = vmatprep.subr.msk.mxu0 %vm1797_vm6, %v1789_v26 }
 0xc49   :  { %4375 = vmatpush3.xpose.msk.msra.mxu1 %vm162_vm0, %v1616_v1 }
 0xc4a   :  { %4376 = vmatprep.subr.msk.mxu1 %vm162_vm0, %v1615_v2 }
 0xc4d   :  { %4377 = vmatpush3.xpose.msk.msra.mxu1 %vm162_vm0, %v1615_v2 }
 0xc4e   :  { %4378 = vmatprep.subr.msk.mxu1 %vm162_vm0, %v1614_v3 }
 0xc51   :  { %4379 = vmatpush3.xpose.msk.msra.mxu1 %vm162_vm0, %v1614_v3 }
 0xc52   :  { %4380 = vmatprep.subr.msk.mxu1 %vm162_vm0, %v1613_v5 }
 0xc55   :  { %4381 = vmatpush3.xpose.msk.msra.mxu1 %vm162_vm0, %v1613_v5 }
 0xc56   :  { %4382 = vmatprep.subr.msk.mxu1 %vm162_vm0, %v1612_v4 }
 0xc59   :  { %4383 = vmatpush3.xpose.msk.msra.mxu1 %vm162_vm0, %v1612_v4 }
 0xcf9   :  { %v4356_v32 = vpop.f32.mrf.mxu0 }
 0xcfb   :  { %v1449_v33 = vpop.f32.mrf.mxu0 }
 0xcfc   :  { %4365 = vmatprep.mubr.msk.f32.mxu0 %vm353_vm2, %v1449_v33  ;;  %v4342_v36 = vpop.f32.mrf.mxu1 }
 0xcfd   :  { %4366 = vmatmul.mubr.msk.f32.vlgmr.msra.gmra.mxu0 %vm353_vm2, %v4356_v32  ;;  %v1252_v41 = vadd.f32 %v4342_v36, %v946_v37 }
 0xcfe   :  { %v1242_v38 = vpop.f32.mrf.mxu1  ;;  %4388 = vmatpush3.xpose.msk.msra.mxu0 %vm1797_vm6, %v1789_v26 }
 0xcff   :  { %v1251_v43 = vadd.f32 %v1242_v38, %v941_v39  ;;  %4389 = vmatprep.subr.msk.mxu0 %vm1797_vm6, %v1788_v27 }
 0xd02   :  { %4390 = vmatpush3.xpose.msk.msra.mxu0 %vm1797_vm6, %v1788_v27 }
 0xd03   :  { %4391 = vmatprep.subr.msk.mxu0 %vm1797_vm6, %v1787_v40 }
 0xd06   :  { %4392 = vmatpush3.xpose.msk.msra.mxu0 %vm1797_vm6, %v1787_v40 }
 0xd07   :  { %4393 = vmatprep.subr.msk.mxu0 %vm1797_vm6, %v1786_v23 }
 0xd0a   :  { %4394 = vmatpush3.xpose.msk.msra.mxu0 %vm1797_vm6, %v1786_v23 }
 0xdbd   :  { %v4367_v42 = vpop.f32.mrf.mxu0 }
 0xdbe   :  { %v1556_v44 = vadd.f32 %v4367_v42, %v1252_v41 }
 0xdbf   :  { %v1546_v46 = vpop.f32.mrf.mxu0 }
 0xdc0   :  { %v1558_v47 = vadd.f32 %v1556_v44, %v4875_v19  ;;  %v1555_v48 = vadd.f32 %v1546_v46, %v1251_v43 }
 0xdc2   :  { %v5183_v49 = vadd.f32 %v3908_v45, %v1558_v47  ;;  %v1557_v50 = vadd.f32 %v1555_v48, %v4868_v14 }
 0xdc4   :  { %v5186_v21 = vadd.f32 %v3908_v45, %v1557_v50  ;;  %v1573_v22 = vsel %vm166_vm1, %v5183_v49, 0.0 }
 0xdc5   :  { %1574 = vadd.xlane.f32.xlu1 %v1573_v22 }
 0xdc6   :  { %v1570_v51 = vsel %vm162_vm0, %v5186_v21, 0.0 }
 0xdc7   :  { %1571 = vadd.xlane.f32.xlu0 %v1570_v51 }
 0xe4e   :  { %v1575_v19 = vpop.xlane.xlu1 %1574 }
 0xe4f   :  { %v1577_v14 = vmul.f32 0.03125, %v1575_v19 }
 0xe50   :  { %v1572_v53 = vpop.xlane.xlu0 %1571 }
 0xe51   :  { %v1576_v54 = vmul.f32 0.03125, %v1572_v53  ;;  %v1579_v55 = vsub.f32 %v5183_v49, %v1577_v14 }
 0xe53   :  { %v1578_v56 = vsub.f32 %v5186_v21, %v1576_v54  ;;  %v1581_v59 = vmul.f32 %v1579_v55, %v1579_v55 }
 0xe55   :  { %v1580_v57 = vmul.f32 %v1578_v56, %v1578_v56  ;;  %v1585_v60 = vsel %vm166_vm1, %v1581_v59, 0.0 }
 0xe57   :  { %v1582_v58 = vsel %vm162_vm0, %v1580_v57, 0.0 }
 0xe58   :  { %1583 = vadd.xlane.f32.xlu0 %v1582_v58 }
 0xe5c   :  { %1586 = vadd.xlane.f32.xlu0 %v1585_v60 }
 0xee1   :  { %v1584_v7 = vpop.xlane.xlu0 %1583 }
 0xee2   :  { %v1588_v6 = vmul.f32 0.03125, %v1584_v7 }
 0xee4   :  { %v1590_v8 = vadd.f32 1e-05, %v1588_v6 }
 0xee5   :  { %v1587_v0 = vpop.xlane.xlu0 %1586 }
 0xee6   :  { %4619 = vrsqrt.f32 %v1590_v8  ;;  %v1589_v9 = vmul.f32 0.03125, %v1587_v0 }
 0xee8   :  { %v1591_v10 = vadd.f32 1e-05, %v1589_v9 }
 0xeea   :  { %4621 = vrsqrt.f32 %v1591_v10 }
 0xef3   :  { %v4620_v25 = vpop.eup %4619 }
 0xef4   :  { %v1594_v12 = vmul.f32 %v4620_v25, %v1578_v56 }
 0xef6   :  { %v1602_v15 = vmul.f32 %v3909_v11, %v1594_v12 }
 0xef7   :  { %v4622_v16 = vpop.eup %4621 }
 0xef8   :  { %v1595_v17 = vmul.f32 %v4622_v16, %v1579_v55  ;;  %v1610_v18 = vadd.f32 %v3910_v13, %v1602_v15 }
 0xefa   :  { %v1603_v20 = vmul.f32 %v3909_v11, %v1595_v17  ;;  %4384 = vmatprep.mubr.msk.f32.mxu1 %vm162_vm0, %v1610_v18  ;;  %v3922_v18 = vld [vmem:[%s5725_s16] ss:$0 sm:$0xff] }
 0xefc   :  { %v1611_v62 = vadd.f32 %v3910_v13, %v1603_v20 }
 0xefe   :  { %4385 = vmatmul.mubr.msk.f32.vlgmr.msra.gmra.mxu1 %vm162_vm0, %v1611_v62 }
 0xfbe   :  { %v4386_v28 = vpop.f32.mrf.mxu1 }
 0xfbf   :  { %v1729_v29 = vadd.f32 %v4386_v28, %v3911_v24 }
 0xfc0   :  { %v1723_v30 = vpop.f32.mrf.mxu1 }
 0xfc1   :  { %v1735_v31 = vmul.f32 0.70710677, %v1729_v29  ;;  %v1724_v32 = vadd.f32 %v3911_v24, %v1723_v30  ;;  %v1733_v15 = vmul.f32 0.5, %v1729_v29  ;;  %v3944_v29 = vld [vmem:[%s5716_s7 + $0xb8] sm:$0xff]  ;;  %v3941_v30 = vld [vmem:[%s5716_s7 + $0xa0] sm:$0xff] }
 0xfc2   :  { %4398 = vmatprep.subr.msk.mxu0 %vm162_vm0, %v3944_v29 }
 0xfc3   :  { %v1737_v33 = vand.u32 2147483647, %v1735_v31  ;;  %v1734_v34 = vmul.f32 0.70710677, %v1724_v32  ;;  %vm1777_vm7 = vcmp.lt.f32.partialorder %v1735_v31, 0.0  ;;  %v1732_v12 = vmul.f32 0.5, %v1724_v32 }
 0xfc4   :  { %v3940_v31 = vld [vmem:[%s5716_s7 + $0x98] sm:$0xff]  ;;  %v3939_v32 = vld [vmem:[%s5716_s7 + $0x90] sm:$0xff] }
 0xfc5   :  { %v1739_v35 = vmul.f32 0.3275911, %v1737_v33  ;;  %v1736_v36 = vand.u32 2147483647, %v1734_v34  ;;  %v1765_v41 = vsub.f32 0.0, %v1737_v33  ;;  %vm1776_vm8 = vcmp.lt.f32.partialorder %v1734_v34, 0.0 }
 0xfc7   :  { %v1741_v37 = vadd.f32 1.0, %v1739_v35  ;;  %v1738_v38 = vmul.f32 0.3275911, %v1736_v36  ;;  %v1764_v42 = vsub.f32 0.0, %v1736_v36  ;;  %v1767_v43 = vmul.f32 %v1765_v41, %v1737_v33 }
 0xfc9   :  { %4623 = vrcp.f32 %v1741_v37  ;;  %v1740_v39 = vadd.f32 1.0, %v1738_v38  ;;  %v1766_v45 = vmul.f32 %v1764_v42, %v1736_v36  ;;  %v1770_v47 = vmul.f32 1.442695, %v1767_v43 }
 0xfcb   :  { %4625 = vrcp.f32 %v1740_v39  ;;  %v1768_v51 = vmul.f32 1.442695, %v1766_v45  ;;  %v3937_v45 = vld [vmem:[%s5716_s7 + $0x80] sm:$0xff] }
 0xfcc   :  { %4627 = vpow2.f32 %v1770_v47  ;;  %v3935_v47 = vld [vmem:[%s5716_s7 + $0x70] sm:$0xff] }
 0xfcd   :  { %4629 = vpow2.f32 %v1768_v51 }
 0xfd6   :  { %v4624_v44 = vpop.eup %4623 }
 0xfd7   :  { %v1747_v46 = vmul.f32 1.0614054, %v4624_v44 }
 0xfd8   :  { %v4626_v48 = vpop.eup %4625 }
 0xfd9   :  { %v1749_v50 = vadd.f32 -1.4531521, %v1747_v46  ;;  %v1746_v22 = vmul.f32 1.0614054, %v4626_v48  ;;  %v4628_v1 = vpop.eup %4627  ;;  %v3936_v46 = vld [vmem:[%s5716_s7 + $0x78] sm:$0xff] }
 0xfda   :  { %v4630_v4 = vpop.eup %4629 }
 0xfdb   :  { %v1751_v52 = vmul.f32 %v4624_v44, %v1749_v50  ;;  %v1748_v19 = vadd.f32 -1.4531521, %v1746_v22  ;;  %v3933_v50 = vld [vmem:[%s5716_s7 + $0x60] sm:$0xff] }
 0xfdd   :  { %v1753_v14 = vadd.f32 1.4214138, %v1751_v52  ;;  %v1750_v53 = vmul.f32 %v4626_v48, %v1748_v19 }
 0xfdf   :  { %v1755_v54 = vmul.f32 %v4624_v44, %v1753_v14  ;;  %v1752_v55 = vadd.f32 1.4214138, %v1750_v53 }
 0xfe1   :  { %v1757_v56 = vadd.f32 -0.28449672, %v1755_v54  ;;  %v1754_v57 = vmul.f32 %v4626_v48, %v1752_v55  ;;  %v3931_v55 = vld [vmem:[%s5753_s24 + $0x1] ss:$0 sm:$0xff] }
 0xfe3   :  { %v1759_v58 = vmul.f32 %v4624_v44, %v1757_v56  ;;  %v1756_v59 = vadd.f32 -0.28449672, %v1754_v57 }
 0xfe5   :  { %v1761_v60 = vadd.f32 0.2548296, %v1759_v58  ;;  %v1758_v61 = vmul.f32 %v4626_v48, %v1756_v59 }
 0xfe7   :  { %v1763_v63 = vmul.f32 %v4624_v44, %v1761_v60  ;;  %v1760_v2 = vadd.f32 0.2548296, %v1758_v61  ;;  %v3938_v44 = vld [vmem:[%s5716_s7 + $0x88] sm:$0xff]  ;;  %v3932_v60 = vld [vmem:[%s5715_s6 + $0x1] ss:$0 sm:$0xff] }
 0xfe9   :  { %v1773_v3 = vmul.f32 %v4628_v1, %v1763_v63  ;;  %v1762_v5 = vmul.f32 %v4626_v48, %v1760_v2  ;;  %v3934_v48 = vld [vmem:[%s5716_s7 + $0x68] sm:$0xff]  ;;  %v3946_v2 = vld [vmem:[%s5717_s8 + $0x1] ss:$0 sm:$0xff] }
 0xfeb   :  { %v1775_v7 = vsub.f32 1.0, %v1773_v3  ;;  %v1772_v6 = vmul.f32 %v4630_v4, %v1762_v5 }
 0xfed   :  { %v1779_v8 = vsub.f32 0.0, %v1775_v7  ;;  %v1774_v0 = vsub.f32 1.0, %v1772_v6 }
 0xfef   :  { %v1781_v9 = vsel %vm1777_vm7, %v1779_v8, %v1775_v7  ;;  %v1778_v10 = vsub.f32 0.0, %v1774_v0 }
 0xff0   :  { %v1783_v25 = vadd.f32 1.0, %v1781_v9 }
 0xff1   :  { %v1780_v11 = vsel %vm1776_vm8, %v1778_v10, %v1774_v0 }
 0xff2   :  { %v1782_v13 = vadd.f32 1.0, %v1780_v11  ;;  %v1785_v17 = vmul.f32 %v1783_v25, %v1733_v15 }
 0xff4   :  { %v1784_v16 = vmul.f32 %v1782_v13, %v1732_v12  ;;  %v5390_v13 = vld [vmem:[%s5754_s29 + $0x8] sm:$0x3] }
 0xff6   :  { %4395 = vmatprep.mubr.msk.f32.mxu0 %vm1797_vm6, %v1784_v16 }
 0xff7   :  { %4396 = vmatmul.mubr.msk.f32.vlgmr.msra.gmra.mxu0 %vm1797_vm6, %v1785_v17 }
 0xff8   :  { %4399 = vmatpush3.xpose.msk.msra.mxu0 %vm162_vm0, %v3944_v29 }
0x10b7   :  { %v4397_v20 = vpop.f32.mrf.mxu0 }
0x10b8   :  { %v1888_v62 = vadd.f32 %v4397_v20, %v3922_v18 }
0x10b9   :  { %v1882_v26 = vpop.f32.mrf.mxu0 }
0x10ba   :  { %v5273_v27 = vadd.f32 %v1888_v62, %v5183_v49  ;;  %v1883_v40 = vadd.f32 %v3922_v18, %v1882_v26  ;;  %v3943_v49 = vld [vmem:[%s5716_s7 + $0xb0] sm:$0xff] }
0x10bb   :  { %4400 = vmatprep.subr.msk.mxu0 %vm162_vm0, %v3943_v49 }
0x10bc   :  { %v5276_v23 = vadd.f32 %v1883_v40, %v5186_v21  ;;  %v1900_v24 = vsel %vm166_vm1, %v5273_v27, 0.0  ;;  %v3942_v21 = vld [vmem:[%s5716_s7 + $0xa8] sm:$0xff]  ;;  %4401 = vmatpush3.xpose.msk.msra.mxu0 %vm162_vm0, %v3943_v49 }
0x10bd   :  { %1901 = vadd.xlane.f32.xlu1 %v1900_v24  ;;  %4402 = vmatprep.subr.msk.mxu0 %vm162_vm0, %v3942_v21  ;;  %v5399_v24 = vld [vmem:[%s5754_s29] sm:$0xff]  ;;  %s5755_s29 = smov 72  }
0x10be   :  { %v1897_v28 = vsel %vm162_vm0, %v5276_v23, 0.0 }
0x10bf   :  { %1898 = vadd.xlane.f32.xlu0 %v1897_v28 }
0x10c0   :  { %4403 = vmatpush3.xpose.msk.msra.mxu0 %vm162_vm0, %v3942_v21 }
0x10c1   :  { %4404 = vmatprep.subr.msk.mxu0 %vm162_vm0, %v3941_v30 }
0x10c4   :  { %4405 = vmatpush3.xpose.msk.msra.mxu0 %vm162_vm0, %v3941_v30 }
0x10c5   :  { %4406 = vmatprep.subr.msk.mxu0 %vm162_vm0, %v3940_v31 }
0x10c8   :  { %4407 = vmatpush3.xpose.msk.msra.mxu0 %vm162_vm0, %v3940_v31 }
0x10c9   :  { %4408 = vmatprep.subr.msk.mxu0 %vm162_vm0, %v3939_v32 }
0x10cc   :  { %4409 = vmatpush3.xpose.msk.msra.mxu0 %vm162_vm0, %v3939_v32 }
0x10cd   :  { %4410 = vmatprep.subr.msk.mxu0 %vm162_vm0, %v3938_v44 }
0x10d0   :  { %4411 = vmatpush3.xpose.msk.msra.mxu0 %vm162_vm0, %v3938_v44 }
0x10d1   :  { %4412 = vmatprep.subr.msk.mxu0 %vm162_vm0, %v3937_v45 }
0x10d4   :  { %4413 = vmatpush3.xpose.msk.msra.mxu0 %vm162_vm0, %v3937_v45 }
0x10d5   :  { %4414 = vmatprep.subr.msk.mxu0 %vm162_vm0, %v3936_v46 }
0x10d8   :  { %4415 = vmatpush3.xpose.msk.msra.mxu0 %vm162_vm0, %v3936_v46 }
0x10d9   :  { %4416 = vmatprep.subr.msk.mxu0 %vm162_vm0, %v3935_v47 }
0x10dc   :  { %4417 = vmatpush3.xpose.msk.msra.mxu0 %vm162_vm0, %v3935_v47 }
0x10dd   :  { %4418 = vmatprep.subr.msk.mxu0 %vm162_vm0, %v3934_v48 }
0x10e0   :  { %4419 = vmatpush3.xpose.msk.msra.mxu0 %vm162_vm0, %v3934_v48 }
0x10e1   :  { %4420 = vmatprep.subr.msk.mxu0 %vm162_vm0, %v3933_v50 }
0x10e4   :  { %4421 = vmatpush3.xpose.msk.msra.mxu0 %vm162_vm0, %v3933_v50 }
0x1146   :  { %v1902_v33 = vpop.xlane.xlu1 %1901 }
0x1147   :  { %v1904_v34 = vmul.f32 0.03125, %v1902_v33 }
0x1148   :  { %v1899_v35 = vpop.xlane.xlu0 %1898 }
0x1149   :  { %v1906_v36 = vsub.f32 %v5273_v27, %v1904_v34  ;;  %v1903_v37 = vmul.f32 0.03125, %v1899_v35 }
0x114b   :  { %v1905_v38 = vsub.f32 %v5276_v23, %v1903_v37  ;;  %v1908_v39 = vmul.f32 %v1906_v36, %v1906_v36 }
0x114d   :  { %v1912_v41 = vsel %vm166_vm1, %v1908_v39, 0.0  ;;  %v1907_v42 = vmul.f32 %v1905_v38, %v1905_v38 }
0x114e   :  { %1913 = vadd.xlane.f32.xlu1 %v1912_v41 }
0x114f   :  { %v1909_v43 = vsel %vm162_vm0, %v1907_v42, 0.0 }
0x1150   :  { %1910 = vadd.xlane.f32.xlu0 %v1909_v43 }
0x11d7   :  { %v1914_v22 = vpop.xlane.xlu1 %1913 }
0x11d8   :  { %v1916_v51 = vmul.f32 0.03125, %v1914_v22 }
0x11d9   :  { %v1911_v52 = vpop.xlane.xlu0 %1910 }
0x11da   :  { %v1918_v19 = vadd.f32 1e-05, %v1916_v51  ;;  %v1915_v14 = vmul.f32 0.03125, %v1911_v52 }
0x11dc   :  { %4631 = vrsqrt.f32 %v1918_v19  ;;  %v1917_v53 = vadd.f32 1e-05, %v1915_v14 }
0x11de   :  { %4633 = vrsqrt.f32 %v1917_v53 }
0x11e9   :  { %v4632_v54 = vpop.eup %4631 }
0x11ea   :  { %v1922_v56 = vmul.f32 %v4632_v54, %v1906_v36 }
0x11eb   :  { %v4634_v57 = vpop.eup %4633 }
0x11ec   :  { %v1921_v58 = vmul.f32 %v4634_v57, %v1905_v38  ;;  %v1930_v59 = vmul.f32 %v3931_v55, %v1922_v56 }
0x11ee   :  { %v1929_v61 = vmul.f32 %v3931_v55, %v1921_v58  ;;  %v1938_v1 = vadd.f32 %v3932_v60, %v1930_v59 }
0x11f0   :  { %v1937_v63 = vadd.f32 %v3932_v60, %v1929_v61 }
0x11f2   :  { %4422 = vmatprep.mubr.msk.f32.mxu0 %vm162_vm0, %v1937_v63 }
0x11f3   :  { %4423 = vmatmul.mubr.msk.f32.vlgmr.msra.gmra.mxu0 %vm162_vm0, %v1938_v1 }
0x12b3   :  { %v4424_v3 = vpop.f32.mrf.mxu0 }
0x12b4   :  { %v5357_v5 = vadd.f32 %v4424_v3, %v3946_v2 }
0x12b5   :  { %v2068_v4 = vpop.f32.mrf.mxu0 }
0x12b6   :  { %v5359_v7 = vadd.f32 %v3946_v2, %v2068_v4  ;;  %2086 = vrot.lane.b32.xlu0 %v5357_v5, %s4705_s27 }
0x12b8   :  { %2084 = vrot.lane.b32.xlu1 %v5359_v7, %s4705_s27  ;;  %4429 = vmatprep.mubr.msk.f32.mxu1 %vm353_vm2, %v5359_v7 }
0x12ba   :  { %2680 = vrot.lane.b32.xlu0 %v5359_v7, %s4711_s2 }
0x12bc   :  { %2686 = vrot.lane.b32.xlu1 %v5357_v5, %s4710_s1 }
0x12c0   :  { %2684 = vrot.lane.b32.xlu1 %v5359_v7, %s4710_s1  ;;  %s5758_s1 = smov 40  }
0x12c4   :  { %2682 = vrot.lane.b32.xlu1 %v5357_v5, %s4711_s2 }
0x1328   :  { %v2087_v6 = vpop.permute.xlu0 %2086 }
0x1329   :  { %4425 = vmatprep.subr.msk.mxu1 %vm353_vm2, %v2087_v6 }
0x132a   :  { %4426 = vmatpush3.xpose.msk.msra.mxu1 %vm353_vm2, %v2087_v6  ;;  %v2085_v8 = vpop.permute.xlu1 %2084 }
0x132b   :  { %4427 = vmatprep.subr.msk.mxu1 %vm353_vm2, %v2085_v8 }
0x132c   :  { %v2681_v0 = vpop.permute.xlu0 %2680 }
0x132d   :  { %4479 = vmatprep.mubr.msk.f32.mxu0 %vm353_vm2, %v2681_v0 }
0x132e   :  { %4428 = vmatpush3.xpose.msk.msra.mxu1 %vm353_vm2, %v2085_v8  ;;  %v2687_v9 = vpop.permute.xlu1 %2686 }
0x132f   :  { %4475 = vmatprep.subr.msk.mxu0 %vm353_vm2, %v2687_v9 }
0x1330   :  { %4476 = vmatpush3.xpose.msk.msra.mxu0 %vm353_vm2, %v2687_v9 }
0x1331   :  { %4430 = vmatmul.mubr.msk.f32.vlgmr.msra.gmra.mxu1 %vm353_vm2, %v5357_v5 }
0x1332   :  { %v2685_v10 = vpop.permute.xlu1 %2684 }
0x1333   :  { %4477 = vmatprep.subr.msk.mxu0 %vm353_vm2, %v2685_v10 }
0x1334   :  { %4478 = vmatpush3.xpose.msk.msra.mxu0 %vm353_vm2, %v2685_v10 }
0x1336   :  { %v2683_v25 = vpop.permute.xlu1 %2682 }
0x1337   :  { %4480 = vmatmul.mubr.msk.f32.vlgmr.msra.gmra.mxu0 %vm353_vm2, %v2683_v25 }
0x13f1   :  { %v4431_v11 = vpop.f32.mrf.mxu1 }
0x13f2   :  { %v2172_v12 = vmul.f32 0.35355338, %v4431_v11 }
0x13f3   :  { %v2162_v16 = vpop.f32.mrf.mxu1 }
0x13f4   :  { %v2174_v15 = vadd.f32 %v5390_v13, %v2172_v12  ;;  %v2171_v20 = vmul.f32 0.35355338, %v2162_v16 }
0x13f6   :  { %v2178_v17 = vsel %vm445_vm3, %v2174_v15, -inf  ;;  %v2173_v28 = vadd.f32 %v5399_v24, %v2171_v20 }
0x13f7   :  { %v4481_v18 = vpop.f32.mrf.mxu0  ;;  %2179 = vmax.xlane.f32.xlu1 %v2178_v17 }
0x13f8   :  { %v2772_v62 = vmul.f32 0.35355338, %v4481_v18  ;;  %v2175_v29 = vsel %vm441_vm4, %v2173_v28, -inf }
0x13f9   :  { %v2762_v49 = vpop.f32.mrf.mxu0 }
0x13fa   :  { %v2774_v26 = vadd.f32 %v5390_v13, %v2772_v62  ;;  %v2771_v21 = vmul.f32 0.35355338, %v2762_v49 }
0x13fc   :  { %v2778_v40 = vsel %vm445_vm3, %v2774_v26, -inf  ;;  %v2773_v30 = vadd.f32 %v5399_v24, %v2771_v21 }
0x13fd   :  { %2779 = vmax.xlane.f32.xlu0 %v2778_v40 }
0x13fe   :  { %v2775_v31 = vsel %vm441_vm4, %v2773_v30, -inf }
0x1401   :  { %2176 = vmax.xlane.f32.xlu0 %v2175_v29 }
0x1408   :  { %2197 = vrot.lane.b32.xlu1 %v5359_v7, %s4706_s5 }
0x140c   :  { %2291 = vrot.lane.b32.xlu1 %v5357_v5, %s4707_s22 }
0x1410   :  { %2289 = vrot.lane.b32.xlu1 %v5359_v7, %s4707_s22  ;;  %s5757_s22 = smov 56  }
0x1417   :  { %2199 = vrot.lane.b32.xlu0 %v5357_v5, %s4706_s5  ;;  %s5756_s5 = smov 104  }
0x1436   :  { %2776 = vmax.xlane.f32.xlu0 %v2775_v31 }
0x144c   :  { %2285 = vrot.lane.b32.xlu0 %v5359_v7, %s4708_s23 }
0x1480   :  { %v2180_v32 = vpop.xlane.xlu1 %2179 }
0x1481   :  { %v2182_v33 = vsub.f32 %v2174_v15, %v2180_v32 }
0x1483   :  { %v2185_v34 = vmul.f32 1.442695, %v2182_v33 }
0x1484   :  { %v2198_v38 = vpop.permute.xlu1 %2197 }
0x1485   :  { %4635 = vpow2.f32 %v2185_v34 }
0x1486   :  { %v2780_v35 = vpop.xlane.xlu0 %2779 }
0x1487   :  { %v2782_v47 = vsub.f32 %v2774_v26, %v2780_v35 }
0x1488   :  { %v2292_v43 = vpop.permute.xlu1 %2291 }
0x1489   :  { %v2785_v48 = vmul.f32 1.442695, %v2782_v47 }
0x148a   :  { %v2177_v36 = vpop.xlane.xlu0 %2176 }
0x148b   :  { %v2181_v37 = vsub.f32 %v2173_v28, %v2177_v36 }
0x148c   :  { %v2290_v54 = vpop.permute.xlu1 %2289 }
0x148d   :  { %v2183_v39 = vmul.f32 1.442695, %v2181_v37 }
0x148e   :  { %v2200_v41 = vpop.permute.xlu0 %2199 }
0x148f   :  { %4637 = vpow2.f32 %v2183_v39  ;;  %4432 = vmatprep.subr.msk.mxu1 %vm476_vm5, %v2200_v41 }
0x1490   :  { %4433 = vmatpush3.msk.msra.mxu1 %vm476_vm5, %v2200_v41  ;;  %4639 = vpow2.f32 %v2785_v48 }
0x1491   :  { %4434 = vmatprep.subr.mxu1 %v2198_v38 }
0x1492   :  { %v4636_v42 = vpop.eup %4635  ;;  %4435 = vmatpush3.msra.mxu1 %v2198_v38 }
0x1493   :  { %4439 = vmatprep.subr.msk.mxu1 %vm353_vm2, %v2292_v43  ;;  %v2190_v44 = vsel %vm445_vm3, %v4636_v42, 0.0 }
0x1494   :  { %2191 = vadd.xlane.f32.xlu1 %v2190_v44 }
0x149c   :  { %v4638_v45 = vpop.eup %4637 }
0x149d   :  { %v2187_v46 = vsel %vm441_vm4, %v4638_v45, 0.0  ;;  %v4640_v52 = vpop.eup %4639 }
0x149e   :  { %2188 = vadd.xlane.f32.xlu0 %v2187_v46  ;;  %v2790_v19 = vsel %vm445_vm3, %v4640_v52, 0.0 }
0x14a5   :  { %2287 = vrot.lane.b32.xlu1 %v5357_v5, %s4708_s23 }
0x14b4   :  { %2799 = vrot.lane.b32.xlu0 %v5357_v5, %s4712_s26 }
0x14bf   :  { %v2777_v50 = vpop.xlane.xlu0 %2776 }
0x14c0   :  { %v2781_v22 = vsub.f32 %v2773_v30, %v2777_v50 }
0x14c2   :  { %v2783_v51 = vmul.f32 1.442695, %v2781_v22 }
0x14c3   :  { %v2286_v55 = vpop.permute.xlu0 %2285 }
0x14c4   :  { %4641 = vpow2.f32 %v2783_v51 }
0x14c9   :  { %2791 = vadd.xlane.f32.xlu1 %v2790_v19 }
0x14d1   :  { %v4642_v14 = vpop.eup %4641 }
0x14d2   :  { %v2787_v53 = vsel %vm441_vm4, %v4642_v14, 0.0 }
0x14d3   :  { %2788 = vadd.xlane.f32.xlu0 %v2787_v53 }
0x14da   :  { %2797 = vrot.lane.b32.xlu1 %v5359_v7, %s4712_s26 }
0x14de   :  { %2988 = vrot.lane.b32.xlu1 %v5359_v7, %s5755_s29 }
0x14e2   :  { %2986 = vrot.lane.b32.xlu1 %v5357_v5, %s5756_s5 }
0x14e9   :  { %2990 = vrot.lane.b32.xlu0 %v5357_v5, %s5755_s29 }
0x14ed   :  { %2984 = vrot.lane.b32.xlu0 %v5359_v7, %s5756_s5 }
0x151d   :  { %v2192_v56 = vpop.xlane.xlu1 %2191 }
0x151e   :  { %4643 = vrcp.f32 %v2192_v56  ;;  %v5489_v56 = vld [vmem:[%s5718_s9 + $0x28] sm:$0xff] }
0x1521   :  { %v2288_v1 = vpop.permute.xlu1 %2287 }
0x1527   :  { %v2189_v57 = vpop.xlane.xlu0 %2188 }
0x1528   :  { %4645 = vrcp.f32 %v2189_v57 }
0x152b   :  { %v2800_v58 = vpop.permute.xlu0 %2799  ;;  %v4644_v59 = vpop.eup %4643 }
0x152c   :  { %4482 = vmatprep.subr.msk.mxu0 %vm476_vm5, %v2800_v58  ;;  %v2196_v63 = vmul.f32 %v4644_v59, %v4636_v42 }
0x152d   :  { %4483 = vmatpush3.msk.msra.mxu0 %vm476_vm5, %v2800_v58 }
0x1535   :  { %v4646_v60 = vpop.eup %4645 }
0x1536   :  { %v2195_v61 = vmul.f32 %v4646_v60, %v4638_v45 }
0x1538   :  { %4436 = vmatprep.mubr.msk.f32.mxu1 %vm441_vm4, %v2195_v61 }
0x1539   :  { %4437 = vmatmul.mubr.msk.f32.vlgmr.msra.gmra.mxu1 %vm441_vm4, %v2196_v63 }
0x153a   :  { %4440 = vmatpush3.xpose.msk.msra.mxu1 %vm353_vm2, %v2292_v43  ;;  %4443 = vmatprep.mubr.msk.f32.mxu1 %vm353_vm2, %v2286_v55  ;;  %v5484_v55 = vld [vmem:[%s5718_s9 + $0x38] sm:$0xff] }
0x153b   :  { %4441 = vmatprep.subr.msk.mxu1 %vm353_vm2, %v2290_v54 }
0x153e   :  { %4442 = vmatpush3.xpose.msk.msra.mxu1 %vm353_vm2, %v2290_v54 }
0x1541   :  { %4444 = vmatmul.mubr.msk.f32.vlgmr.msra.gmra.mxu1 %vm353_vm2, %v2288_v1 }
0x1552   :  { %v2792_v2 = vpop.xlane.xlu1 %2791 }
0x1553   :  { %4647 = vrcp.f32 %v2792_v2 }
0x1556   :  { %v2798_v3 = vpop.permute.xlu1 %2797 }
0x1557   :  { %4484 = vmatprep.subr.mxu0 %v2798_v3 }
0x1558   :  { %4485 = vmatpush3.msra.mxu0 %v2798_v3 }
0x155a   :  { %v2989_v11 = vpop.permute.xlu1 %2988 }
0x155c   :  { %v2789_v4 = vpop.xlane.xlu0 %2788 }
0x155d   :  { %4649 = vrcp.f32 %v2789_v4 }
0x155e   :  { %v2987_v12 = vpop.permute.xlu1 %2986 }
0x1560   :  { %v2991_v6 = vpop.permute.xlu0 %2990  ;;  %v4648_v8 = vpop.eup %4647 }
0x1561   :  { %4500 = vmatprep.subr.msk.mxu0 %vm353_vm2, %v2991_v6  ;;  %v2796_v10 = vmul.f32 %v4648_v8, %v4640_v52 }
0x1564   :  { %v2985_v25 = vpop.permute.xlu0 %2984 }
0x156a   :  { %v4650_v0 = vpop.eup %4649 }
0x156b   :  { %v2795_v9 = vmul.f32 %v4650_v0, %v4642_v14 }
0x156d   :  { %4486 = vmatprep.mubr.msk.f32.mxu0 %vm441_vm4, %v2795_v9 }
0x156e   :  { %4487 = vmatmul.mubr.msk.f32.vlgmr.msra.gmra.mxu0 %vm441_vm4, %v2796_v10 }
0x156f   :  { %4501 = vmatpush3.xpose.msk.msra.mxu0 %vm353_vm2, %v2991_v6  ;;  %4504 = vmatprep.mubr.msk.f32.mxu0 %vm353_vm2, %v2985_v25 }
0x1570   :  { %4502 = vmatprep.subr.msk.mxu0 %vm353_vm2, %v2989_v11 }
0x1573   :  { %4503 = vmatpush3.xpose.msk.msra.mxu0 %vm353_vm2, %v2989_v11 }
0x1576   :  { %4505 = vmatmul.mubr.msk.f32.vlgmr.msra.gmra.mxu0 %vm353_vm2, %v2987_v12 }
0x15f9   :  { %v5453_v15 = vpop.f32.mrf.mxu1 }
0x15fb   :  { %v5455_v16 = vpop.f32.mrf.mxu1 }
0x1601   :  { %v4445_v17 = vpop.f32.mrf.mxu1 }
0x1602   :  { %v2377_v18 = vmul.f32 0.35355338, %v4445_v17 }
0x1603   :  { %v2367_v20 = vpop.f32.mrf.mxu1 }
0x1604   :  { %v2376_v62 = vmul.f32 0.35355338, %v2367_v20  ;;  %v2379_v26 = vadd.f32 %v5390_v13, %v2377_v18 }
0x1606   :  { %v2383_v40 = vsel %vm445_vm3, %v2379_v26, -inf  ;;  %v2378_v28 = vadd.f32 %v5399_v24, %v2376_v62 }
0x1607   :  { %2384 = vmax.xlane.f32.xlu1 %v2383_v40 }
0x1608   :  { %v2380_v29 = vsel %vm441_vm4, %v2378_v28, -inf }
0x1609   :  { %2381 = vmax.xlane.f32.xlu0 %v2380_v29 }
0x162e   :  { %v5461_v49 = vpop.f32.mrf.mxu0 }
0x1630   :  { %v5463_v21 = vpop.f32.mrf.mxu0 }
0x1636   :  { %v4506_v30 = vpop.f32.mrf.mxu0 }
0x1637   :  { %v3076_v32 = vmul.f32 0.35355338, %v4506_v30 }
0x1638   :  { %v3066_v31 = vpop.f32.mrf.mxu0 }
0x1639   :  { %v3075_v33 = vmul.f32 0.35355338, %v3066_v31  ;;  %v3078_v36 = vadd.f32 %v5390_v13, %v3076_v32 }
0x163b   :  { %v3077_v34 = vadd.f32 %v5399_v24, %v3075_v33  ;;  %v3082_v37 = vsel %vm445_vm3, %v3078_v36, -inf }
0x163d   :  { %v3079_v35 = vsel %vm441_vm4, %v3077_v34, -inf }
0x163e   :  { %3080 = vmax.xlane.f32.xlu0 %v3079_v35 }
0x1642   :  { %3083 = vmax.xlane.f32.xlu0 %v3082_v37 }
0x1690   :  { %v2385_v38 = vpop.xlane.xlu1 %2384 }
0x1691   :  { %v2387_v39 = vsub.f32 %v2379_v26, %v2385_v38 }
0x1692   :  { %v2382_v41 = vpop.xlane.xlu0 %2381 }
0x1693   :  { %v2390_v42 = vmul.f32 1.442695, %v2387_v39  ;;  %v2386_v43 = vsub.f32 %v2378_v28, %v2382_v41 }
0x1695   :  { %4651 = vpow2.f32 %v2390_v42  ;;  %v2388_v44 = vmul.f32 1.442695, %v2386_v43 }
0x1697   :  { %4653 = vpow2.f32 %v2388_v44 }
0x16a2   :  { %v4652_v45 = vpop.eup %4651 }
0x16a3   :  { %v2395_v46 = vsel %vm445_vm3, %v4652_v45, 0.0 }
0x16a4   :  { %v4654_v24 = vpop.eup %4653  ;;  %2396 = vadd.xlane.f32.xlu1 %v2395_v46 }
0x16a5   :  { %v2392_v47 = vsel %vm441_vm4, %v4654_v24, 0.0 }
0x16a6   :  { %2393 = vadd.xlane.f32.xlu0 %v2392_v47 }
0x16b5   :  { %2402 = vrot.lane.b32.xlu1 %v5359_v7, %s5757_s22 }
0x16bc   :  { %2404 = vrot.lane.b32.xlu0 %v5357_v5, %s5757_s22 }
0x16c7   :  { %v3081_v13 = vpop.xlane.xlu0 %3080 }
0x16c8   :  { %v3085_v48 = vsub.f32 %v3077_v34, %v3081_v13 }
0x16ca   :  { %v3087_v50 = vmul.f32 1.442695, %v3085_v48 }
0x16cb   :  { %v3084_v22 = vpop.xlane.xlu0 %3083 }
0x16cc   :  { %4655 = vpow2.f32 %v3087_v50  ;;  %v3086_v51 = vsub.f32 %v3078_v36, %v3084_v22 }
0x16ce   :  { %v3089_v52 = vmul.f32 1.442695, %v3086_v51 }
0x16d0   :  { %4657 = vpow2.f32 %v3089_v52  ;;  %v4030_v52 = vld [vmem:[%s5722_s13 + $0x78] sm:$0xff] }
0x16d9   :  { %v4656_v19 = vpop.eup %4655 }
0x16da   :  { %v3091_v14 = vsel %vm441_vm4, %v4656_v19, 0.0 }
0x16db   :  { %3092 = vadd.xlane.f32.xlu1 %v3091_v14 }
0x16dd   :  { %v4658_v53 = vpop.eup %4657 }
0x16de   :  { %v3094_v54 = vsel %vm445_vm3, %v4658_v53, 0.0 }
0x16df   :  { %3095 = vadd.xlane.f32.xlu0 %v3094_v54 }
0x16ec   :  { %3101 = vrot.lane.b32.xlu1 %v5359_v7, %s5758_s1  ;;  %v5507_v7 = vld [vmem:[%s5718_s9 + $0x20] sm:$0xff] }
0x16f0   :  { %2500 = vrot.lane.b32.xlu1 %v5484_v55, %s4708_s23 }
0x16f5   :  { %3103 = vrot.lane.b32.xlu0 %v5357_v5, %s5758_s1  ;;  %v5498_v5 = vld [vmem:[%s5718_s9 + $0x30] sm:$0xff]  ;;  %s5759_s1 = sld [smem:[#allocation9_spill]] }
0x16f6   :  { %2498 = vrot.lane.b32.xlu1 %v5498_v5, %s4708_s23 }
0x16f9   :  { %2496 = vrot.lane.b32.xlu0 %v5489_v56, %s4708_s23 }
0x16fa   :  { %2494 = vrot.lane.b32.xlu1 %v5507_v7, %s4708_s23 }
0x16fd   :  { %2891 = vrot.lane.b32.xlu0 %v5484_v55, %s4711_s2 }
0x16fe   :  { %3195 = vrot.lane.b32.xlu1 %v5484_v55, %s5756_s5 }
0x1701   :  { %2889 = vrot.lane.b32.xlu0 %v5498_v5, %s4711_s2 }
0x1702   :  { %3193 = vrot.lane.b32.xlu1 %v5498_v5, %s5756_s5 }
0x1705   :  { %2887 = vrot.lane.b32.xlu0 %v5489_v56, %s4711_s2 }
0x1706   :  { %3191 = vrot.lane.b32.xlu1 %v5489_v56, %s5756_s5 }
0x1709   :  { %2885 = vrot.lane.b32.xlu0 %v5507_v7, %s4711_s2 }
0x170a   :  { %3189 = vrot.lane.b32.xlu1 %v5507_v7, %s5756_s5 }
0x172d   :  { %v2397_v57 = vpop.xlane.xlu1 %2396 }
0x172e   :  { %4659 = vrcp.f32 %v2397_v57  ;;  %v4029_v57 = vld [vmem:[%s5722_s13 + $0x70] sm:$0xff] }
0x172f   :  { %v2394_v58 = vpop.xlane.xlu0 %2393 }
0x1730   :  { %4661 = vrcp.f32 %v2394_v58  ;;  %v4028_v58 = vld [vmem:[%s5722_s13 + $0x68] sm:$0xff] }
0x1731   :  { %v2403_v60 = vpop.permute.xlu1 %2402 }
0x1733   :  { %v2405_v59 = vpop.permute.xlu0 %2404 }
0x1734   :  { %4446 = vmatprep.subr.msk.mxu1 %vm476_vm5, %v2405_v59 }
0x1735   :  { %4447 = vmatpush3.msk.msra.mxu1 %vm476_vm5, %v2405_v59  ;;  %v4027_v59 = vld [vmem:[%s5722_s13 + $0x60] sm:$0xff] }
0x1736   :  { %4448 = vmatprep.subr.mxu1 %v2403_v60 }
0x1737   :  { %4449 = vmatpush3.msra.mxu1 %v2403_v60  ;;  %v4026_v60 = vld [vmem:[%s5722_s13 + $0x58] sm:$0xff] }
0x173b   :  { %v4660_v61 = vpop.eup %4659 }
0x173c   :  { %v2401_v2 = vmul.f32 %v4660_v61, %v4652_v45  ;;  %v4025_v61 = vld [vmem:[%s5722_s13 + $0x50] sm:$0xff] }
0x173d   :  { %v4662_v63 = vpop.eup %4661 }
0x173e   :  { %v2400_v1 = vmul.f32 %v4662_v63, %v4654_v24  ;;  %v4024_v63 = vld [vmem:[%s5722_s13 + $0x48] sm:$0xff] }
0x1740   :  { %4450 = vmatprep.mubr.msk.f32.mxu1 %vm441_vm4, %v2400_v1  ;;  %v4023_v1 = vld [vmem:[%s5722_s13 + $0x40] sm:$0xff]  ;;  %s4718_s13 = smov [#allocation2]  }
0x1741   :  { %4451 = vmatmul.mubr.msk.f32.vlgmr.msra.gmra.mxu1 %vm441_vm4, %v2401_v2  ;;  %s3831_s9 = sshll.u32 %s4718_s13, 4  ;;  %s3832_s9 = int_to_ptr.vmem [resolvable:$true] %s3831_s9 }
0x1742   :  { %p4688_p1 = scmp.lt.s32.totalorder %s3832_s9, %s3832_s9 }
0x1764   :  { %v3093_v3 = vpop.xlane.xlu1 %3092 }
0x1765   :  { %4663 = vrcp.f32 %v3093_v3 }
0x1768   :  { %v3102_v4 = vpop.permute.xlu1 %3101  ;;  %v3096_v6 = vpop.xlane.xlu0 %3095 }
0x1769   :  { %4665 = vrcp.f32 %v3096_v6 }
0x176c   :  { %v3104_v8 = vpop.permute.xlu0 %3103  ;;  %v2501_v0 = vpop.permute.xlu1 %2500 }
0x176d   :  { %4507 = vmatprep.subr.msk.mxu0 %vm476_vm5, %v3104_v8  ;;  %4453 = vmatprep.subr.msk.mxu1 %vm353_vm2, %v2501_v0 }
0x176e   :  { %4508 = vmatpush3.msk.msra.mxu0 %vm476_vm5, %v3104_v8  ;;  %4454 = vmatpush3.xpose.msk.msra.mxu1 %vm353_vm2, %v2501_v0 }
0x176f   :  { %4509 = vmatprep.subr.mxu0 %v3102_v4 }
0x1770   :  { %4510 = vmatpush3.msra.mxu0 %v3102_v4  ;;  %v2499_v9 = vpop.permute.xlu1 %2498  ;;  %v2497_v10 = vpop.permute.xlu0 %2496 }
0x1771   :  { %4455 = vmatprep.subr.msk.mxu1 %vm353_vm2, %v2499_v9 }
0x1772   :  { %v4664_v25 = vpop.eup %4663  ;;  %4456 = vmatpush3.xpose.msk.msra.mxu1 %vm353_vm2, %v2499_v9 }
0x1773   :  { %v3099_v11 = vmul.f32 %v4664_v25, %v4656_v19  ;;  %4457 = vmatprep.subr.msk.mxu1 %vm353_vm2, %v2497_v10 }
0x1774   :  { %v2495_v12 = vpop.permute.xlu1 %2494  ;;  %v2892_v30 = vpop.permute.xlu0 %2891 }
0x1775   :  { %4511 = vmatprep.mubr.msk.f32.mxu0 %vm441_vm4, %v3099_v11  ;;  %v4022_v11 = vld [vmem:[%s5721_s12 + $0x1] ss:$0 sm:$0xff] }
0x1776   :  { %v4666_v17 = vpop.eup %4665  ;;  %4458 = vmatpush3.xpose.msk.msra.mxu1 %vm353_vm2, %v2497_v10  ;;  %v4021_v10 = vld [vmem:[%s5720_s11 + $0x1] ss:$0 sm:$0xff] }
0x1777   :  { %v3100_v18 = vmul.f32 %v4666_v17, %v4658_v53  ;;  %4459 = vmatprep.subr.msk.mxu1 %vm353_vm2, %v2495_v12 }
0x1778   :  { %v3196_v20 = vpop.permute.xlu1 %3195  ;;  %v2890_v31 = vpop.permute.xlu0 %2889 }
0x1779   :  { %4512 = vmatmul.mubr.msk.f32.vlgmr.msra.gmra.mxu0 %vm441_vm4, %v3100_v18  ;;  %4514 = vmatprep.subr.msk.mxu0 %vm353_vm2, %v3196_v20 }
0x177a   :  { %4460 = vmatpush3.xpose.msk.msra.mxu1 %vm353_vm2, %v2495_v12  ;;  %4515 = vmatpush3.xpose.msk.msra.mxu0 %vm353_vm2, %v3196_v20 }
0x177b   :  { %4464 = vmatprep.subr.msk.mxu1 %vm353_vm2, %v5484_v55 }
0x177c   :  { %v3194_v62 = vpop.permute.xlu1 %3193 }
0x177d   :  { %4516 = vmatprep.subr.msk.mxu0 %vm353_vm2, %v3194_v62 }
0x177e   :  { %4517 = vmatpush3.xpose.msk.msra.mxu0 %vm353_vm2, %v3194_v62 }
0x1780   :  { %v3192_v26 = vpop.permute.xlu1 %3191 }
0x1781   :  { %4518 = vmatprep.subr.msk.mxu0 %vm353_vm2, %v3192_v26 }
0x1782   :  { %4519 = vmatpush3.xpose.msk.msra.mxu0 %vm353_vm2, %v3192_v26 }
0x1784   :  { %v3190_v40 = vpop.permute.xlu1 %3189 }
0x1785   :  { %4520 = vmatprep.subr.msk.mxu0 %vm353_vm2, %v3190_v40 }
0x1786   :  { %4521 = vmatpush3.xpose.msk.msra.mxu0 %vm353_vm2, %v3190_v40  ;;  %v4046_v40 = vld [vmem:[%s5724_s15 + $0x38] sm:$0xff] }
0x1787   :  { %4544 = vmatprep.subr.msk.mxu0 %vm1797_vm6, %v4046_v40 }
0x1801   :  { %v4452_v28 = vpop.f32.mrf.mxu1 }
0x1803   :  { %v2481_v29 = vpop.f32.mrf.mxu1 }
0x1804   :  { %4461 = vmatprep.mubr.msk.f32.mxu1 %vm353_vm2, %v2481_v29  ;;  %v4044_v29 = vld [vmem:[%s5724_s15 + $0x28] sm:$0xff] }
0x1805   :  { %4462 = vmatmul.mubr.msk.f32.vlgmr.msra.gmra.mxu1 %vm353_vm2, %v4452_v28  ;;  %v4045_v28 = vld [vmem:[%s5724_s15 + $0x30] sm:$0xff] }
0x1806   :  { %4465 = vmatpush3.xpose.msk.msra.mxu1 %vm353_vm2, %v5484_v55  ;;  %4472 = vmatprep.mubr.msk.f32.mxu1 %vm353_vm2, %v5455_v16  ;;  %v2888_v16 = vpop.permute.xlu0 %2887 }
0x1807   :  { %4466 = vmatprep.subr.msk.mxu1 %vm353_vm2, %v5498_v5 }
0x180a   :  { %4467 = vmatpush3.xpose.msk.msra.mxu1 %vm353_vm2, %v5498_v5  ;;  %v2886_v32 = vpop.permute.xlu0 %2885 }
0x180b   :  { %4468 = vmatprep.subr.msk.mxu1 %vm353_vm2, %v5489_v56 }
0x180e   :  { %4469 = vmatpush3.xpose.msk.msra.mxu1 %vm353_vm2, %v5489_v56 }
0x180f   :  { %4470 = vmatprep.subr.msk.mxu1 %vm353_vm2, %v5507_v7 }
0x1812   :  { %4471 = vmatpush3.xpose.msk.msra.mxu1 %vm353_vm2, %v5507_v7 }
0x1813   :  { %4489 = vmatprep.subr.msk.mxu1 %vm353_vm2, %v2892_v30 }
0x1815   :  { %4473 = vmatmul.mubr.msk.f32.vlgmr.msra.gmra.mxu1 %vm353_vm2, %v5453_v15 }
0x1816   :  { %4490 = vmatpush3.xpose.msk.msra.mxu1 %vm353_vm2, %v2892_v30  ;;  %4497 = vmatprep.mubr.msk.f32.mxu1 %vm353_vm2, %v5463_v21  ;;  %v4043_v30 = vld [vmem:[%s5724_s15 + $0x20] sm:$0xff] }
0x1817   :  { %4491 = vmatprep.subr.msk.mxu1 %vm353_vm2, %v2890_v31 }
0x181a   :  { %4492 = vmatpush3.xpose.msk.msra.mxu1 %vm353_vm2, %v2890_v31  ;;  %v4032_v31 = vld [vmem:[%s5723_s14 + $0x1] ss:$0 sm:$0xff] }
0x181b   :  { %4493 = vmatprep.subr.msk.mxu1 %vm353_vm2, %v2888_v16 }
0x181e   :  { %4494 = vmatpush3.xpose.msk.msra.mxu1 %vm353_vm2, %v2888_v16 }
0x181f   :  { %4495 = vmatprep.subr.msk.mxu1 %vm353_vm2, %v2886_v32 }
0x1822   :  { %4496 = vmatpush3.xpose.msk.msra.mxu1 %vm353_vm2, %v2886_v32 }
0x1823   :  { %4525 = vmatprep.subr.msk.mxu1 %vm162_vm0, %v4030_v52 }
0x1825   :  { %4498 = vmatmul.mubr.msk.f32.vlgmr.msra.gmra.mxu1 %vm353_vm2, %v5461_v49  ;;  %v4018_v49 = vld [vmem:[%s5719_s10 + $0x1] ss:$0 sm:$0xff] }
0x1826   :  { %4526 = vmatpush3.xpose.msk.msra.mxu1 %vm162_vm0, %v4030_v52 }
0x1827   :  { %4527 = vmatprep.subr.msk.mxu1 %vm162_vm0, %v4029_v57 }
0x182a   :  { %4528 = vmatpush3.xpose.msk.msra.mxu1 %vm162_vm0, %v4029_v57 }
0x182b   :  { %4529 = vmatprep.subr.msk.mxu1 %vm162_vm0, %v4028_v58 }
0x182e   :  { %4530 = vmatpush3.xpose.msk.msra.mxu1 %vm162_vm0, %v4028_v58 }
0x182f   :  { %4531 = vmatprep.subr.msk.mxu1 %vm162_vm0, %v4027_v59 }
0x1832   :  { %4532 = vmatpush3.xpose.msk.msra.mxu1 %vm162_vm0, %v4027_v59 }
0x1833   :  { %4533 = vmatprep.subr.msk.mxu1 %vm162_vm0, %v4026_v60 }
0x1836   :  { %4534 = vmatpush3.xpose.msk.msra.mxu1 %vm162_vm0, %v4026_v60 }
0x1837   :  { %4535 = vmatprep.subr.msk.mxu1 %vm162_vm0, %v4025_v61 }
0x1839   :  { %v4513_v15 = vpop.f32.mrf.mxu0 }
0x183a   :  { %4536 = vmatpush3.xpose.msk.msra.mxu1 %vm162_vm0, %v4025_v61 }
0x183b   :  { %v3180_v33 = vpop.f32.mrf.mxu0  ;;  %4537 = vmatprep.subr.msk.mxu1 %vm162_vm0, %v4024_v63 }
0x183c   :  { %4522 = vmatprep.mubr.msk.f32.mxu0 %vm353_vm2, %v3180_v33 }
0x183d   :  { %4523 = vmatmul.mubr.msk.f32.vlgmr.msra.gmra.mxu0 %vm353_vm2, %v4513_v15 }
0x183e   :  { %4538 = vmatpush3.xpose.msk.msra.mxu1 %vm162_vm0, %v4024_v63  ;;  %4545 = vmatpush3.xpose.msk.msra.mxu0 %vm1797_vm6, %v4046_v40 }
0x183f   :  { %4539 = vmatprep.subr.msk.mxu1 %vm162_vm0, %v4023_v1  ;;  %4546 = vmatprep.subr.msk.mxu0 %vm1797_vm6, %v4045_v28 }
0x1842   :  { %4540 = vmatpush3.xpose.msk.msra.mxu1 %vm162_vm0, %v4023_v1  ;;  %4547 = vmatpush3.xpose.msk.msra.mxu0 %vm1797_vm6, %v4045_v28 }
0x1843   :  { %4548 = vmatprep.subr.msk.mxu0 %vm1797_vm6, %v4044_v29 }
0x1846   :  { %4549 = vmatpush3.xpose.msk.msra.mxu0 %vm1797_vm6, %v4044_v29 }
0x1847   :  { %4550 = vmatprep.subr.msk.mxu0 %vm1797_vm6, %v4043_v30 }
0x184a   :  { %4551 = vmatpush3.xpose.msk.msra.mxu0 %vm1797_vm6, %v4043_v30 }
0x18c5   :  { %v4463_v21 = vpop.f32.mrf.mxu1 }
0x18c7   :  { %v2582_v34 = vpop.f32.mrf.mxu1 }
0x18d5   :  { %v4474_v35 = vpop.f32.mrf.mxu1 }
0x18d6   :  { %v2677_v38 = vadd.f32 %v4474_v35, %v4463_v21 }
0x18d7   :  { %v2671_v36 = vpop.f32.mrf.mxu1 }
0x18d8   :  { %v2672_v41 = vadd.f32 %v2671_v36, %v2582_v34 }
0x18e5   :  { %v4499_v37 = vpop.f32.mrf.mxu1 }
0x18e6   :  { %v2983_v42 = vadd.f32 %v4499_v37, %v2677_v38 }
0x18e7   :  { %v2973_v39 = vpop.f32.mrf.mxu1 }
0x18e8   :  { %v2982_v44 = vadd.f32 %v2973_v39, %v2672_v41 }
0x18fd   :  { %v4524_v43 = vpop.f32.mrf.mxu0 }
0x18fe   :  { %v3287_v45 = vadd.f32 %v4524_v43, %v2983_v42 }
0x18ff   :  { %v3277_v46 = vpop.f32.mrf.mxu0 }
0x1900   :  { %v3289_v24 = vadd.f32 %v3287_v45, %v5273_v27  ;;  %v3286_v47 = vadd.f32 %v3277_v46, %v2982_v44 }
0x1902   :  { %v5589_v13 = vadd.f32 %v4018_v49, %v3289_v24  ;;  %v3288_v48 = vadd.f32 %v3286_v47, %v5276_v23 }
0x1904   :  { %v5592_v50 = vadd.f32 %v4018_v49, %v3288_v48  ;;  %v3307_v22 = vsel %vm166_vm1, %v5589_v13, 0.0 }
0x1905   :  { %3308 = vadd.xlane.f32.xlu1 %v3307_v22 }
0x1906   :  { %v3304_v51 = vsel %vm162_vm0, %v5592_v50, 0.0 }
0x1907   :  { %3305 = vadd.xlane.f32.xlu0 %v3304_v51 }
0x198e   :  { %v3309_v27 = vpop.xlane.xlu1 %3308 }
0x198f   :  { %v3311_v23 = vmul.f32 0.03125, %v3309_v27 }
0x1990   :  { %v3306_v19 = vpop.xlane.xlu0 %3305 }
0x1991   :  { %v3310_v14 = vmul.f32 0.03125, %v3306_v19  ;;  %v3313_v53 = vsub.f32 %v5589_v13, %v3311_v23 }
0x1993   :  { %v3312_v54 = vsub.f32 %v5592_v50, %v3310_v14  ;;  %v3315_v5 = vmul.f32 %v3313_v53, %v3313_v53 }
0x1995   :  { %v3314_v55 = vmul.f32 %v3312_v54, %v3312_v54  ;;  %v3319_v7 = vsel %vm166_vm1, %v3315_v5, 0.0 }
0x1997   :  { %v3316_v56 = vsel %vm162_vm0, %v3314_v55, 0.0 }
0x1998   :  { %3317 = vadd.xlane.f32.xlu0 %v3316_v56 }
0x199c   :  { %3320 = vadd.xlane.f32.xlu0 %v3319_v7 }
0x1a21   :  { %v3318_v2 = vpop.xlane.xlu0 %3317 }
0x1a22   :  { %v3322_v3 = vmul.f32 0.03125, %v3318_v2 }
0x1a24   :  { %v3324_v4 = vadd.f32 1e-05, %v3322_v3 }
0x1a25   :  { %v3321_v6 = vpop.xlane.xlu0 %3320 }
0x1a26   :  { %4667 = vrsqrt.f32 %v3324_v4  ;;  %v3323_v8 = vmul.f32 0.03125, %v3321_v6 }
0x1a28   :  { %v3325_v0 = vadd.f32 1e-05, %v3323_v8 }
0x1a2a   :  { %4669 = vrsqrt.f32 %v3325_v0 }
0x1a33   :  { %v4668_v9 = vpop.eup %4667 }
0x1a34   :  { %v3328_v25 = vmul.f32 %v4668_v9, %v3312_v54 }
0x1a36   :  { %v3336_v12 = vmul.f32 %v4021_v10, %v3328_v25 }
0x1a37   :  { %v4670_v17 = vpop.eup %4669 }
0x1a38   :  { %v3329_v18 = vmul.f32 %v4670_v17, %v3313_v53  ;;  %v3344_v20 = vadd.f32 %v4022_v11, %v3336_v12 }
0x1a3a   :  { %v3337_v62 = vmul.f32 %v4021_v10, %v3329_v18  ;;  %4541 = vmatprep.mubr.msk.f32.mxu1 %vm162_vm0, %v3344_v20  ;;  %v4716_v20 = vmov 0.0  }
0x1a3b   :  { %4555 = vmatprep.subr.mxu0 %v4716_v20  ;;  %4562 = vmatprep.subr.mxu1 %v4716_v20 }
0x1a3c   :  { %v3345_v26 = vadd.f32 %v4022_v11, %v3337_v62  ;;  %v4048_v62 = vld [vmem:[%s5725_s16 + $0x1] ss:$0 sm:$0xff] }
0x1a3e   :  { %4542 = vmatmul.mubr.msk.f32.vlgmr.msra.gmra.mxu1 %vm162_vm0, %v3345_v26 }
0x1a3f   :  { %4566 = vmatprep.mubr.msk.f32.mxu1 %vm4717_vm11, %v4716_v20 }
0x1afe   :  { %v4543_v16 = vpop.f32.mrf.mxu1 }
0x1aff   :  { %v3465_v32 = vadd.f32 %v4543_v16, %v4032_v31  ;;  %v3630_v16 = vld [vmem:[%s5759_s1] sm:$0x3] }
0x1b00   :  { %v3459_v15 = vpop.f32.mrf.mxu1 }
0x1b01   :  { %v3471_v33 = vmul.f32 0.70710677, %v3465_v32  ;;  %v3460_v21 = vadd.f32 %v4032_v31, %v3459_v15  ;;  %v3469_v12 = vmul.f32 0.5, %v3465_v32 }
0x1b03   :  { %v3473_v34 = vand.u32 2147483647, %v3471_v33  ;;  %v3470_v35 = vmul.f32 0.70710677, %v3460_v21  ;;  %vm3513_vm9 = vcmp.lt.f32.partialorder %v3471_v33, 0.0  ;;  %v3468_v25 = vmul.f32 0.5, %v3460_v21 }
0x1b05   :  { %v3475_v36 = vmul.f32 0.3275911, %v3473_v34  ;;  %v3472_v37 = vand.u32 2147483647, %v3470_v35  ;;  %v3501_v42 = vsub.f32 0.0, %v3473_v34  ;;  %vm3512_vm10 = vcmp.lt.f32.partialorder %v3470_v35, 0.0 }
0x1b07   :  { %v3477_v38 = vadd.f32 1.0, %v3475_v36  ;;  %v3474_v39 = vmul.f32 0.3275911, %v3472_v37  ;;  %v3500_v43 = vsub.f32 0.0, %v3472_v37  ;;  %v3503_v44 = vmul.f32 %v3501_v42, %v3473_v34  ;;  %v3737_v36 = vld [vmem:[%s5728_s19 + $0x8] sm:$0x3] }
0x1b08   :  { %4563 = vmatpush3.xpose.msk.msra.mxu1 %vm162_vm0, %v3737_v36 }
0x1b09   :  { %4671 = vrcp.f32 %v3477_v38  ;;  %v3476_v41 = vadd.f32 1.0, %v3474_v39  ;;  %v3502_v49 = vmul.f32 %v3500_v43, %v3472_v37  ;;  %v3506_v24 = vmul.f32 1.442695, %v3503_v44  ;;  %4564 = vmatprep.subr.mxu1 %v4716_v20  ;;  %v3736_v37 = vld [vmem:[%s5728_s19] sm:$0xff] }
0x1b0a   :  { %v4057_v43 = vld [vmem:[%s5726_s17] ss:$0 sm:$0xff]  ;;  %s4683_s17 = scalar_lea.vmem %s3832_s9, 32 }
0x1b0b   :  { %4673 = vrcp.f32 %v3476_v41  ;;  %v3504_v51 = vmul.f32 1.442695, %v3502_v49  ;;  %p4684_p0 = scmp.ne.s32.totalorder %s3832_s9, %s4683_s17  ;;  %p4689_p2 = scmp.lt.s32.totalorder %s4683_s17, %s4683_s17 }
0x1b0c   :  { %4675 = vpow2.f32 %v3506_v24  ;;  %4565 = vmatpush3.xpose.msk.msra.mxu1 %vm162_vm0, %v3736_v37  ;;  %v4059_v24 = vld [vmem:[%s5729_s20] ss:$0 sm:$0xff] }
0x1b0d   :  { %4677 = vpow2.f32 %v3504_v51  ;;  %p4690_p3 = por %p4689_p2, %p4688_p1 }
0x1b0f   :  { %p4691_p4 = pnand %p4690_p3, %p4684_p0 }
0x1b16   :  { %v4672_v45 = vpop.eup %4671 }
0x1b17   :  { %v3483_v46 = vmul.f32 1.0614054, %v4672_v45 }
0x1b18   :  { %v4674_v47 = vpop.eup %4673 }
0x1b19   :  { %v3485_v48 = vadd.f32 -1.4531521, %v3483_v46  ;;  %v3482_v22 = vmul.f32 1.0614054, %v4674_v47  ;;  %v4676_v59 = vpop.eup %4675 }
0x1b1a   :  { %v4678_v1 = vpop.eup %4677 }
0x1b1b   :  { %v3487_v52 = vmul.f32 %v4672_v45, %v3485_v48  ;;  %v3484_v27 = vadd.f32 -1.4531521, %v3482_v22 }
0x1b1d   :  { %v3489_v23 = vadd.f32 1.4214138, %v3487_v52  ;;  %v3486_v19 = vmul.f32 %v4674_v47, %v3484_v27 }
0x1b1f   :  { %v3491_v14 = vmul.f32 %v4672_v45, %v3489_v23  ;;  %v3488_v53 = vadd.f32 1.4214138, %v3486_v19 }
0x1b21   :  { %v3493_v54 = vadd.f32 -0.28449672, %v3491_v14  ;;  %v3490_v55 = vmul.f32 %v4674_v47, %v3488_v53 }
0x1b23   :  { %v3495_v56 = vmul.f32 %v4672_v45, %v3493_v54  ;;  %v3492_v5 = vadd.f32 -0.28449672, %v3490_v55 }
0x1b25   :  { %v3497_v7 = vadd.f32 0.2548296, %v3495_v56  ;;  %v3494_v57 = vmul.f32 %v4674_v47, %v3492_v5 }
0x1b27   :  { %v3499_v58 = vmul.f32 %v4672_v45, %v3497_v7  ;;  %v3496_v60 = vadd.f32 0.2548296, %v3494_v57  ;;  %v4058_v45 = vld [vmem:[%s5727_s18] ss:$0 sm:$0xff] }
0x1b29   :  { %v3509_v61 = vmul.f32 %v4676_v59, %v3499_v58  ;;  %v3498_v63 = vmul.f32 %v4674_v47, %v3496_v60 }
0x1b2b   :  { %v3511_v2 = vsub.f32 1.0, %v3509_v61  ;;  %v3508_v3 = vmul.f32 %v4678_v1, %v3498_v63 }
0x1b2d   :  { %v3515_v4 = vsub.f32 0.0, %v3511_v2  ;;  %v3510_v6 = vsub.f32 1.0, %v3508_v3 }
0x1b2f   :  { %v3517_v8 = vsel %vm3513_vm9, %v3515_v4, %v3511_v2  ;;  %v3514_v0 = vsub.f32 0.0, %v3510_v6 }
0x1b30   :  { %v3519_v9 = vadd.f32 1.0, %v3517_v8 }
0x1b31   :  { %v3516_v10 = vsel %vm3512_vm10, %v3514_v0, %v3510_v6 }
0x1b32   :  { %v3518_v11 = vadd.f32 1.0, %v3516_v10  ;;  %v3521_v18 = vmul.f32 %v3519_v9, %v3469_v12 }
0x1b34   :  { %v3520_v17 = vmul.f32 %v3518_v11, %v3468_v25 }
0x1b36   :  { %4552 = vmatprep.mubr.msk.f32.mxu0 %vm1797_vm6, %v3520_v17 }
0x1b37   :  { %4553 = vmatmul.mubr.msk.f32.vlgmr.msra.gmra.mxu0 %vm1797_vm6, %v3521_v18 }
0x1b38   :  { %4559 = vmatprep.mubr.msk.f32.mxu0 %vm4717_vm11, %v4716_v20 }
0x1bf7   :  { %v4554_v26 = vpop.f32.mrf.mxu0 }
0x1bf8   :  { %v3625_v40 = vadd.f32 %v4554_v26, %v4048_v62 }
0x1bf9   :  { %v3619_v28 = vpop.f32.mrf.mxu0 }
0x1bfa   :  { %v3629_v29 = vadd.f32 %v3625_v40, %v5589_v13  ;;  %v3620_v30 = vadd.f32 %v4048_v62, %v3619_v28 }
0x1bfc   :  { %v3628_v31 = vadd.f32 %v3620_v30, %v5592_v50  ;;  %4556 = vmatpush3.msk.msra.mxu0 %vm476_vm5, %v3629_v29 }
0x1bfd   :  { %4557 = vmatprep.subr.mxu0 %v4716_v20 }
0x1bfe   :  { %4558 = vmatpush3.msra.mxu0 %v3628_v31 }
0x1bff   :  { %4560 = vmatmul.mubr.msk.f32.vlgmr.msra.gmra.mxu0 %vm441_vm4, %v3630_v16 }
0x1cbf   :  { %v3703_v32 = vpop.f32.mrf.mxu0 }
0x1cc0   :  { %v3709_v15 = vsel %vm166_vm1, %v3703_v32, 0.0 }
0x1cc1   :  { %3710 = vadd.xlane.f32.xlu0 %v3709_v15  ;;  %v4561_v33 = vpop.f32.mrf.mxu0 }
0x1d4a   :  { %v3711_v21 = vpop.xlane.xlu0 %3710 }
0x1d4b   :  { %v3712_v13 = vmul.f32 0.03125, %v3711_v21 }
0x1d4d   :  { %v3713_v34 = vsub.f32 %v3703_v32, %v3712_v13 }
0x1d4f   :  { %v3714_v35 = vmul.f32 %v3713_v34, %v3713_v34 }
0x1d51   :  { %v3715_v50 = vsel %vm166_vm1, %v3714_v35, 0.0 }
0x1d52   :  { %3716 = vadd.xlane.f32.xlu1 %v3715_v50 }
0x1ddb   :  { %v3717_v38 = vpop.xlane.xlu1 %3716 }
0x1ddc   :  { %v3718_v39 = vmul.f32 0.03125, %v3717_v38 }
0x1dde   :  { %v3719_v41 = vadd.f32 1e-05, %v3718_v39 }
0x1de0   :  { %4679 = vrsqrt.f32 %v3719_v41 }
0x1ded   :  { %v4680_v42 = vpop.eup %4679 }
0x1dee   :  { %v3721_v44 = vmul.f32 %v4680_v42, %v3713_v34 }
0x1df0   :  { %v3728_v49 = vmul.f32 %v4057_v43, %v3721_v44 }
0x1df2   :  { %v3735_v46 = vadd.f32 %v4058_v45, %v3728_v49 }
0x1df4   :  { %4567 = vmatmul.mubr.msk.f32.vlgmr.msra.gmra.mxu1 %vm162_vm0, %v3735_v46 }
0x1eb4   :  { %v3820_v47 = vpop.f32.mrf.mxu1 }
0x1eb5   :  { %v3821_v48 = vadd.f32 %v4059_v24, %v3820_v47 }
0x1eb6   :  { %v4568_v22 = vpop.f32.mrf.mxu1 }
0x1eb7   :  { %3824 = vst.msk [vmem:[#allocation2] sm:$0x3] %vm445_vm3, %v3821_v48 }
0x1eb8   :  { %4694 = shalt.err (!%p4691_p4)
}
0x1eb9   :  { %3834 = dma.vmem_to_hbm [thread:$0]  %s3832_s9, 32, %s5730_s21, [#allocation3]  }
0x1eba   :  { %4703 = dma.done.wait [#allocation3], 32  }
0x1ebb   :  { %4704 = vsyncadd [#allocation3], 4294967264 }
0x1ebc   :  { %3838 = vsyncpa [#allocation3], 1 }

</bundles_post_ra>
